<compile_context>
chip_gen: v7x
topology: tpu7x:2x2x1
jax: 0.10.0
libtpu: 0.0.40
codegen_flags: <defaults>
</compile_context>

<pallas_src>
import jax
import jax.numpy as jnp
from jax.experimental import pallas as pl
from jax.experimental.pallas import tpu as pltpu

LN_EPS = 1e-5


def _round_up(x: int, m: int) -> int:
    return (x + m - 1) // m * m


def _vmem_limit_bytes(default: int = 64 * 1024 * 1024) -> int:
    """~60% of this chip's physical VMEM (v7x: ~38 MiB, v5e/v6e: ~77 MiB)."""
    try:
        cap = pltpu.get_tpu_info().vmem_capacity_bytes
    except Exception:
        return default
    return int(min(cap * 0.6, 96 * 1024 * 1024))


def ffn_kernel(x_ref, gamma_ref, beta_ref, w1_ref, b1_ref, w2_ref, b2_ref, o_ref):
    # x_ref/o_ref: (tm, D) bf16 tiles; w1: (D, H); w2: (H, D) (bf16);
    # gamma/beta: (1, D); b1: (1, H); b2: (1, D) (f32).
    x = x_ref[...].astype(jnp.float32)

    # --- LayerNorm over last dim, one-pass statistics (f32 on the VPU) ---
    mean = jnp.mean(x, axis=-1, keepdims=True)
    mean_sq = jnp.mean(x * x, axis=-1, keepdims=True)
    var = jnp.maximum(mean_sq - mean * mean, 0.0)
    xn = (x - mean) * jax.lax.rsqrt(var + LN_EPS)
    xn = xn * gamma_ref[...] + beta_ref[...]

    # --- Linear1 (bf16 MXU operands, f32 accumulation) + Swish (f32) ---
    h = jnp.dot(xn.astype(w1_ref.dtype), w1_ref[...],
                preferred_element_type=jnp.float32) + b1_ref[...]
    h = h * jax.nn.sigmoid(h)  # Swish / SiLU

    # TODO(synk): dropout omitted (inference semantics); train-mode dropout
    # would use pltpu.prng_seed + pltpu.stateful_bernoulli here.

    # --- Linear2 (bf16 MXU operands, f32 accumulation) ---
    y = jnp.dot(h.astype(w2_ref.dtype), w2_ref[...],
                preferred_element_type=jnp.float32) + b2_ref[...]

    o_ref[...] = y.astype(o_ref.dtype)


def feed_forward_module(x, gamma, beta, w1, b1, w2, b2, *,
                        tm=512,
                        matmul_dtype=jnp.bfloat16,
                        io_dtype=jnp.bfloat16):
    """x: (B, T, D) -> (B, T, D) in `io_dtype` (bf16 activation streaming)."""
    B, T, D = x.shape
    H = w1.shape[1]
    M = B * T

    # Row tile: large (fills the MXU M dim, amortizes ~0.35us/step overhead),
    # clipped to the workload; then make sure the parallel grid has >= 2 steps
    # whenever possible so both v7x TensorCores get work.
    tm = max(8, min(tm, _round_up(M, 8)))
    if M > 8 and pl.cdiv(M, tm) < 2:
        tm = max(8, _round_up(pl.cdiv(M, 2), 8))
    grid = (pl.cdiv(M, tm),)  # ragged last block handled by Pallas (no host pad)

    # Activations streamed in bf16 (no-op if x is already bf16).
    x2 = x.reshape(M, D).astype(io_dtype)

    gamma2 = gamma.reshape(1, D).astype(jnp.float32)
    beta2 = beta.reshape(1, D).astype(jnp.float32)
    b1_2 = b1.reshape(1, H).astype(jnp.float32)
    b2_2 = b2.reshape(1, D).astype(jnp.float32)
    # Weights in bf16: half the DMA bytes / VMEM, full-rate MXU on v6e/v7x.
    w1c = w1.astype(matmul_dtype)
    w2c = w2.astype(matmul_dtype)

    def build(single_buffer_invariants: bool):
        def inv_spec(shape):
            # Grid-invariant operand: constant index map (fetched once); ask for
            # single buffering to save VMEM when the build supports it.
            if single_buffer_invariants:
                return pl.BlockSpec(shape, lambda i: (0, 0),
                                    pipeline_mode=pl.Buffered(1))
            return pl.BlockSpec(shape, lambda i: (0, 0))

        return pl.pallas_call(
            ffn_kernel,
            out_shape=jax.ShapeDtypeStruct((M, D), io_dtype),
            grid_spec=pltpu.PrefetchScalarGridSpec(
                num_scalar_prefetch=0,
                grid=grid,
                in_specs=[
                    pl.BlockSpec((tm, D), lambda i: (i, 0)),  # x row tile (streamed)
                    inv_spec((1, D)),    # ln gamma
                    inv_spec((1, D)),    # ln beta
                    inv_spec((D, H)),    # w1
                    inv_spec((1, H)),    # b1
                    inv_spec((H, D)),    # w2
                    inv_spec((1, D)),    # b2
                ],
                out_specs=pl.BlockSpec((tm, D), lambda i: (i, 0)),
            ),
            compiler_params=pltpu.CompilerParams(
                dimension_semantics=("parallel",),
                vmem_limit_bytes=_vmem_limit_bytes(),
            ),
        )

    args = (x2, gamma2, beta2, w1c, b1_2, w2c, b2_2)
    try:
        out = build(single_buffer_invariants=True)(*args)
    except Exception:
        # pipeline_mode=pl.Buffered(1) not accepted by this JAX/libtpu build;
        # fall back to default double buffering (correctness identical).
        out = build(single_buffer_invariants=False)(*args)

    return out.reshape(B, T, D)


def reference(x, gamma, beta, w1, b1, w2, b2):
    x = x.astype(jnp.float32)
    mean = jnp.mean(x, axis=-1, keepdims=True)
    var = jnp.mean(jnp.square(x - mean), axis=-1, keepdims=True)
    xn = (x - mean) * jax.lax.rsqrt(var + LN_EPS) * gamma + beta
    h = xn @ w1 + b1
    h = h * jax.nn.sigmoid(h)
    return h @ w2 + b2


if __name__ == "__main__":
    # Small but non-trivial shapes: D=256 keeps the lane axis dense, M=128
    # rows give a >=2-step parallel grid (exercises pipelining / megacore).
    B, T, D = 2, 64, 256
    EXPANSION = 4
    H = D * EXPANSION  # 1024

    key = jax.random.PRNGKey(0)
    kx, kw1, kb1, kw2, kb2, kg, kb = jax.random.split(key, 7)

    # Activations in bf16 (per perf review: halve the streamed HBM bytes).
    x = jax.random.normal(kx, (B, T, D), dtype=jnp.float32).astype(jnp.bfloat16)

    gamma = 1.0 + 0.1 * jax.random.normal(kg, (D,), dtype=jnp.float32)
    beta = 0.1 * jax.random.normal(kb, (D,), dtype=jnp.float32)
    w1 = jax.random.normal(kw1, (D, H), dtype=jnp.float32) / jnp.sqrt(D)
    b1 = 0.01 * jax.random.normal(kb1, (H,), dtype=jnp.float32)
    w2 = jax.random.normal(kw2, (H, D), dtype=jnp.float32) / jnp.sqrt(H)
    b2 = 0.01 * jax.random.normal(kb2, (D,), dtype=jnp.float32)

    out = feed_forward_module(x, gamma, beta, w1, b1, w2, b2)
    out = jax.block_until_ready(out)

    ref = reference(x.astype(jnp.float32), gamma, beta, w1, b1, w2, b2)
    assert out.shape == (B, T, D)
    assert out.dtype == jnp.bfloat16
    out_f32 = out.astype(jnp.float32)
    # bf16 activation/weight streaming with f32 accumulation -> loose tolerance.
    assert jnp.allclose(out_f32, ref, atol=1e-1, rtol=5e-2), (
        float(jnp.max(jnp.abs(out_f32 - ref))))

    print("KERNEL_OK")
</pallas_src>

<mosaic_0001>
module attributes {stable_mosaic.version = 11 : i64} {
  func.func @ffn_kernel(%arg0: i32, %arg1: memref<64x256xbf16, #tpu.memory_space<vmem>>, %arg2: memref<1x256xf32, #tpu.memory_space<vmem>>, %arg3: memref<1x256xf32, #tpu.memory_space<vmem>>, %arg4: memref<256x1024xbf16, #tpu.memory_space<vmem>>, %arg5: memref<1x1024xf32, #tpu.memory_space<vmem>>, %arg6: memref<1024x256xbf16, #tpu.memory_space<vmem>>, %arg7: memref<1x256xf32, #tpu.memory_space<vmem>>, %arg8: memref<64x256xbf16, #tpu.memory_space<vmem>>) attributes {dimension_semantics = [#tpu.dimension_semantics<parallel>], iteration_bounds = array<i64: 2>, scalar_prefetch = 0 : i64, scratch_operands = 0 : i64, tpu.core_type = #tpu.core_type<tc>, window_params = [{transform_indices = @transform_0, window_bounds = array<i64: 64, 256>}, {pipeline_mode = #tpu.pipeline_mode<synchronous>, transform_indices = @transform_1, window_bounds = array<i64: 1, 256>}, {pipeline_mode = #tpu.pipeline_mode<synchronous>, transform_indices = @transform_2, window_bounds = array<i64: 1, 256>}, {pipeline_mode = #tpu.pipeline_mode<synchronous>, transform_indices = @transform_3, window_bounds = array<i64: 256, 1024>}, {pipeline_mode = #tpu.pipeline_mode<synchronous>, transform_indices = @transform_4, window_bounds = array<i64: 1, 1024>}, {pipeline_mode = #tpu.pipeline_mode<synchronous>, transform_indices = @transform_5, window_bounds = array<i64: 1024, 256>}, {pipeline_mode = #tpu.pipeline_mode<synchronous>, transform_indices = @transform_6, window_bounds = array<i64: 1, 256>}, {transform_indices = @transform_7, window_bounds = array<i64: 64, 256>}]} {
    %c0 = arith.constant 0 : index
    %c0_0 = arith.constant 0 : index
    %0 = vector.load %arg1[%c0, %c0_0] : memref<64x256xbf16, #tpu.memory_space<vmem>>, vector<64x256xbf16>
    %1 = arith.extf %0 : vector<64x256xbf16> to vector<64x256xf32>
    %cst = arith.constant dense<0.000000e+00> : vector<64xf32>
    %2 = vector.multi_reduction <add>, %1, %cst [1] : vector<64x256xf32> to vector<64xf32>
    %3 = vector.shape_cast %2 : vector<64xf32> to vector<64x1xf32>
    %cst_1 = arith.constant 2.560000e+02 : f32
    %4 = vector.broadcast %cst_1 : f32 to vector<64x1xf32>
    %5 = arith.divf %3, %4 : vector<64x1xf32>
    %6 = arith.mulf %1, %1 : vector<64x256xf32>
    %cst_2 = arith.constant dense<0.000000e+00> : vector<64xf32>
    %7 = vector.multi_reduction <add>, %6, %cst_2 [1] : vector<64x256xf32> to vector<64xf32>
    %8 = vector.shape_cast %7 : vector<64xf32> to vector<64x1xf32>
    %cst_3 = arith.constant 2.560000e+02 : f32
    %9 = vector.broadcast %cst_3 : f32 to vector<64x1xf32>
    %10 = arith.divf %8, %9 : vector<64x1xf32>
    %11 = arith.mulf %5, %5 : vector<64x1xf32>
    %12 = arith.subf %10, %11 : vector<64x1xf32>
    %cst_4 = arith.constant 0.000000e+00 : f32
    %13 = vector.broadcast %cst_4 : f32 to vector<64x1xf32>
    %14 = arith.maximumf %12, %13 : vector<64x1xf32>
    %15 = vector.broadcast %5 : vector<64x1xf32> to vector<64x256xf32>
    %16 = arith.subf %1, %15 : vector<64x256xf32>
    %cst_5 = arith.constant 9.99999974E-6 : f32
    %17 = vector.broadcast %cst_5 : f32 to vector<64x1xf32>
    %18 = arith.addf %14, %17 : vector<64x1xf32>
    %19 = math.rsqrt %18 : vector<64x1xf32>
    %20 = vector.broadcast %19 : vector<64x1xf32> to vector<64x256xf32>
    %21 = arith.mulf %16, %20 : vector<64x256xf32>
    %c0_6 = arith.constant 0 : index
    %c0_7 = arith.constant 0 : index
    %22 = vector.load %arg2[%c0_6, %c0_7] : memref<1x256xf32, #tpu.memory_space<vmem>>, vector<1x256xf32>
    %23 = vector.broadcast %22 : vector<1x256xf32> to vector<64x256xf32>
    %24 = arith.mulf %21, %23 : vector<64x256xf32>
    %c0_8 = arith.constant 0 : index
    %c0_9 = arith.constant 0 : index
    %25 = vector.load %arg3[%c0_8, %c0_9] : memref<1x256xf32, #tpu.memory_space<vmem>>, vector<1x256xf32>
    %26 = vector.broadcast %25 : vector<1x256xf32> to vector<64x256xf32>
    %27 = arith.addf %24, %26 : vector<64x256xf32>
    %28 = arith.truncf %27 : vector<64x256xf32> to vector<64x256xbf16>
    %c0_10 = arith.constant 0 : index
    %c0_11 = arith.constant 0 : index
    %29 = vector.load %arg4[%c0_10, %c0_11] : memref<256x1024xbf16, #tpu.memory_space<vmem>>, vector<256x1024xbf16>
    %cst_12 = arith.constant dense<0.000000e+00> : vector<64x1024xf32>
    %30 = tpu.matmul %28, %29, %cst_12 {dimension_numbers = #tpu.dot_dimension_numbers<[1], [0], [0], [1], [0, 0, 1, 1], [], []>} : vector<64x256xbf16>, vector<256x1024xbf16>, vector<64x1024xf32> -> vector<64x1024xf32>
    %c0_13 = arith.constant 0 : index
    %c0_14 = arith.constant 0 : index
    %31 = vector.load %arg5[%c0_13, %c0_14] : memref<1x1024xf32, #tpu.memory_space<vmem>>, vector<1x1024xf32>
    %32 = vector.broadcast %31 : vector<1x1024xf32> to vector<64x1024xf32>
    %33 = arith.addf %30, %32 : vector<64x1024xf32>
    %34 = arith.negf %33 : vector<64x1024xf32>
    %35 = math.exp %34 : vector<64x1024xf32>
    %cst_15 = arith.constant 1.000000e+00 : f32
    %36 = vector.broadcast %cst_15 : f32 to vector<64x1024xf32>
    %37 = arith.addf %36, %35 : vector<64x1024xf32>
    %38 = arith.divf %36, %37 : vector<64x1024xf32>
    %39 = arith.mulf %33, %38 : vector<64x1024xf32>
    %40 = arith.truncf %39 : vector<64x1024xf32> to vector<64x1024xbf16>
    %c0_16 = arith.constant 0 : index
    %c0_17 = arith.constant 0 : index
    %41 = vector.load %arg6[%c0_16, %c0_17] : memref<1024x256xbf16, #tpu.memory_space<vmem>>, vector<1024x256xbf16>
    %cst_18 = arith.constant dense<0.000000e+00> : vector<64x256xf32>
    %42 = tpu.matmul %40, %41, %cst_18 {dimension_numbers = #tpu.dot_dimension_numbers<[1], [0], [0], [1], [0, 0, 1, 1], [], []>} : vector<64x1024xbf16>, vector<1024x256xbf16>, vector<64x256xf32> -> vector<64x256xf32>
    %c0_19 = arith.constant 0 : index
    %c0_20 = arith.constant 0 : index
    %43 = vector.load %arg7[%c0_19, %c0_20] : memref<1x256xf32, #tpu.memory_space<vmem>>, vector<1x256xf32>
    %44 = vector.broadcast %43 : vector<1x256xf32> to vector<64x256xf32>
    %45 = arith.addf %42, %44 : vector<64x256xf32>
    %46 = arith.truncf %45 : vector<64x256xf32> to vector<64x256xbf16>
    %c0_21 = arith.constant 0 : index
    %c0_22 = arith.constant 0 : index
    %47 = vector.load %arg8[%c0_21, %c0_22] : memref<64x256xbf16, #tpu.memory_space<vmem>>, vector<64x256xbf16>
    tpu.vector_store %arg8[%c0_21, %c0_22], %46 {strides = array<i32>} : memref<64x256xbf16, #tpu.memory_space<vmem>>, vector<64x256xbf16>,
    return
  }
  func.func @transform_0(%arg0: i32) -> (i32, i32) {
    %c0_i32 = arith.constant 0 : i32
    %c0_i32_0 = arith.constant 0 : i32
    return %arg0, %c0_i32 : i32, i32
  }
  func.func @transform_1(%arg0: i32) -> (i32, i32) {
    %c0_i32 = arith.constant 0 : i32
    %c0_i32_0 = arith.constant 0 : i32
    %c0_i32_1 = arith.constant 0 : i32
    return %c0_i32, %c0_i32_0 : i32, i32
  }
  func.func @transform_2(%arg0: i32) -> (i32, i32) {
    %c0_i32 = arith.constant 0 : i32
    %c0_i32_0 = arith.constant 0 : i32
    %c0_i32_1 = arith.constant 0 : i32
    return %c0_i32, %c0_i32_0 : i32, i32
  }
  func.func @transform_3(%arg0: i32) -> (i32, i32) {
    %c0_i32 = arith.constant 0 : i32
    %c0_i32_0 = arith.constant 0 : i32
    %c0_i32_1 = arith.constant 0 : i32
    return %c0_i32, %c0_i32_0 : i32, i32
  }
  func.func @transform_4(%arg0: i32) -> (i32, i32) {
    %c0_i32 = arith.constant 0 : i32
    %c0_i32_0 = arith.constant 0 : i32
    %c0_i32_1 = arith.constant 0 : i32
    return %c0_i32, %c0_i32_0 : i32, i32
  }
  func.func @transform_5(%arg0: i32) -> (i32, i32) {
    %c0_i32 = arith.constant 0 : i32
    %c0_i32_0 = arith.constant 0 : i32
    %c0_i32_1 = arith.constant 0 : i32
    return %c0_i32, %c0_i32_0 : i32, i32
  }
  func.func @transform_6(%arg0: i32) -> (i32, i32) {
    %c0_i32 = arith.constant 0 : i32
    %c0_i32_0 = arith.constant 0 : i32
    %c0_i32_1 = arith.constant 0 : i32
    return %c0_i32, %c0_i32_0 : i32, i32
  }
  func.func @transform_7(%arg0: i32) -> (i32, i32) {
    %c0_i32 = arith.constant 0 : i32
    %c0_i32_0 = arith.constant 0 : i32
    return %arg0, %c0_i32 : i32, i32
  }
}

module attributes {stable_mosaic.version = 11 : i64} {
  func.func @ffn_kernel(%arg0: i32, %arg1: memref<64x256xbf16, #tpu.memory_space<vmem>>, %arg2: memref<1x256xf32, #tpu.memory_space<vmem>>, %arg3: memref<1x256xf32, #tpu.memory_space<vmem>>, %arg4: memref<256x1024xbf16, #tpu.memory_space<vmem>>, %arg5: memref<1x1024xf32, #tpu.memory_space<vmem>>, %arg6: memref<1024x256xbf16, #tpu.memory_space<vmem>>, %arg7: memref<1x256xf32, #tpu.memory_space<vmem>>, %arg8: memref<64x256xbf16, #tpu.memory_space<vmem>>) attributes {dimension_semantics = [#tpu.dimension_semantics<parallel>], iteration_bounds = array<i64: 2>, scalar_prefetch = 0 : i64, scratch_operands = 0 : i64, tpu.core_type = #tpu.core_type<tc>, window_params = [{transform_indices = @transform_0, window_bounds = array<i64: 64, 256>}, {pipeline_mode = #tpu.pipeline_mode<synchronous>, transform_indices = @transform_1, window_bounds = array<i64: 1, 256>}, {pipeline_mode = #tpu.pipeline_mode<synchronous>, transform_indices = @transform_2, window_bounds = array<i64: 1, 256>}, {pipeline_mode = #tpu.pipeline_mode<synchronous>, transform_indices = @transform_3, window_bounds = array<i64: 256, 1024>}, {pipeline_mode = #tpu.pipeline_mode<synchronous>, transform_indices = @transform_4, window_bounds = array<i64: 1, 1024>}, {pipeline_mode = #tpu.pipeline_mode<synchronous>, transform_indices = @transform_5, window_bounds = array<i64: 1024, 256>}, {pipeline_mode = #tpu.pipeline_mode<synchronous>, transform_indices = @transform_6, window_bounds = array<i64: 1, 256>}, {transform_indices = @transform_7, window_bounds = array<i64: 64, 256>}]} {
    %c0 = arith.constant 0 : index
    %c0_0 = arith.constant 0 : index
    %0 = vector.load %arg1[%c0, %c0_0] : memref<64x256xbf16, #tpu.memory_space<vmem>>, vector<64x256xbf16>
    %1 = arith.extf %0 : vector<64x256xbf16> to vector<64x256xf32>
    %cst = arith.constant dense<0.000000e+00> : vector<64xf32>
    %2 = vector.multi_reduction <add>, %1, %cst [1] : vector<64x256xf32> to vector<64xf32>
    %3 = vector.shape_cast %2 : vector<64xf32> to vector<64x1xf32>
    %cst_1 = arith.constant 2.560000e+02 : f32
    %4 = vector.broadcast %cst_1 : f32 to vector<64x1xf32>
    %5 = arith.divf %3, %4 : vector<64x1xf32>
    %6 = arith.mulf %1, %1 : vector<64x256xf32>
    %cst_2 = arith.constant dense<0.000000e+00> : vector<64xf32>
    %7 = vector.multi_reduction <add>, %6, %cst_2 [1] : vector<64x256xf32> to vector<64xf32>
    %8 = vector.shape_cast %7 : vector<64xf32> to vector<64x1xf32>
    %cst_3 = arith.constant 2.560000e+02 : f32
    %9 = vector.broadcast %cst_3 : f32 to vector<64x1xf32>
    %10 = arith.divf %8, %9 : vector<64x1xf32>
    %11 = arith.mulf %5, %5 : vector<64x1xf32>
    %12 = arith.subf %10, %11 : vector<64x1xf32>
    %cst_4 = arith.constant 0.000000e+00 : f32
    %13 = vector.broadcast %cst_4 : f32 to vector<64x1xf32>
    %14 = arith.maximumf %12, %13 : vector<64x1xf32>
    %15 = vector.broadcast %5 : vector<64x1xf32> to vector<64x256xf32>
    %16 = arith.subf %1, %15 : vector<64x256xf32>
    %cst_5 = arith.constant 9.99999974E-6 : f32
    %17 = vector.broadcast %cst_5 : f32 to vector<64x1xf32>
    %18 = arith.addf %14, %17 : vector<64x1xf32>
    %19 = math.rsqrt %18 : vector<64x1xf32>
    %20 = vector.broadcast %19 : vector<64x1xf32> to vector<64x256xf32>
    %21 = arith.mulf %16, %20 : vector<64x256xf32>
    %c0_6 = arith.constant 0 : index
    %c0_7 = arith.constant 0 : index
    %22 = vector.load %arg2[%c0_6, %c0_7] : memref<1x256xf32, #tpu.memory_space<vmem>>, vector<1x256xf32>
    %23 = vector.broadcast %22 : vector<1x256xf32> to vector<64x256xf32>
    %24 = arith.mulf %21, %23 : vector<64x256xf32>
    %c0_8 = arith.constant 0 : index
    %c0_9 = arith.constant 0 : index
    %25 = vector.load %arg3[%c0_8, %c0_9] : memref<1x256xf32, #tpu.memory_space<vmem>>, vector<1x256xf32>
    %26 = vector.broadcast %25 : vector<1x256xf32> to vector<64x256xf32>
    %27 = arith.addf %24, %26 : vector<64x256xf32>
    %28 = arith.truncf %27 : vector<64x256xf32> to vector<64x256xbf16>
    %c0_10 = arith.constant 0 : index
    %c0_11 = arith.constant 0 : index
    %29 = vector.load %arg4[%c0_10, %c0_11] : memref<256x1024xbf16, #tpu.memory_space<vmem>>, vector<256x1024xbf16>
    %cst_12 = arith.constant dense<0.000000e+00> : vector<64x1024xf32>
    %30 = tpu.matmul %28, %29, %cst_12 {dimension_numbers = #tpu.dot_dimension_numbers<[1], [0], [0], [1], [0, 0, 1, 1], [], []>} : vector<64x256xbf16>, vector<256x1024xbf16>, vector<64x1024xf32> -> vector<64x1024xf32>
    %c0_13 = arith.constant 0 : index
    %c0_14 = arith.constant 0 : index
    %31 = vector.load %arg5[%c0_13, %c0_14] : memref<1x1024xf32, #tpu.memory_space<vmem>>, vector<1x1024xf32>
    %32 = vector.broadcast %31 : vector<1x1024xf32> to vector<64x1024xf32>
    %33 = arith.addf %30, %32 : vector<64x1024xf32>
    %34 = arith.negf %33 : vector<64x1024xf32>
    %35 = math.exp %34 : vector<64x1024xf32>
    %cst_15 = arith.constant 1.000000e+00 : f32
    %36 = vector.broadcast %cst_15 : f32 to vector<64x1024xf32>
    %37 = arith.addf %36, %35 : vector<64x1024xf32>
    %38 = arith.divf %36, %37 : vector<64x1024xf32>
    %39 = arith.mulf %33, %38 : vector<64x1024xf32>
    %40 = arith.truncf %39 : vector<64x1024xf32> to vector<64x1024xbf16>
    %c0_16 = arith.constant 0 : index
    %c0_17 = arith.constant 0 : index
    %41 = vector.load %arg6[%c0_16, %c0_17] : memref<1024x256xbf16, #tpu.memory_space<vmem>>, vector<1024x256xbf16>
    %cst_18 = arith.constant dense<0.000000e+00> : vector<64x256xf32>
    %42 = tpu.matmul %40, %41, %cst_18 {dimension_numbers = #tpu.dot_dimension_numbers<[1], [0], [0], [1], [0, 0, 1, 1], [], []>} : vector<64x1024xbf16>, vector<1024x256xbf16>, vector<64x256xf32> -> vector<64x256xf32>
    %c0_19 = arith.constant 0 : index
    %c0_20 = arith.constant 0 : index
    %43 = vector.load %arg7[%c0_19, %c0_20] : memref<1x256xf32, #tpu.memory_space<vmem>>, vector<1x256xf32>
    %44 = vector.broadcast %43 : vector<1x256xf32> to vector<64x256xf32>
    %45 = arith.addf %42, %44 : vector<64x256xf32>
    %46 = arith.truncf %45 : vector<64x256xf32> to vector<64x256xbf16>
    %c0_21 = arith.constant 0 : index
    %c0_22 = arith.constant 0 : index
    %47 = vector.load %arg8[%c0_21, %c0_22] : memref<64x256xbf16, #tpu.memory_space<vmem>>, vector<64x256xbf16>
    tpu.vector_store %arg8[%c0_21, %c0_22], %46 {strides = array<i32>} : memref<64x256xbf16, #tpu.memory_space<vmem>>, vector<64x256xbf16>,
    return
  }
  func.func @transform_0(%arg0: i32) -> (i32, i32) {
    %c0_i32 = arith.constant 0 : i32
    %c0_i32_0 = arith.constant 0 : i32
    return %arg0, %c0_i32 : i32, i32
  }
  func.func @transform_1(%arg0: i32) -> (i32, i32) {
    %c0_i32 = arith.constant 0 : i32
    %c0_i32_0 = arith.constant 0 : i32
    %c0_i32_1 = arith.constant 0 : i32
    return %c0_i32, %c0_i32_0 : i32, i32
  }
  func.func @transform_2(%arg0: i32) -> (i32, i32) {
    %c0_i32 = arith.constant 0 : i32
    %c0_i32_0 = arith.constant 0 : i32
    %c0_i32_1 = arith.constant 0 : i32
    return %c0_i32, %c0_i32_0 : i32, i32
  }
  func.func @transform_3(%arg0: i32) -> (i32, i32) {
    %c0_i32 = arith.constant 0 : i32
    %c0_i32_0 = arith.constant 0 : i32
    %c0_i32_1 = arith.constant 0 : i32
    return %c0_i32, %c0_i32_0 : i32, i32
  }
  func.func @transform_4(%arg0: i32) -> (i32, i32) {
    %c0_i32 = arith.constant 0 : i32
    %c0_i32_0 = arith.constant 0 : i32
    %c0_i32_1 = arith.constant 0 : i32
    return %c0_i32, %c0_i32_0 : i32, i32
  }
  func.func @transform_5(%arg0: i32) -> (i32, i32) {
    %c0_i32 = arith.constant 0 : i32
    %c0_i32_0 = arith.constant 0 : i32
    %c0_i32_1 = arith.constant 0 : i32
    return %c0_i32, %c0_i32_0 : i32, i32
  }
  func.func @transform_6(%arg0: i32) -> (i32, i32) {
    %c0_i32 = arith.constant 0 : i32
    %c0_i32_0 = arith.constant 0 : i32
    %c0_i32_1 = arith.constant 0 : i32
    return %c0_i32, %c0_i32_0 : i32, i32
  }
  func.func @transform_7(%arg0: i32) -> (i32, i32) {
    %c0_i32 = arith.constant 0 : i32
    %c0_i32_0 = arith.constant 0 : i32
    return %arg0, %c0_i32 : i32, i32
  }
}

</mosaic_0001>

<bundles_post_ra>
// kernel: tpu_custom_call.1
= control target key start
LH: loop header
LB: loop body
LE: loop exit
PB: predicated region body
PF: predicated region fallthrough
CT: control target
= control target key end

     0   :  { %s5769_s0 = inlined_call_operand.hbm [shape: bf16[128,256], index: 0, kind: input, shape index: {}]   ;;  %s5770_s1 = inlined_call_operand.hbm [shape: f32[1,256], index: 1, kind: input, shape index: {}]   ;;  %s5771_s2 = inlined_call_operand.hbm [shape: f32[1,256], index: 2, kind: input, shape index: {}]   ;;  %s5772_s3 = inlined_call_operand.hbm [shape: bf16[256,1024], index: 3, kind: input, shape index: {}]   ;;  %s5773_s4 = inlined_call_operand.hbm [shape: f32[1,1024], index: 4, kind: input, shape index: {}]   ;;  %s5774_s5 = inlined_call_operand.hbm [shape: bf16[1024,256], index: 5, kind: input, shape index: {}]   ;;  %s5775_s6 = inlined_call_operand.hbm [shape: f32[1,256], index: 6, kind: input, shape index: {}]   ;;  %s5776_s7 = inlined_call_operand.hbm [shape: bf16[128,256], index: 7, kind: output, shape index: {}]  }
   0x1   :  { %5780 = sst [smem:[#allocation20_spill]] %s5770_s1 }
   0x2   :  { %12 = vsyncpa [#allocation3], 0 }
   0x3   :  { %14 = vsyncpa [#allocation3 + $0x1], 0 }
   0x4   :  { %15 = vsyncpa [#allocation6], 0 }
   0x5   :  { %16 = vsyncpa [#allocation9], 0 }
   0x6   :  { %17 = vsyncpa [#allocation12], 0 }
   0x7   :  { %18 = vsyncpa [#allocation4], 0 }
   0x8   :  { %20 = vsyncpa [#allocation4 + $0x1], 0  ;;  %s4817_s24 = smov 0   ;;  %s4819_s25 = smov 0  }
   0x9   :  { %s4821_s26 = smov 0   ;;  %s4823_s27 = smov 0  }
   0xa LB: > { %s4763_s28 = smov [#allocation5]   ;;  %s4838_s30 = sadd.s32 4294967295, %s4761_s27   ;;  %s4761_s27 = sphi %s4823_s27, %s5804_s27   ;;  %s4757_s26 = sphi %s4821_s26, %s5803_s26   ;;  %s4753_s25 = sphi %s4819_s25, %s5802_s25   ;;  %s4749_s24 = sphi %s4817_s24, %s5801_s24  }
   0xb   : > { %s222_s29 = sshll.u32 %s4763_s28, 4  ;;  %p3476_p0 = scmp.ge.s32.totalorder %s4761_s27, 1  ;;  %s223_s29 = int_to_ptr.vmem [resolvable:$true] %s222_s29 }
   0xc   : > { %p5777_p1 = scmp.eq.s32.totalorder %s4838_s30, 0  ;;  %p209_p2 = scmp.lt.s32.totalorder %s4761_s27, 3 }
   0xd   : > { %s4764_s9 = smov [#allocation8]   ;;  %s4765_s12 = smov [#allocation11]  }
   0xe   : > { %p4843_p3 = pnand %p3476_p0, %p209_p2  ;;  %s243_s10 = sshll.u32 %s4764_s9, 4  ;;  %s4850_s10 = int_to_ptr.vmem [resolvable:$true] %s243_s10 }
   0xf   : > { %s267_s13 = sshll.u32 %s4765_s12, 4  ;;  %s5783_s1 = sld [smem:[#allocation20_spill]]  ;;  %s4858_s13 = int_to_ptr.vmem [resolvable:$true] %s267_s13 }
  0x10   : > { %s5781_s8 = scalar_select %p4843_p3, 1, 0 }
  0x11   : > { %p3935_p5 = pneg %p4843_p3 }
  0x13   : > { %p4854_p6 = pnand %p3935_p5, %p5777_p1 }
  0x15   : > { %s4485_s16 = scalar_lea.hbm %s5783_s1, 32  ;;  %p4868_p8 = pneg %p4854_p6 }
  0x16   : > { %p4486_p7 = scmp.ne.s32.totalorder %s5783_s1, %s4485_s16  ;;  %p4492_p11 = scmp.lt.u32.totalorder %s4485_s16, %s5783_s1 }
  0x18   : > { %p4488_p9 = pnand %p4868_p8, %p4486_p7 }
  0x1a   : > { %p4489_p10 = pneg %p4488_p9 }
  0x1c   : > { %p4494_p12 = pnand %p4492_p11, %p4489_p10 }
  0x1e   : > { %4497 = shalt.err (!%p4494_p12)
}
  0x1f   : > { %s4498_s22 = scalar_lea.vmem %s223_s29, 32  ;;  %p4506_p5 = scmp.lt.s32.totalorder %s223_s29, %s223_s29 }
  0x20   : > { %p4499_p13 = scmp.ne.s32.totalorder %s223_s29, %s4498_s22  ;;  %p4507_p4 = scmp.lt.s32.totalorder %s4498_s22, %s4498_s22 }
  0x22   : > { %p4501_p0 = pnand %p4499_p13, %p4868_p8  ;;  %p4508_p1 = por %p4507_p4, %p4506_p5 }
  0x24   : > { %p4502_p2 = pneg %p4501_p0 }
  0x26   : > { %p4509_p3 = pnand %p4508_p1, %p4502_p2 }
  0x28   : > { %4512 = shalt.err (!%p4509_p3)
}
  0x29   : > { %3938 = dma.hbm_to_vmem [thread:$0]  (!%p4854_p6), %s5783_s1, 32, %s223_s29, [#allocation6]  }
  0x2a   : > { %s4513_s14 = scalar_lea.hbm %s5772_s3, 16384 }
  0x2b   : > { %p4514_p7 = scmp.ne.s32.totalorder %s5772_s3, %s4513_s14  ;;  %p4520_p1 = scmp.lt.u32.totalorder %s4513_s14, %s5772_s3 }
  0x2d   : > { %p4516_p9 = pnand %p4514_p7, %p4868_p8 }
  0x2f   : > { %p4517_p4 = pneg %p4516_p9 }
  0x31   : > { %p4522_p3 = pnand %p4520_p1, %p4517_p4 }
  0x33   : > { %4525 = shalt.err (!%p4522_p3)
}
  0x34   : > { %s4526_s29 = scalar_lea.vmem %s4850_s10, 16384  ;;  %p4534_p13 = scmp.lt.s32.totalorder %s4850_s10, %s4850_s10 }
  0x35   : > { %p4527_p10 = scmp.ne.s32.totalorder %s4850_s10, %s4526_s29  ;;  %p4535_p0 = scmp.lt.s32.totalorder %s4526_s29, %s4526_s29 }
  0x37   : > { %p4529_p11 = pnand %p4527_p10, %p4868_p8  ;;  %p4536_p2 = por %p4535_p0, %p4534_p13 }
  0x39   : > { %p4530_p12 = pneg %p4529_p11 }
  0x3b   : > { %p4537_p5 = pnand %p4536_p2, %p4530_p12 }
  0x3d   : > { %4540 = shalt.err (!%p4537_p5)
}
  0x3e   : > { %s4766_s20 = smov 512   ;;  %s4767_s21 = smov 32  }
  0x3f   : > { %3944 = dma.hbm_to_vmem [thread:$0]  (!%p4854_p6), %s5772_s3, 16384, %s4850_s10, [#allocation9], %s4766_s20, %s4766_s20, %s4767_s21  }
  0x40   : > { %s4541_s12 = scalar_lea.hbm %s5774_s5, 16384 }
  0x41   : > { %p4542_p7 = scmp.ne.s32.totalorder %s5774_s5, %s4541_s12  ;;  %p4548_p1 = scmp.lt.u32.totalorder %s4541_s12, %s5774_s5 }
  0x43   : > { %p4544_p9 = pnand %p4542_p7, %p4868_p8 }
  0x45   : > { %p4545_p4 = pneg %p4544_p9 }
  0x47   : > { %p4550_p3 = pnand %p4548_p1, %p4545_p4 }
  0x49   : > { %4553 = shalt.err (!%p4550_p3)
}
  0x4a   : > { %s4554_s10 = scalar_lea.vmem %s4858_s13, 16384  ;;  %p4562_p13 = scmp.lt.s32.totalorder %s4858_s13, %s4858_s13 }
  0x4b   : > { %p4555_p10 = scmp.ne.s32.totalorder %s4858_s13, %s4554_s10  ;;  %p4563_p0 = scmp.lt.s32.totalorder %s4554_s10, %s4554_s10 }
  0x4d   : > { %p4557_p11 = pnand %p4555_p10, %p4868_p8  ;;  %p4564_p2 = por %p4563_p0, %p4562_p13 }
  0x4f   : > { %p4558_p12 = pneg %p4557_p11 }
  0x51   : > { %p4565_p5 = pnand %p4564_p2, %p4558_p12 }
  0x53   : > { %4568 = shalt.err (!%p4565_p5)
}
  0x54   : > { %s4768_s18 = smov 128   ;;  %s4769_s29 = smov 8  }
  0x55   : > { %3950 = dma.hbm_to_vmem [thread:$0]  (!%p4854_p6), %s5774_s5, 16384, %s4858_s13, [#allocation12], %s4768_s18, %s4768_s18, %s4769_s29  }
  0x56   : > { %s4770_s22 = smov [#allocation7]   ;;  %s4771_s28 = smov [#allocation10]  }
  0x57   : > { %s233_s23 = sshll.u32 %s4770_s22, 4  ;;  %s257_s9 = sshll.u32 %s4771_s28, 4  ;;  %s234_s23 = int_to_ptr.vmem [resolvable:$true] %s233_s23  ;;  %s258_s9 = int_to_ptr.vmem [resolvable:$true] %s257_s9 }
  0x58   : > { %s4569_s15 = scalar_lea.hbm %s5771_s2, 32 }
  0x59   : > { %p4570_p7 = scmp.ne.s32.totalorder %s5771_s2, %s4569_s15  ;;  %p4576_p1 = scmp.lt.u32.totalorder %s4569_s15, %s5771_s2 }
  0x5b   : > { %p4572_p9 = pnand %p4570_p7, %p4868_p8 }
  0x5d   : > { %p4573_p4 = pneg %p4572_p9 }
  0x5f   : > { %p4578_p3 = pnand %p4576_p1, %p4573_p4 }
  0x61   : > { %4581 = shalt.err (!%p4578_p3)
}
  0x62   : > { %s4582_s13 = scalar_lea.vmem %s234_s23, 32  ;;  %p4590_p13 = scmp.lt.s32.totalorder %s234_s23, %s234_s23 }
  0x63   : > { %p4583_p10 = scmp.ne.s32.totalorder %s234_s23, %s4582_s13  ;;  %p4591_p0 = scmp.lt.s32.totalorder %s4582_s13, %s4582_s13 }
  0x65   : > { %p4585_p11 = pnand %p4583_p10, %p4868_p8  ;;  %p4592_p2 = por %p4591_p0, %p4590_p13 }
  0x67   : > { %p4586_p12 = pneg %p4585_p11 }
  0x69   : > { %p4593_p5 = pnand %p4592_p2, %p4586_p12 }
  0x6b   : > { %4596 = shalt.err (!%p4593_p5)
}
  0x6c   : > { %3941 = dma.hbm_to_vmem [thread:$0]  (!%p4854_p6), %s5771_s2, 32, %s234_s23, [#allocation6]  }
  0x6d   : > { %s4597_s28 = scalar_lea.hbm %s5773_s4, 128 }
  0x6e   : > { %p4598_p7 = scmp.ne.s32.totalorder %s5773_s4, %s4597_s28  ;;  %p4604_p1 = scmp.lt.u32.totalorder %s4597_s28, %s5773_s4 }
  0x70   : > { %p4600_p9 = pnand %p4598_p7, %p4868_p8 }
  0x72   : > { %p4601_p4 = pneg %p4600_p9 }
  0x74   : > { %p4606_p3 = pnand %p4604_p1, %p4601_p4 }
  0x76   : > { %4609 = shalt.err (!%p4606_p3)
}
  0x77   : > { %s4610_s17 = scalar_lea.vmem %s258_s9, 128  ;;  %p4618_p13 = scmp.lt.s32.totalorder %s258_s9, %s258_s9 }
  0x78   : > { %p4611_p10 = scmp.ne.s32.totalorder %s258_s9, %s4610_s17  ;;  %p4619_p0 = scmp.lt.s32.totalorder %s4610_s17, %s4610_s17 }
  0x7a   : > { %p4613_p11 = pnand %p4611_p10, %p4868_p8  ;;  %p4620_p2 = por %p4619_p0, %p4618_p13 }
  0x7c   : > { %p4614_p12 = pneg %p4613_p11 }
  0x7e   : > { %p4621_p5 = pnand %p4620_p2, %p4614_p12 }
  0x80   : > { %4624 = shalt.err (!%p4621_p5)
}
  0x81   : > { %3947 = dma.hbm_to_vmem [thread:$0]  (!%p4854_p6), %s5773_s4, 128, %s258_s9, [#allocation9]  }
  0x82   : > { %s4772_s13 = smov [#allocation13]   ;;  %s4625_s22 = scalar_lea.hbm %s5775_s6, 32 }
  0x83   : > { %s281_s20 = sshll.u32 %s4772_s13, 4  ;;  %p4626_p7 = scmp.ne.s32.totalorder %s5775_s6, %s4625_s22  ;;  %s282_s20 = int_to_ptr.vmem [resolvable:$true] %s281_s20 }
  0x84   : > { %p4632_p1 = scmp.lt.u32.totalorder %s4625_s22, %s5775_s6 }
  0x85   : > { %p4628_p9 = pnand %p4626_p7, %p4868_p8 }
  0x87   : > { %p4629_p4 = pneg %p4628_p9 }
  0x89   : > { %p4634_p3 = pnand %p4632_p1, %p4629_p4 }
  0x8b   : > { %4637 = shalt.err (!%p4634_p3)
}
  0x8c   : > { %s4638_s9 = scalar_lea.vmem %s282_s20, 32  ;;  %p4646_p13 = scmp.lt.s32.totalorder %s282_s20, %s282_s20 }
  0x8d   : > { %p4639_p10 = scmp.ne.s32.totalorder %s282_s20, %s4638_s9  ;;  %p4647_p0 = scmp.lt.s32.totalorder %s4638_s9, %s4638_s9 }
  0x8f   : > { %p4641_p11 = pnand %p4639_p10, %p4868_p8  ;;  %p4648_p2 = por %p4647_p0, %p4646_p13 }
  0x91   : > { %p4642_p12 = pneg %p4641_p11 }
  0x93   : > { %p4649_p5 = pnand %p4648_p2, %p4642_p12 }
  0x95   : > { %4652 = shalt.err (!%p4649_p5)
}
  0x96   : > { %3953 = dma.hbm_to_vmem [thread:$0]  (!%p4854_p6), %s5775_s6, 32, %s282_s20, [#allocation12]  }
  0x97   : > { %s3475_s19 = sadd.s32 4294967294, %s4761_s27   ;;  %s4989_s11 = sadd.s32 1, %s4761_s27  }
  0x98   : > { %s30_s23 = ssub.s32 %s4761_s27, %s4989_s11  ;;  %s33_s10 = sadd.s32 1, %s4757_s26 }
  0x99   : > { %p31_p8 = scmp.eq.s32.totalorder %s30_s23, 0  ;;  %p40_p7 = scmp.ne.s32.totalorder %s4757_s26, %s4753_s25 }
  0x9a   : > { %p41_p9 = scmp.eq.s32.totalorder %s4761_s27, 0  ;;  %p46_p4 = scmp.ne.s32.totalorder %s4753_s25, %s4749_s24 }
  0x9b   : > { %s5000_s13 = scalar_select %p31_p8, %s4757_s26, %s33_s10  }
  0x9c   : > { %p5002_p1 = por %p41_p9, %p40_p7  ;;  %p5786_p3 = scmp.eq.s32.totalorder %s4838_s30, 0 }
  0x9d   : > { %p196_p10 = scmp.eq.s32.totalorder %s4838_s30, 1  ;;  %p202_p11 = scmp.eq.s32.totalorder %s3475_s19, 1 }
  0x9e   : > { %p5008_p6 = por %p5786_p3, %p46_p4  ;;  %p3968_p12 = scmp.lt.s32.totalorder %s4761_s27, 2 }
  0x9f   : > { %s292_s1 = sand.u32 1, %s4757_s26   ;;  %p5015_p13 = por %p196_p10, %p40_p7 }
  0xa0   : > { %p5019_p0 = por %p202_p11, %p46_p4  ;;  %s3484_s12 = sshll.u32 %s292_s1, 6 }
  0xa1   : > { %s5788_s22 = scalar_select %p5015_p13, 1, 0 }
  0xa2   : > { %s5789_s28 = scalar_select %p5019_p0, 1, 0 }
  0xa3   : > { %s3832_s14 = sshll.u32 %s4761_s27, 10  ;;  %s296_s17 = scalar_lea.vmem [#allocation2], %s3484_s12 }
  0xa4   : > { %s5027_s16 = scalar_lea.hbm %s5769_s0, %s3832_s14  ;;  %s304_s19 = sshll.u32 %s296_s17, 4  ;;  %s5029_s19 = int_to_ptr.vmem [resolvable:$true] %s304_s19 }
  0xa5   : > { %p5033_p2 = pnand %p3968_p12, %p5002_p1  ;;  %s5037_s10 = scalar_lea.sflag [#allocation3], %s292_s1 }
  0xa6   : > { %s4653_s15 = scalar_lea.hbm %s5027_s16, 1024  ;;  %s4658_s21 = scalar_lea.hbm %s5769_s0, 2048 }
  0xa7   : > { %p4654_p5 = scmp.ne.s32.totalorder %s5027_s16, %s4653_s15  ;;  %p4655_p8 = pneg %p5033_p2 }
  0xa8   : > { %p4659_p4 = scmp.lt.u32.totalorder %s5027_s16, %s5769_s0  ;;  %p4660_p1 = scmp.lt.u32.totalorder %s4658_s21, %s4653_s15 }
  0xa9   : > { %p4656_p7 = pnand %p4655_p8, %p4654_p5  ;;  %p4662_p10 = scmp.lt.u32.totalorder %s4653_s15, %s5027_s16 }
  0xaa   : > { %p4661_p3 = por %p4660_p1, %p4659_p4 }
  0xab   : > { %p4657_p9 = pneg %p4656_p7 }
  0xac   : > { %p4663_p11 = por %p4662_p10, %p4661_p3 }
  0xae   : > { %p4664_p12 = pnand %p4663_p11, %p4657_p9 }
  0xb0   : > { %4667 = shalt.err (!%p4664_p12)
}
  0xb1   : > { %s4668_s1 = scalar_lea.vmem %s5029_s19, 1024  ;;  %s4773_s12 = smov [#allocation2]  }
  0xb2   : > { %p4669_p5 = scmp.ne.s32.totalorder %s5029_s19, %s4668_s1  ;;  %s4673_s14 = sshll.u32 %s4773_s12, 4  ;;  %s4674_s14 = int_to_ptr.vmem [resolvable:$false] %s4673_s14 }
  0xb3   : > { %s4675_s9 = scalar_lea.vmem %s4674_s14, 2048  ;;  %p4676_p13 = scmp.lt.s32.totalorder %s5029_s19, %s4674_s14 }
  0xb4   : > { %p4671_p7 = pnand %p4669_p5, %p4655_p8  ;;  %p4677_p4 = scmp.lt.s32.totalorder %s4675_s9, %s4668_s1 }
  0xb6   : > { %p4672_p0 = pneg %p4671_p7  ;;  %p4678_p1 = por %p4677_p4, %p4676_p13 }
  0xb8   : > { %p4679_p3 = pnand %p4678_p1, %p4672_p0 }
  0xba   : > { %4682 = shalt.err (!%p4679_p3)
}
  0xbb   : > { %3957 = dma.hbm_to_vmem [thread:$0]  (!%p5033_p2), %s5027_s16, 1024, %s5029_s19, %s5037_s10, %s4768_s18, %s4768_s18, %s4769_s29  }
  0xbc   : > { %p5791_p8 = scmp.ne.s32.totalorder %s5781_s8, 0 }
  0xbd   : > { %s5071_s15 = sand.u32 (!%p5791_p8), 1, %s4753_s25  }
  0xbe   : > { %316 = sbr.rel (%p5791_p8) target bundleno = 1088 (0x440), region = 48  ;;  %s3489_s21 = sshll.u32 (!%p5791_p8), %s5071_s15, 6 }
  0xbf   : > { %s319_s17 = scalar_lea.sflag (!%p5791_p8), [#allocation3], %s5071_s15  ;;  %s5077_s23 = scalar_lea.vmem (!%p5791_p8), [#allocation2], %s3489_s21 }
  0xc5   : > { %4728 = dma.done.wait (%p5008_p6), %s319_s17, 1024  }
  0xc6   : > { %4730 = vsyncadd (%p5008_p6), %s319_s17, 4294966272  ;;  %p5792_p13 = scmp.eq.s32.totalorder %s4838_s30, 0 }
  0xc8   : > { %4732 = dma.done.wait (%p5792_p13), [#allocation6], 64   ;;  %p5793_p0 = pmov %p5792_p13 }
  0xca   : > { %4734 = vsyncadd (%p5793_p0), [#allocation6], 4294967232  ;;  %p5794_p2 = pmov %p5793_p0 }
  0xcb   : > { %p5795_p9 = pmov %p5793_p0 }
  0xcc   : > { %4736 = dma.done.wait (%p5794_p2), [#allocation9], 16512  }
  0xcd   : > { %4738 = vsyncadd (%p5795_p9), [#allocation9], 4294950784  ;;  %p5796_p10 = pmov %p5793_p0 }
  0xce   : > { %p5797_p11 = pmov %p5793_p0 }
  0xcf   : > { %4740 = dma.done.wait (%p5796_p10), [#allocation12], 16416  }
  0xd0   : > { %4742 = vsyncadd (%p5797_p11), [#allocation12], 4294950880  ;;  %v379_v0 = vld [vmem:[%s5077_s23] sm:$0xff]  ;;  %v380_v1 = vld [vmem:[%s5077_s23 + $0x8] sm:$0xff]  ;;  %s5708_s8 = scalar_lea.vmem [#allocation14], %s3489_s21  ;;  %s3842_s29 = sshll.u32 %s4838_s30, 10 }
  0xd1   : > { %v5097_v2 = vunpack.c.l.bf16 %v379_v0  ;;  %v5099_v3 = vunpack.c.h.bf16 %v379_v0  ;;  %v5101_v4 = vunpack.c.l.bf16 %v380_v1  ;;  %v5103_v5 = vunpack.c.h.bf16 %v380_v1  ;;  %v381_v6 = vld [vmem:[%s5077_s23 + $0x10] sm:$0xff]  ;;  %v382_v12 = vld [vmem:[%s5077_s23 + $0x18] sm:$0xff]  ;;  %v620_v20 = vld [vmem:[#allocation8] sm:$0xff]  ;;  %s3345_s18 = sshll.u32 %s5708_s8, 4  ;;  %s5723_s19 = scalar_lea.hbm %s5776_s7, %s3842_s29  ;;  %s5718_s18 = int_to_ptr.vmem [resolvable:$true] %s3345_s18 }
  0xd2   : > { %v5119_v15 = vunpack.c.l.bf16 %v381_v6  ;;  %v5121_v16 = vunpack.c.h.bf16 %v381_v6  ;;  %v5123_v18 = vunpack.c.l.bf16 %v382_v12  ;;  %v5125_v19 = vunpack.c.h.bf16 %v382_v12  ;;  %v624_v21 = vld [vmem:[#allocation8 + $0x20] sm:$0xff]  ;;  %v385_v50 = vld [vmem:[%s5077_s23 + $0x30] sm:$0xff]  ;;  %v386_v52 = vld [vmem:[%s5077_s23 + $0x38] sm:$0xff]  ;;  %s3331_s10 = scalar_lea.sflag [#allocation4], %s5071_s15  ;;  %s4683_s1 = scalar_lea.vmem %s5718_s18, 1024 }
  0xd3   : > { %v403_v7 = vadd.f32 %v5099_v3, %v5097_v2  ;;  %v436_v8 = vmul.f32 %v5097_v2, %v5097_v2  ;;  %v437_v9 = vmul.f32 %v5099_v3, %v5099_v3  ;;  %v438_v10 = vmul.f32 %v5101_v4, %v5101_v4  ;;  %v383_v22 = vld [vmem:[%s5077_s23 + $0x20] sm:$0xff]  ;;  %v384_v28 = vld [vmem:[%s5077_s23 + $0x28] sm:$0xff]  ;;  %p4684_p6 = scmp.ne.s32.totalorder %s5718_s18, %s4683_s1  ;;  %p5798_p12 = scmp.ne.s32.totalorder %s5788_s22, 0 }
  0xd4   : > { %v439_v11 = vmul.f32 %v5103_v5, %v5103_v5  ;;  %v406_v14 = vadd.f32 %v5103_v5, %v5101_v4  ;;  %v628_v23 = vld [vmem:[#allocation8 + $0x40] sm:$0xff]  ;;  %v409_v25 = vadd.f32 %v5121_v16, %v5119_v15  ;;  %v440_v26 = vmul.f32 %v5119_v15, %v5119_v15  ;;  %s4774_s30 = smov [#allocation14]  }
  0xd5   : > { %404 = vadd.xlane.f32.xlu0 %v403_v7  ;;  %v452_v13 = vadd.f32 %v437_v9, %v436_v8  ;;  %v632_v24 = vld [vmem:[#allocation8 + $0x60] sm:$0xff]  ;;  %v441_v27 = vmul.f32 %v5121_v16, %v5121_v16  ;;  %v412_v31 = vadd.f32 %v5125_v19, %v5123_v18  ;;  %v442_v32 = vmul.f32 %v5123_v18, %v5123_v18  ;;  %p4685_p5 = pnand %p4684_p6, %p5798_p12  ;;  %s4687_s12 = sshll.u32 %s4774_s30, 4  ;;  %s4688_s12 = int_to_ptr.vmem [resolvable:$false] %s4687_s12 }
  0xd6   : > { %v455_v17 = vadd.f32 %v439_v11, %v438_v10  ;;  %v636_v29 = vld [vmem:[#allocation8 + $0x80] sm:$0xff]  ;;  %v443_v33 = vmul.f32 %v5125_v19, %v5125_v19  ;;  %v3498_v34 = vcombine.high %v620_v20, %v624_v21  ;;  %v3497_v35 = vcombine.low %v620_v20, %v624_v21  ;;  %s4689_s14 = scalar_lea.vmem %s4688_s12, 2048  ;;  %p4690_p4 = scmp.lt.s32.totalorder %s5718_s18, %s4688_s12 }
  0xd7   : > { %453 = vadd.xlane.f32.xlu1 %v452_v13  ;;  %v640_v30 = vld [vmem:[#allocation8 + $0xa0] sm:$0xff]  ;;  %v458_v36 = vadd.f32 %v441_v27, %v440_v26  ;;  %v5141_v37 = vunpack.c.l.bf16 %v383_v22  ;;  %v5143_v38 = vunpack.c.h.bf16 %v383_v22  ;;  %v3506_v39 = vcombine.high %v628_v23, %v632_v24  ;;  %p4686_p7 = pneg %p4685_p5  ;;  %p4691_p1 = scmp.lt.s32.totalorder %s4689_s14, %s4683_s1 }
  0xd8   : > { %1430 = vmatprep.subr.bf16.mxu1 %v3498_v34  ;;  %v5145_v40 = vunpack.c.l.bf16 %v384_v28  ;;  %v5147_v41 = vunpack.c.h.bf16 %v384_v28  ;;  %v3505_v42 = vcombine.low %v628_v23, %v632_v24  ;;  %v644_v43 = vld [vmem:[#allocation8 + $0xc0] sm:$0xff]  ;;  %v461_v45 = vadd.f32 %v443_v33, %v442_v32 }
  0xd9   : > { %407 = vadd.xlane.f32.xlu0 %v406_v14  ;;  %1431 = vmatpush1.bf16.msra.mxu1 %v3497_v35  ;;  %v648_v44 = vld [vmem:[#allocation8 + $0xe0] sm:$0xff]  ;;  %v3514_v46 = vcombine.high %v636_v29, %v640_v30  ;;  %v415_v47 = vadd.f32 %v5143_v38, %v5141_v37  ;;  %v444_v48 = vmul.f32 %v5141_v37, %v5141_v37  ;;  %v5163_v60 = vunpack.c.l.bf16 %v385_v50  ;;  %p4692_p3 = por %p4691_p1, %p4690_p4 }
  0xda   : > { %1432 = vmatprep.subr.bf16.mxu1 %v3506_v39  ;;  %v445_v49 = vmul.f32 %v5143_v38, %v5143_v38  ;;  %v418_v51 = vadd.f32 %v5147_v41, %v5145_v40  ;;  %v3513_v53 = vcombine.low %v636_v29, %v640_v30  ;;  %v652_v54 = vld [vmem:[#allocation8 + $0x100] sm:$0xff]  ;;  %v446_v56 = vmul.f32 %v5145_v40, %v5145_v40 }
  0xdb   : > { %456 = vadd.xlane.f32.xlu1 %v455_v17  ;;  %v656_v55 = vld [vmem:[#allocation8 + $0x120] sm:$0xff]  ;;  %v447_v57 = vmul.f32 %v5147_v41, %v5147_v41  ;;  %v3522_v58 = vcombine.high %v644_v43, %v648_v44  ;;  %v5165_v61 = vunpack.c.h.bf16 %v385_v50  ;;  %v3521_v62 = vcombine.low %v644_v43, %v648_v44  ;;  %p4693_p8 = pnand %p4692_p3, %p4686_p7 }
  0xdc   : > { %v464_v59 = vadd.f32 %v445_v49, %v444_v48  ;;  %v660_v63 = vld [vmem:[#allocation8 + $0x140] sm:$0xff]  ;;  %v5167_v6 = vunpack.c.l.bf16 %v386_v52  ;;  %v5169_v7 = vunpack.c.h.bf16 %v386_v52  ;;  %v3530_v8 = vcombine.high %v652_v54, %v656_v55 }
  0xdd   : > { %410 = vadd.xlane.f32.xlu0 %v409_v25  ;;  %1433 = vmatpush1.bf16.msra.mxu1 %v3505_v42  ;;  %v664_v0 = vld [vmem:[#allocation8 + $0x160] sm:$0xff]  ;;  %v467_v1 = vadd.f32 %v447_v57, %v446_v56  ;;  %v421_v9 = vadd.f32 %v5165_v61, %v5163_v60  ;;  %v448_v10 = vmul.f32 %v5163_v60, %v5163_v60 }
  0xde   : > { %1434 = vmatprep.subr.bf16.mxu1 %v3514_v46  ;;  %v449_v11 = vmul.f32 %v5165_v61, %v5165_v61  ;;  %v450_v12 = vmul.f32 %v5167_v6, %v5167_v6  ;;  %v3529_v13 = vcombine.low %v652_v54, %v656_v55  ;;  %v668_v14 = vld [vmem:[#allocation8 + $0x180] sm:$0xff]  ;;  %v424_v20 = vadd.f32 %v5169_v7, %v5167_v6  ;;  %v5185_v54 = vld [vmem:[#allocation8 + $0x28] sm:$0xff] }
  0xdf   : > { %413 = vadd.xlane.f32.xlu1 %v412_v31  ;;  %v672_v17 = vld [vmem:[#allocation8 + $0x1a0] sm:$0xff]  ;;  %v451_v21 = vmul.f32 %v5169_v7, %v5169_v7  ;;  %v3538_v22 = vcombine.high %v660_v63, %v664_v0  ;;  %v3537_v24 = vcombine.low %v660_v63, %v664_v0 }
  0xe0   : > { %v470_v23 = vadd.f32 %v449_v11, %v448_v10  ;;  %v676_v25 = vld [vmem:[#allocation8 + $0x1c0] sm:$0xff]  ;;  %v3546_v28 = vcombine.high %v668_v14, %v672_v17  ;;  %v3545_v29 = vcombine.low %v668_v14, %v672_v17 }
  0xe1   : > { %459 = vadd.xlane.f32.xlu0 %v458_v36  ;;  %1435 = vmatpush1.bf16.msra.mxu1 %v3513_v53  ;;  %v680_v26 = vld [vmem:[#allocation8 + $0x1e0] sm:$0xff]  ;;  %v473_v27 = vadd.f32 %v451_v21, %v450_v12  ;;  %v5183_v53 = vld [vmem:[#allocation8 + $0x8] sm:$0xff] }
  0xe2   : > { %1436 = vmatprep.subr.bf16.mxu1 %v3522_v58  ;;  %v684_v30 = vld [vmem:[#allocation8 + $0x200] sm:$0xff]  ;;  %v3554_v32 = vcombine.high %v676_v25, %v680_v26  ;;  %v3553_v33 = vcombine.low %v676_v25, %v680_v26  ;;  %v3499_v55 = vcombine.low %v5183_v53, %v5185_v54  ;;  %v3500_v17 = vcombine.high %v5183_v53, %v5185_v54 }
  0xe3   : > { %462 = vadd.xlane.f32.xlu1 %v461_v45  ;;  %v688_v31 = vld [vmem:[#allocation8 + $0x220] sm:$0xff] }
  0xe4   : > { %v692_v34 = vld [vmem:[#allocation8 + $0x240] sm:$0xff]  ;;  %v3562_v36 = vcombine.high %v684_v30, %v688_v31  ;;  %v3561_v39 = vcombine.low %v684_v30, %v688_v31 }
  0xe5   : > { %416 = vadd.xlane.f32.xlu0 %v415_v47  ;;  %1437 = vmatpush1.bf16.msra.mxu1 %v3521_v62  ;;  %v696_v35 = vld [vmem:[#allocation8 + $0x260] sm:$0xff] }
  0xe6   : > { %1438 = vmatprep.subr.bf16.mxu1 %v3530_v8  ;;  %v700_v42 = vld [vmem:[#allocation8 + $0x280] sm:$0xff]  ;;  %v3570_v43 = vcombine.high %v692_v34, %v696_v35  ;;  %v3569_v45 = vcombine.low %v692_v34, %v696_v35 }
  0xe7   : > { %419 = vadd.xlane.f32.xlu1 %v418_v51  ;;  %v704_v44 = vld [vmem:[#allocation8 + $0x2a0] sm:$0xff] }
  0xe8   : > { %v708_v46 = vld [vmem:[#allocation8 + $0x2c0] sm:$0xff]  ;;  %v3578_v48 = vcombine.high %v700_v42, %v704_v44  ;;  %v3577_v49 = vcombine.low %v700_v42, %v704_v44 }
  0xe9   : > { %465 = vadd.xlane.f32.xlu0 %v464_v59  ;;  %1439 = vmatpush1.bf16.msra.mxu1 %v3529_v13  ;;  %v712_v47 = vld [vmem:[#allocation8 + $0x2e0] sm:$0xff] }
  0xea   : > { %1440 = vmatprep.subr.bf16.mxu1 %v3538_v22  ;;  %v716_v50 = vld [vmem:[#allocation8 + $0x300] sm:$0xff]  ;;  %v3586_v52 = vcombine.high %v708_v46, %v712_v47  ;;  %v3585_v56 = vcombine.low %v708_v46, %v712_v47 }
  0xeb   : > { %468 = vadd.xlane.f32.xlu1 %v467_v1  ;;  %v720_v51 = vld [vmem:[#allocation8 + $0x320] sm:$0xff] }
  0xec   : > { %v3594_v57 = vcombine.high %v716_v50, %v720_v51  ;;  %v724_v58 = vld [vmem:[#allocation8 + $0x340] sm:$0xff]  ;;  %v3593_v62 = vcombine.low %v716_v50, %v720_v51 }
  0xed   : > { %422 = vadd.xlane.f32.xlu0 %v421_v9  ;;  %1441 = vmatpush1.bf16.msra.mxu1 %v3537_v24  ;;  %v728_v59 = vld [vmem:[#allocation8 + $0x360] sm:$0xff] }
  0xee   : > { %1442 = vmatprep.subr.bf16.mxu1 %v3546_v28  ;;  %v3602_v63 = vcombine.high %v724_v58, %v728_v59  ;;  %v732_v0 = vld [vmem:[#allocation8 + $0x380] sm:$0xff]  ;;  %v3601_v8 = vcombine.low %v724_v58, %v728_v59 }
  0xef   : > { %425 = vadd.xlane.f32.xlu1 %v424_v20  ;;  %v736_v1 = vld [vmem:[#allocation8 + $0x3a0] sm:$0xff] }
  0xf0   : > { %v3610_v9 = vcombine.high %v732_v0, %v736_v1  ;;  %v740_v10 = vld [vmem:[#allocation8 + $0x3c0] sm:$0xff]  ;;  %v3609_v12 = vcombine.low %v732_v0, %v736_v1 }
  0xf1   : > { %471 = vadd.xlane.f32.xlu0 %v470_v23  ;;  %1443 = vmatpush1.bf16.msra.mxu1 %v3545_v29  ;;  %v744_v11 = vld [vmem:[#allocation8 + $0x3e0] sm:$0xff] }
  0xf2   : > { %1444 = vmatprep.subr.bf16.mxu1 %v3554_v32  ;;  %v3618_v13 = vcombine.high %v740_v10, %v744_v11  ;;  %v3617_v14 = vcombine.low %v740_v10, %v744_v11  ;;  %v556_v10 = vld [vmem:[#allocation5] sm:$0x3] }
  0xf3   : > { %474 = vadd.xlane.f32.xlu1 %v473_v27 }
  0xf5   : > { %1445 = vmatpush1.bf16.msra.mxu1 %v3553_v33 }
  0xf6   : > { %1446 = vmatprep.subr.bf16.mxu1 %v3562_v36 }
  0xf9   : > { %1447 = vmatpush1.bf16.msra.mxu1 %v3561_v39  ;;  %v558_v39 = vlaneseq }
  0xfa   : > { %1448 = vmatprep.subr.bf16.mxu1 %v3570_v43 }
  0xfb   : > { %v5203_v50 = vshrl.u32 %v558_v39, 7 }
  0xfd   : > { %1449 = vmatpush1.bf16.msra.mxu1 %v3569_v45  ;;  %v5211_v0 = vsub.s32 0, %v5203_v50 }
  0xfe   : > { %1450 = vmatprep.subr.bf16.mxu1 %v3578_v48 }
 0x101   : > { %1451 = vmatpush1.bf16.msra.mxu1 %v3577_v49 }
 0x102   : > { %1452 = vmatprep.subr.bf16.mxu1 %v3586_v52 }
 0x105   : > { %1453 = vmatpush1.bf16.msra.mxu1 %v3585_v56 }
 0x106   : > { %1454 = vmatprep.subr.bf16.mxu1 %v3594_v57 }
 0x109   : > { %1455 = vmatpush1.bf16.msra.mxu1 %v3593_v62 }
 0x10a   : > { %1456 = vmatprep.subr.bf16.mxu1 %v3602_v63  ;;  %v5208_v63 = vsub.s32 1, %v5203_v50 }
 0x10d   : > { %1457 = vmatpush1.bf16.msra.mxu1 %v3601_v8 }
 0x10e   : > { %1458 = vmatprep.subr.bf16.mxu1 %v3610_v9 }
 0x111   : > { %1459 = vmatpush1.bf16.msra.mxu1 %v3609_v12 }
 0x112   : > { %1460 = vmatprep.subr.bf16.mxu1 %v3618_v13 }
 0x115   : > { %1461 = vmatpush1.bf16.msra.mxu1 %v3617_v14 }
 0x116   : > { %1503 = vmatprep.subr.bf16.mxu1 %v3500_v17 }
 0x162   : > { %v405_v20 = vpop.xlane.xlu0 %404 }
 0x163   : > { %v428_v21 = vmul.f32 0.00390625, %v405_v20 }
 0x164   : > { %v454_v22 = vpop.xlane.xlu1 %453 }
 0x165   : > { %v476_v23 = vmul.f32 0.00390625, %v454_v22  ;;  %v484_v24 = vmul.f32 %v428_v21, %v428_v21  ;;  %v508_v14 = vsub.f32 %v5097_v2, %v428_v21  ;;  %v509_v17 = vsub.f32 %v5099_v3, %v428_v21  ;;  %v584_v22 = vld [vmem:[#allocation7] sm:$0x3] }
 0x166   : > { %v408_v25 = vpop.xlane.xlu0 %407  ;;  %v5228_v21 = vrot.slane %v584_v22, %v5208_v63 }
 0x167   : > { %v492_v26 = vsub.f32 %v476_v23, %v484_v24  ;;  %v5191_v27 = vmul.f32 0.00390625, %v408_v25 }
 0x168   : > { %v457_v28 = vpop.xlane.xlu1 %456 }
 0x169   : > { %v500_v29 = vmax.f32 %v492_v26, 0.0  ;;  %v477_v30 = vmul.f32 0.00390625, %v457_v28  ;;  %v485_v31 = vmul.f32 %v5191_v27, %v5191_v27  ;;  %v5222_v26 = vrot.slane %v556_v10, %v5208_v63 }
 0x16a   : > { %v411_v32 = vpop.xlane.xlu0 %410  ;;  %v5225_v28 = vrot.slane %v556_v10, %v5211_v0 }
 0x16b   : > { %v524_v33 = vadd.f32 1e-05, %v500_v29  ;;  %v5195_v34 = vmul.f32 0.00390625, %v411_v32  ;;  %v493_v35 = vsub.f32 %v477_v30, %v485_v31  ;;  %v510_v32 = vsub.f32 %v5101_v4, %v5191_v27 }
 0x16c   : > { %v414_v36 = vpop.xlane.xlu1 %413 }
 0x16d   : > { %4212 = vrsqrt.f32 %v524_v33  ;;  %v5197_v42 = vmul.f32 0.00390625, %v414_v36  ;;  %v501_v43 = vmax.f32 %v493_v35, 0.0  ;;  %v486_v44 = vmul.f32 %v5195_v34, %v5195_v34 }
 0x16e   : > { %v460_v45 = vpop.xlane.xlu0 %459  ;;  %v5235_v36 = vrot.slane %v584_v22, %v5211_v0 }
 0x16f   : > { %v487_v46 = vmul.f32 %v5197_v42, %v5197_v42  ;;  %v478_v47 = vmul.f32 0.00390625, %v460_v45  ;;  %v525_v48 = vadd.f32 1e-05, %v501_v43  ;;  %v511_v43 = vsub.f32 %v5103_v5, %v5191_v27 }
 0x170   : > { %v463_v49 = vpop.xlane.xlu1 %462  ;;  %v513_v45 = vsub.f32 %v5121_v16, %v5195_v34  ;;  %v515_v16 = vsub.f32 %v5125_v19, %v5197_v42 }
 0x171   : > { %v479_v51 = vmul.f32 0.00390625, %v463_v49  ;;  %v494_v52 = vsub.f32 %v478_v47, %v486_v44  ;;  %4214 = vrsqrt.f32 %v525_v48  ;;  %v512_v44 = vsub.f32 %v5119_v15, %v5195_v34 }
 0x172   : > { %v417_v56 = vpop.xlane.xlu0 %416  ;;  %v514_v15 = vsub.f32 %v5123_v18, %v5197_v42 }
 0x173   : > { %v495_v57 = vsub.f32 %v479_v51, %v487_v46  ;;  %v502_v58 = vmax.f32 %v494_v52, 0.0  ;;  %v5205_v59 = vmul.f32 0.00390625, %v417_v56 }
 0x174   : > { %v420_v62 = vpop.xlane.xlu1 %419 }
 0x175   : > { %v503_v1 = vmax.f32 %v495_v57, 0.0  ;;  %v526_v8 = vadd.f32 1e-05, %v502_v58  ;;  %v5213_v9 = vmul.f32 0.00390625, %v420_v62  ;;  %v488_v11 = vmul.f32 %v5205_v59, %v5205_v59 }
 0x176   : > { %v466_v12 = vpop.xlane.xlu0 %465 }
 0x177   : > { %v4213_v13 = vpop.eup %4212  ;;  %v527_v20 = vadd.f32 1e-05, %v503_v1  ;;  %4216 = vrsqrt.f32 %v526_v8  ;;  %v489_v23 = vmul.f32 %v5213_v9, %v5213_v9  ;;  %v480_v25 = vmul.f32 0.00390625, %v466_v12  ;;  %v633_v12 = vld [vmem:[#allocation8 + $0x68] sm:$0xff] }
 0x178   : > { %v469_v24 = vpop.xlane.xlu1 %468  ;;  %v541_v30 = vmul.f32 %v4213_v13, %v509_v17  ;;  %v540_v2 = vmul.f32 %v4213_v13, %v508_v14 }
 0x179   : > { %4218 = vrsqrt.f32 %v527_v20  ;;  %v481_v29 = vmul.f32 0.00390625, %v469_v24  ;;  %v496_v31 = vsub.f32 %v480_v25, %v488_v11  ;;  %v629_v11 = vld [vmem:[#allocation8 + $0x48] sm:$0xff] }
 0x17a   : > { %v423_v3 = vpop.xlane.xlu0 %422  ;;  %v569_v49 = vmul.f32 %v5222_v26, %v541_v30  ;;  %v568_v51 = vmul.f32 %v5225_v28, %v540_v2  ;;  %v3507_v25 = vcombine.low %v629_v11, %v633_v12 }
 0x17b   : > { %v497_v33 = vsub.f32 %v481_v29, %v489_v23  ;;  %v5232_v35 = vmul.f32 0.00390625, %v423_v3  ;;  %v4215_v39 = vpop.eup %4214  ;;  %v504_v46 = vmax.f32 %v496_v31, 0.0  ;;  %v3508_v29 = vcombine.high %v629_v11, %v633_v12 }
 0x17c   : > { %v426_v47 = vpop.xlane.xlu1 %425  ;;  %v543_v27 = vmul.f32 %v4215_v39, %v511_v43  ;;  %v542_v57 = vmul.f32 %v4215_v39, %v510_v32  ;;  %v597_v18 = vadd.f32 %v5228_v21, %v569_v49  ;;  %v596_v19 = vadd.f32 %v5235_v36, %v568_v51  ;;  %v637_v49 = vld [vmem:[#allocation8 + $0x88] sm:$0xff] }
 0x17d   : > { %v505_v48 = vmax.f32 %v497_v33, 0.0  ;;  %v5243_v4 = vmul.f32 0.00390625, %v426_v47  ;;  %v528_v52 = vadd.f32 1e-05, %v504_v46  ;;  %v490_v56 = vmul.f32 %v5232_v35, %v5232_v35  ;;  %v641_v51 = vld [vmem:[#allocation8 + $0xa8] sm:$0xff] }
 0x17e   : > { %v472_v5 = vpop.xlane.xlu0 %471  ;;  %v571_v8 = vmul.f32 %v5222_v26, %v543_v27  ;;  %v570_v10 = vmul.f32 %v5225_v28, %v542_v57  ;;  %v517_v47 = vsub.f32 %v5143_v38, %v5205_v59  ;;  %v519_v38 = vsub.f32 %v5147_v41, %v5213_v9 }
 0x17f   : > { %v529_v34 = vadd.f32 1e-05, %v505_v48  ;;  %v491_v58 = vmul.f32 %v5243_v4, %v5243_v4  ;;  %4220 = vrsqrt.f32 %v528_v52  ;;  %v482_v1 = vmul.f32 0.00390625, %v472_v5 }
 0x180   : > { %v475_v62 = vpop.xlane.xlu1 %474  ;;  %v599_v17 = vadd.f32 %v5228_v21, %v571_v8  ;;  %v598_v20 = vadd.f32 %v5235_v36, %v570_v10  ;;  %v3516_v57 = vcombine.high %v637_v49, %v641_v51  ;;  %v3515_v53 = vcombine.low %v637_v49, %v641_v51  ;;  %v673_v49 = vld [vmem:[#allocation8 + $0x1a8] sm:$0xff] }
 0x181   : > { %v4217_v13 = vpop.eup %4216  ;;  %4222 = vrsqrt.f32 %v529_v34  ;;  %v483_v14 = vmul.f32 0.00390625, %v475_v62  ;;  %v498_v42 = vsub.f32 %v482_v1, %v490_v56 }
 0x182   : > { %v545_v22 = vmul.f32 %v4217_v13, %v513_v45  ;;  %v544_v30 = vmul.f32 %v4217_v13, %v512_v44  ;;  %v5261_v31 = vpack.c.bf16 %v599_v17, %v597_v18  ;;  %v5263_v3 = vpack.c.bf16 %v598_v20, %v596_v19  ;;  %v657_v18 = vld [vmem:[#allocation8 + $0x128] sm:$0xff] }
 0x183   : > { %v4219_v23 = vpop.eup %4218  ;;  %v499_v24 = vsub.f32 %v483_v14, %v491_v58  ;;  %v506_v2 = vmax.f32 %v498_v42, 0.0  ;;  %v516_v45 = vsub.f32 %v5141_v37, %v5205_v59  ;;  %v518_v37 = vsub.f32 %v5145_v40, %v5213_v9  ;;  %v645_v58 = vld [vmem:[#allocation8 + $0xc8] sm:$0xff] }
 0x184   : > { %v547_v32 = vmul.f32 %v4219_v23, %v515_v16  ;;  %v573_v39 = vmul.f32 %v5222_v26, %v545_v22  ;;  %v546_v43 = vmul.f32 %v4219_v23, %v514_v15  ;;  %v572_v46 = vmul.f32 %v5225_v28, %v544_v30  ;;  %1462 = vmatprep.mubr.bf16.mxu1 %v5261_v31  ;;  %v649_v40 = vld [vmem:[#allocation8 + $0xe8] sm:$0xff] }
 0x185   : > { %v507_v33 = vmax.f32 %v499_v24, 0.0  ;;  %v530_v48 = vadd.f32 1e-05, %v506_v2  ;;  %1463 = vmatmul.mubr.bf16.vlgmr.msra.gmra.mrb[0].mxu1 %v5263_v3  ;;  %v3524_v8 = vcombine.high %v645_v58, %v649_v40  ;;  %v3523_v12 = vcombine.low %v645_v58, %v649_v40  ;;  %v653_v14 = vld [vmem:[#allocation8 + $0x108] sm:$0xff] }
 0x186   : > { %v575_v44 = vmul.f32 %v5222_v26, %v547_v32  ;;  %v601_v56 = vadd.f32 %v5228_v21, %v573_v39  ;;  %v574_v5 = vmul.f32 %v5225_v28, %v546_v43  ;;  %v600_v27 = vadd.f32 %v5235_v36, %v572_v46  ;;  %1504 = vmatpush1.bf16.msra.mxu1 %v3499_v55  ;;  %v661_v30 = vld [vmem:[#allocation8 + $0x148] sm:$0xff] }
 0x187   : > { %v531_v52 = vadd.f32 1e-05, %v507_v33  ;;  %4224 = vrsqrt.f32 %v530_v48  ;;  %1505 = vmatprep.subr.bf16.mxu1 %v3508_v29  ;;  %v520_v42 = vsub.f32 %v5163_v60, %v5232_v35  ;;  %v521_v17 = vsub.f32 %v5165_v61, %v5232_v35  ;;  %v665_v2 = vld [vmem:[#allocation8 + $0x168] sm:$0xff] }
 0x188   : > { %v603_v59 = vadd.f32 %v5228_v21, %v575_v44  ;;  %v602_v15 = vadd.f32 %v5235_v36, %v574_v5  ;;  %v522_v23 = vsub.f32 %v5167_v6, %v5243_v4  ;;  %v523_v24 = vsub.f32 %v5169_v7, %v5243_v4  ;;  %v669_v44 = vld [vmem:[#allocation8 + $0x188] sm:$0xff] }
 0x189   : > { %4226 = vrsqrt.f32 %v531_v52  ;;  %v4221_v16 = vpop.eup %4220  ;;  %v3532_v29 = vcombine.high %v653_v14, %v657_v18  ;;  %v3531_v7 = vcombine.low %v653_v14, %v657_v18  ;;  %v3540_v46 = vcombine.high %v661_v30, %v665_v2  ;;  %v685_v58 = vld [vmem:[#allocation8 + $0x208] sm:$0xff] }
 0x18a   : > { %v5286_v34 = vpack.c.bf16 %v603_v59, %v601_v56  ;;  %v5288_v1 = vpack.c.bf16 %v602_v15, %v600_v27  ;;  %v549_v41 = vmul.f32 %v4221_v16, %v517_v47  ;;  %v548_v9 = vmul.f32 %v4221_v16, %v516_v45  ;;  %1506 = vmatpush1.bf16.msra.mxu1 %v3507_v25  ;;  %v689_v40 = vld [vmem:[#allocation8 + $0x228] sm:$0xff] }
 0x18b   : > { %v4223_v62 = vpop.eup %4222  ;;  %1507 = vmatprep.subr.bf16.mxu1 %v3516_v57  ;;  %v3539_v5 = vcombine.low %v661_v30, %v665_v2  ;;  %v681_v57 = vld [vmem:[#allocation8 + $0x1e8] sm:$0xff] }
 0x18c   : > { %1472 = vmatprep.mubr.bf16.mxu1 %v5286_v34  ;;  %v551_v54 = vmul.f32 %v4223_v62, %v519_v38  ;;  %v550_v55 = vmul.f32 %v4223_v62, %v518_v37  ;;  %v577_v10 = vmul.f32 %v5222_v26, %v549_v41  ;;  %v576_v11 = vmul.f32 %v5225_v28, %v548_v9  ;;  %v693_v62 = vld [vmem:[#allocation8 + $0x248] sm:$0xff] }
 0x18d   : > { %1473 = vmatmul.mubr.bf16.gmra.mrb[4].mxu1 %v5288_v1  ;;  %v3548_v38 = vcombine.high %v669_v44, %v673_v49  ;;  %v697_v41 = vld [vmem:[#allocation8 + $0x268] sm:$0xff]  ;;  %v3563_v9 = vcombine.low %v685_v58, %v689_v40 }
 0x18e   : > { %v579_v13 = vmul.f32 %v5222_v26, %v551_v54  ;;  %v578_v19 = vmul.f32 %v5225_v28, %v550_v55  ;;  %v605_v20 = vadd.f32 %v5228_v21, %v577_v10  ;;  %v604_v22 = vadd.f32 %v5235_v36, %v576_v11  ;;  %1508 = vmatpush1.bf16.msra.mxu1 %v3515_v53  ;;  %v701_v54 = vld [vmem:[#allocation8 + $0x288] sm:$0xff] }
 0x18f   : > { %1509 = vmatprep.subr.bf16.mxu1 %v3524_v8  ;;  %v3572_v53 = vcombine.high %v693_v62, %v697_v41  ;;  %v705_v55 = vld [vmem:[#allocation8 + $0x2a8] sm:$0xff]  ;;  %v3571_v8 = vcombine.low %v693_v62, %v697_v41  ;;  %v654_v62 = vld [vmem:[#allocation8 + $0x110] sm:$0xff] }
 0x190   : > { %v607_v25 = vadd.f32 %v5228_v21, %v579_v13  ;;  %v606_v60 = vadd.f32 %v5235_v36, %v578_v19  ;;  %v3580_v10 = vcombine.high %v701_v54, %v705_v55  ;;  %v709_v11 = vld [vmem:[#allocation8 + $0x2c8] sm:$0xff]  ;;  %v3579_v13 = vcombine.low %v701_v54, %v705_v55  ;;  %v658_v41 = vld [vmem:[#allocation8 + $0x130] sm:$0xff]  ;;  %v4035_v54 = vld [vmem:[#allocation11 + $0x54] ss:$8 sps:$4 sm:$0xff]  }
 0x191   : > { %v4225_v61 = vpop.eup %4224  ;;  %v717_v18 = vld [vmem:[#allocation8 + $0x308] sm:$0xff]  ;;  %v3534_v55 = vcombine.high %v654_v62, %v658_v41 }
 0x192   : > { %v5308_v35 = vpack.c.bf16 %v607_v25, %v605_v20  ;;  %v5310_v33 = vpack.c.bf16 %v606_v60, %v604_v22  ;;  %v553_v39 = vmul.f32 %v4225_v61, %v521_v17  ;;  %v552_v6 = vmul.f32 %v4225_v61, %v520_v42  ;;  %1510 = vmatpush1.bf16.msra.mxu1 %v3523_v12  ;;  %v713_v12 = vld [vmem:[#allocation8 + $0x2e8] sm:$0xff] }
 0x193   : > { %v4227_v32 = vpop.eup %4226  ;;  %1511 = vmatprep.subr.bf16.mxu1 %v3532_v29  ;;  %v3588_v14 = vcombine.high %v709_v11, %v713_v12  ;;  %v721_v19 = vld [vmem:[#allocation8 + $0x328] sm:$0xff]  ;;  %v3587_v42 = vcombine.low %v709_v11, %v713_v12  ;;  %v666_v11 = vld [vmem:[#allocation8 + $0x170] sm:$0xff]  ;;  %v3533_v12 = vcombine.low %v654_v62, %v658_v41  ;;  %v4059_v62 = vld [vmem:[#allocation11 + $0xd4] ss:$8 sps:$4 sm:$0xff]  }
 0x194   : > { %1482 = vmatprep.mubr.bf16.mxu1 %v5308_v35  ;;  %v555_v4 = vmul.f32 %v4227_v32, %v523_v24  ;;  %v554_v43 = vmul.f32 %v4227_v32, %v522_v23  ;;  %v581_v45 = vmul.f32 %v5222_v26, %v553_v39  ;;  %v580_v47 = vmul.f32 %v5225_v28, %v552_v6  ;;  %v725_v20 = vld [vmem:[#allocation8 + $0x348] sm:$0xff]  ;;  %v726_v41 = vld [vmem:[#allocation8 + $0x350] sm:$0xff] }
 0x195   : > { %1483 = vmatmul.mubr.bf16.gmra.mrb[8].mxu1 %v5310_v33  ;;  %v3596_v17 = vcombine.high %v717_v18, %v721_v19  ;;  %v729_v22 = vld [vmem:[#allocation8 + $0x368] sm:$0xff]  ;;  %v3595_v23 = vcombine.low %v717_v18, %v721_v19  ;;  %v670_v18 = vld [vmem:[#allocation8 + $0x190] sm:$0xff] }
 0x196   : > { %v583_v48 = vmul.f32 %v5222_v26, %v555_v4  ;;  %v582_v51 = vmul.f32 %v5225_v28, %v554_v43  ;;  %v609_v52 = vadd.f32 %v5228_v21, %v581_v45  ;;  %v608_v56 = vadd.f32 %v5235_v36, %v580_v47  ;;  %1512 = vmatpush1.bf16.msra.mxu1 %v3531_v7  ;;  %v677_v26 = vld [vmem:[#allocation8 + $0x1c8] sm:$0xff]  ;;  %v622_v7 = vld [vmem:[#allocation8 + $0x10] sm:$0xff]  ;;  %v4023_v47 = vld [vmem:[#allocation11 + $0x14] ss:$8 sps:$4 sm:$0xff]  }
 0x197   : > { %1513 = vmatprep.subr.bf16.mxu1 %v3540_v46  ;;  %v3547_v28 = vcombine.low %v669_v44, %v673_v49  ;;  %v3556_v16 = vcombine.high %v677_v26, %v681_v57  ;;  %v3604_v24 = vcombine.high %v725_v20, %v729_v22  ;;  %v733_v25 = vld [vmem:[#allocation8 + $0x388] sm:$0xff]  ;;  %v3603_v29 = vcombine.low %v725_v20, %v729_v22  ;;  %v626_v4 = vld [vmem:[#allocation8 + $0x30] sm:$0xff]  ;;  %v4025_v49 = vld [vmem:[#allocation11 + $0x10] ss:$8 sps:$4 sm:$0xff]  }
 0x198   : > { %v611_v27 = vadd.f32 %v5228_v21, %v583_v48  ;;  %v610_v37 = vadd.f32 %v5235_v36, %v582_v51  ;;  %v3555_v21 = vcombine.low %v677_v26, %v681_v57  ;;  %v3564_v36 = vcombine.high %v685_v58, %v689_v40  ;;  %v737_v60 = vld [vmem:[#allocation8 + $0x3a8] sm:$0xff]  ;;  %v630_v48 = vld [vmem:[#allocation8 + $0x50] sm:$0xff]  ;;  %v4029_v26 = vld [vmem:[#allocation11 + $0x34] ss:$8 sps:$4 sm:$0xff]  }
 0x199   : > { %v3612_v61 = vcombine.high %v733_v25, %v737_v60  ;;  %v741_v30 = vld [vmem:[#allocation8 + $0x3c8] sm:$0xff]  ;;  %v3611_v32 = vcombine.low %v733_v25, %v737_v60  ;;  %v3502_v45 = vcombine.high %v622_v7, %v626_v4  ;;  %v634_v44 = vld [vmem:[#allocation8 + $0x70] sm:$0xff]  ;;  %v3501_v51 = vcombine.low %v622_v7, %v626_v4  ;;  %v4041_v22 = vld [vmem:[#allocation11 + $0x74] ss:$8 sps:$4 sm:$0xff]  }
 0x19a   : > { %v5322_v59 = vpack.c.bf16 %v611_v27, %v609_v52  ;;  %v5324_v15 = vpack.c.bf16 %v610_v37, %v608_v56  ;;  %1514 = vmatpush1.bf16.msra.mxu1 %v3539_v5  ;;  %v745_v2 = vld [vmem:[#allocation8 + $0x3e8] sm:$0xff]  ;;  %v3510_v52 = vcombine.high %v630_v48, %v634_v44  ;;  %v638_v5 = vld [vmem:[#allocation8 + $0x90] sm:$0xff]  ;;  %v4043_v25 = vld [vmem:[#allocation11 + $0x70] ss:$8 sps:$4 sm:$0xff]  }
 0x19b   : > { %1515 = vmatprep.subr.bf16.mxu1 %v3548_v38  ;;  %v3620_v39 = vcombine.high %v741_v30, %v745_v2  ;;  %v4020_v6 = vld [vmem:[#allocation11 + $0x4] ss:$8 sps:$4 sm:$0xff]   ;;  %v4022_v43 = vld [vmem:[#allocation11] ss:$8 sps:$4 sm:$0xff]   ;;  %v3619_v46 = vcombine.low %v741_v30, %v745_v2  ;;  %v3509_v38 = vcombine.low %v630_v48, %v634_v44  ;;  %v4047_v7 = vld [vmem:[#allocation11 + $0x94] ss:$8 sps:$4 sm:$0xff]  }
 0x19c   : > { %1492 = vmatprep.mubr.bf16.mxu1 %v5322_v59  ;;  %2982 = vmatprep.subr.bf16.mxu0 %v4020_v6  ;;  %v4026_v56 = vld [vmem:[#allocation11 + $0x24] ss:$8 sps:$4 sm:$0xff]   ;;  %v4028_v37 = vld [vmem:[#allocation11 + $0x20] ss:$8 sps:$4 sm:$0xff]  }
 0x19d   : > { %1493 = vmatmul.mubr.bf16.gmra.mrb[12].mxu1 %v5324_v15  ;;  %2983 = vmatpush1.bf16.msra.mxu0 %v4022_v43  ;;  %v642_v27 = vld [vmem:[#allocation8 + $0xb0] sm:$0xff] }
 0x19e   : > { %1516 = vmatpush1.bf16.msra.mxu1 %v3547_v28  ;;  %1535 = vmatprep.mubr.bf16.mxu1 %v5261_v31  ;;  %v3518_v57 = vcombine.high %v638_v5, %v642_v27  ;;  %v4031_v28 = vld [vmem:[#allocation11 + $0x30] ss:$8 sps:$4 sm:$0xff]   ;;  %v650_v58 = vld [vmem:[#allocation8 + $0xf0] sm:$0xff]  ;;  %v3517_v40 = vcombine.low %v638_v5, %v642_v27  ;;  %v4053_v5 = vld [vmem:[#allocation11 + $0xb4] ss:$8 sps:$4 sm:$0xff]  }
 0x19f   : > { %1517 = vmatprep.subr.bf16.mxu1 %v3556_v16  ;;  %2984 = vmatprep.subr.bf16.mxu0 %v4023_v47  ;;  %v646_v16 = vld [vmem:[#allocation8 + $0xd0] sm:$0xff] }
 0x1a0   : > { %v674_v19 = vld [vmem:[#allocation8 + $0x1b0] sm:$0xff] }
 0x1a1   : > { %2985 = vmatpush1.bf16.msra.mxu0 %v4025_v49  ;;  %v3550_v20 = vcombine.high %v670_v18, %v674_v19  ;;  %v3549_v60 = vcombine.low %v670_v18, %v674_v19  ;;  %v686_v30 = vld [vmem:[#allocation8 + $0x210] sm:$0xff]  ;;  %v4065_v18 = vld [vmem:[#allocation11 + $0xf4] ss:$8 sps:$4 sm:$0xff]  }
 0x1a2   : > { %1518 = vmatpush1.bf16.msra.mxu1 %v3555_v21  ;;  %2986 = vmatprep.subr.bf16.mxu0 %v4026_v56  ;;  %v3526_v21 = vcombine.high %v646_v16, %v650_v58  ;;  %v690_v2 = vld [vmem:[#allocation8 + $0x230] sm:$0xff] }
 0x1a3   : > { %1519 = vmatprep.subr.bf16.mxu1 %v3564_v36  ;;  %v4032_v36 = vld [vmem:[#allocation11 + $0x44] ss:$8 sps:$4 sm:$0xff]   ;;  %v3566_v6 = vcombine.high %v686_v30, %v690_v2 }
 0x1a4   : > { %v694_v4 = vld [vmem:[#allocation8 + $0x250] sm:$0xff] }
 0x1a5   : > { %2987 = vmatpush1.bf16.msra.mxu0 %v4028_v37  ;;  %v698_v43 = vld [vmem:[#allocation8 + $0x270] sm:$0xff] }
 0x1a6   : > { %1520 = vmatpush1.bf16.msra.mxu1 %v3563_v9  ;;  %2988 = vmatprep.subr.bf16.mxu0 %v4029_v26  ;;  %v4034_v9 = vld [vmem:[#allocation11 + $0x40] ss:$8 sps:$4 sm:$0xff]   ;;  %v3574_v47 = vcombine.high %v694_v4, %v698_v43  ;;  %v4050_v48 = vld [vmem:[#allocation11 + $0xa4] ss:$8 sps:$4 sm:$0xff]  }
 0x1a7   : > { %1521 = vmatprep.subr.bf16.mxu1 %v3572_v53  ;;  %v3525_v53 = vcombine.low %v646_v16, %v650_v58  ;;  %v702_v44 = vld [vmem:[#allocation8 + $0x290] sm:$0xff] }
 0x1a8   : > { %v706_v49 = vld [vmem:[#allocation8 + $0x2b0] sm:$0xff] }
 0x1a9   : > { %2989 = vmatpush1.bf16.msra.mxu0 %v4031_v28  ;;  %v3582_v56 = vcombine.high %v702_v44, %v706_v49  ;;  %v710_v27 = vld [vmem:[#allocation8 + $0x2d0] sm:$0xff]  ;;  %v3581_v26 = vcombine.low %v702_v44, %v706_v49  ;;  %v659_v44 = vld [vmem:[#allocation8 + $0x138] sm:$0xff] }
 0x1aa   : > { %1522 = vmatpush1.bf16.msra.mxu1 %v3571_v8  ;;  %2990 = vmatprep.subr.bf16.mxu0 %v4032_v36  ;;  %v4037_v8 = vld [vmem:[#allocation11 + $0x50] ss:$8 sps:$4 sm:$0xff]   ;;  %v714_v37 = vld [vmem:[#allocation8 + $0x2f0] sm:$0xff] }
 0x1ab   : > { %1523 = vmatprep.subr.bf16.mxu1 %v3580_v10  ;;  %v662_v10 = vld [vmem:[#allocation8 + $0x150] sm:$0xff] }
 0x1ac   : > { %v4056_v28 = vld [vmem:[#allocation11 + $0xc4] ss:$8 sps:$4 sm:$0xff]  }
 0x1ad   : > { %2991 = vmatpush1.bf16.msra.mxu0 %v4034_v9  ;;  %v718_v16 = vld [vmem:[#allocation8 + $0x310] sm:$0xff] }
 0x1ae   : > { %1524 = vmatpush1.bf16.msra.mxu1 %v3579_v13  ;;  %2992 = vmatprep.subr.bf16.mxu0 %v4035_v54  ;;  %v3542_v13 = vcombine.high %v662_v10, %v666_v11  ;;  %v722_v58 = vld [vmem:[#allocation8 + $0x330] sm:$0xff] }
 0x1af   : > { %1525 = vmatprep.subr.bf16.mxu1 %v3588_v14  ;;  %v4038_v14 = vld [vmem:[#allocation11 + $0x64] ss:$8 sps:$4 sm:$0xff]   ;;  %v3598_v36 = vcombine.high %v718_v16, %v722_v58  ;;  %v3597_v54 = vcombine.low %v718_v16, %v722_v58  ;;  %v683_v16 = vld [vmem:[#allocation8 + $0x1f8] sm:$0xff] }
 0x1b0   : > { %v730_v9 = vld [vmem:[#allocation8 + $0x370] sm:$0xff] }
 0x1b1   : > { %2993 = vmatpush1.bf16.msra.mxu0 %v4037_v8  ;;  %v4062_v8 = vld [vmem:[#allocation11 + $0xe4] ss:$8 sps:$4 sm:$0xff]  }
 0x1b2   : > { %1526 = vmatpush1.bf16.msra.mxu1 %v3587_v42  ;;  %v4040_v42 = vld [vmem:[#allocation11 + $0x60] ss:$8 sps:$4 sm:$0xff]   ;;  %2994 = vmatprep.subr.bf16.mxu0 %v4038_v14 }
 0x1b3   : > { %1527 = vmatprep.subr.bf16.mxu1 %v3596_v17  ;;  %v3541_v17 = vcombine.low %v662_v10, %v666_v11  ;;  %v734_v10 = vld [vmem:[#allocation8 + $0x390] sm:$0xff] }
 0x1b4   : > { %v738_v11 = vld [vmem:[#allocation8 + $0x3b0] sm:$0xff] }
 0x1b5   : > { %2995 = vmatpush1.bf16.msra.mxu0 %v4040_v42  ;;  %v3614_v14 = vcombine.high %v734_v10, %v738_v11  ;;  %v742_v19 = vld [vmem:[#allocation8 + $0x3d0] sm:$0xff] }
 0x1b6   : > { %1528 = vmatpush1.bf16.msra.mxu1 %v3595_v23  ;;  %v678_v23 = vld [vmem:[#allocation8 + $0x1d0] sm:$0xff]  ;;  %2996 = vmatprep.subr.bf16.mxu0 %v4041_v22 }
 0x1b7   : > { %1529 = vmatprep.subr.bf16.mxu1 %v3604_v24  ;;  %v682_v24 = vld [vmem:[#allocation8 + $0x1f0] sm:$0xff] }
 0x1b8   : > { %v746_v42 = vld [vmem:[#allocation8 + $0x3f0] sm:$0xff] }
 0x1b9   : > { %2997 = vmatpush1.bf16.msra.mxu0 %v4043_v25  ;;  %v3622_v22 = vcombine.high %v742_v19, %v746_v42  ;;  %v627_v25 = vld [vmem:[#allocation8 + $0x38] sm:$0xff] }
 0x1ba   : > { %1530 = vmatpush1.bf16.msra.mxu1 %v3603_v29  ;;  %v3558_v29 = vcombine.high %v678_v23, %v682_v24 }
 0x1bb   : > { %1531 = vmatprep.subr.bf16.mxu1 %v3612_v61  ;;  %v4044_v61 = vld [vmem:[#allocation11 + $0x84] ss:$8 sps:$4 sm:$0xff]  }
 0x1bc   : > { %2998 = vmatprep.subr.bf16.mxu0 %v4044_v61  ;;  %v631_v61 = vld [vmem:[#allocation8 + $0x58] sm:$0xff] }
 0x1be   : > { %1532 = vmatpush1.bf16.msra.mxu1 %v3611_v32  ;;  %v4046_v32 = vld [vmem:[#allocation11 + $0x80] ss:$8 sps:$4 sm:$0xff]  }
 0x1bf   : > { %1533 = vmatprep.subr.bf16.mxu1 %v3620_v39  ;;  %v3557_v39 = vcombine.low %v678_v23, %v682_v24  ;;  %2999 = vmatpush1.bf16.msra.mxu0 %v4046_v32  ;;  %v4070_v23 = vld [vmem:[#allocation11 + $0x104] ss:$8 sps:$4 sm:$0xff]   ;;  %v623_v24 = vld [vmem:[#allocation8 + $0x18] sm:$0xff] }
 0x1c0   : > { %3000 = vmatprep.subr.bf16.mxu0 %v4047_v7 }
 0x1c2   : > { %1534 = vmatpush1.bf16.msra.mxu1 %v3619_v46  ;;  %v4049_v46 = vld [vmem:[#allocation11 + $0x90] ss:$8 sps:$4 sm:$0xff]  }
 0x1c3   : > { %1576 = vmatprep.subr.bf16.mxu1 %v3502_v45  ;;  %v3565_v45 = vcombine.low %v686_v30, %v690_v2  ;;  %3001 = vmatpush1.bf16.msra.mxu0 %v4049_v46  ;;  %v635_v30 = vld [vmem:[#allocation8 + $0x78] sm:$0xff]  ;;  %v3503_v2 = vcombine.low %v623_v24, %v627_v25 }
 0x1c4   : > { %3002 = vmatprep.subr.bf16.mxu0 %v4050_v48  ;;  %v3512_v32 = vcombine.high %v631_v61, %v635_v30  ;;  %v3511_v7 = vcombine.low %v631_v61, %v635_v30  ;;  %v651_v46 = vld [vmem:[#allocation8 + $0xf8] sm:$0xff] }
 0x1c5   : > { %1536 = vmatmul.mubr.bf16.vlgmr.msra.gmra.mrb[16].mxu1 %v5263_v3  ;;  %v655_v48 = vld [vmem:[#allocation8 + $0x118] sm:$0xff] }
 0x1c6   : > { %1545 = vmatprep.mubr.bf16.mxu1 %v5286_v34  ;;  %1577 = vmatpush1.bf16.msra.mxu1 %v3501_v51  ;;  %v4052_v51 = vld [vmem:[#allocation11 + $0xa0] ss:$8 sps:$4 sm:$0xff]  }
 0x1c7   : > { %1578 = vmatprep.subr.bf16.mxu1 %v3510_v52  ;;  %v3573_v52 = vcombine.low %v694_v4, %v698_v43  ;;  %3003 = vmatpush1.bf16.msra.mxu0 %v4052_v51  ;;  %v647_v43 = vld [vmem:[#allocation8 + $0xd8] sm:$0xff]  ;;  %v3536_v51 = vcombine.high %v655_v48, %v659_v44 }
 0x1c8   : > { %3004 = vmatprep.subr.bf16.mxu0 %v4053_v5  ;;  %v3527_v49 = vcombine.low %v647_v43, %v651_v46  ;;  %v3535_v5 = vcombine.low %v655_v48, %v659_v44 }
 0x1ca   : > { %1579 = vmatpush1.bf16.msra.mxu1 %v3509_v38  ;;  %v4055_v38 = vld [vmem:[#allocation11 + $0xb0] ss:$8 sps:$4 sm:$0xff]  }
 0x1cb   : > { %1580 = vmatprep.subr.bf16.mxu1 %v3518_v57  ;;  %v3590_v57 = vcombine.high %v710_v27, %v714_v37  ;;  %3005 = vmatpush1.bf16.msra.mxu0 %v4055_v38  ;;  %v675_v38 = vld [vmem:[#allocation8 + $0x1b8] sm:$0xff] }
 0x1cc   : > { %3006 = vmatprep.subr.bf16.mxu0 %v4056_v28  ;;  %v679_v28 = vld [vmem:[#allocation8 + $0x1d8] sm:$0xff] }
 0x1cd   : > { %1546 = vmatmul.mubr.bf16.gmra.mrb[20].mxu1 %v5288_v1 }
 0x1ce   : > { %1555 = vmatprep.mubr.bf16.mxu1 %v5308_v35  ;;  %1581 = vmatpush1.bf16.msra.mxu1 %v3517_v40  ;;  %v4058_v40 = vld [vmem:[#allocation11 + $0xc0] ss:$8 sps:$4 sm:$0xff]  }
 0x1cf   : > { %1582 = vmatprep.subr.bf16.mxu1 %v3526_v21  ;;  %v3589_v21 = vcombine.low %v710_v27, %v714_v37  ;;  %3007 = vmatpush1.bf16.msra.mxu0 %v4058_v40  ;;  %v671_v37 = vld [vmem:[#allocation8 + $0x198] sm:$0xff]  ;;  %v3560_v40 = vcombine.high %v679_v28, %v683_v16 }
 0x1d0   : > { %3008 = vmatprep.subr.bf16.mxu0 %v4059_v62  ;;  %v3551_v58 = vcombine.low %v671_v37, %v675_v38  ;;  %v3559_v62 = vcombine.low %v679_v28, %v683_v16 }
 0x1d2   : > { %1583 = vmatpush1.bf16.msra.mxu1 %v3525_v53  ;;  %v4061_v53 = vld [vmem:[#allocation11 + $0xd0] ss:$8 sps:$4 sm:$0xff]  }
 0x1d3   : > { %1584 = vmatprep.subr.bf16.mxu1 %v3534_v55  ;;  %v3606_v55 = vcombine.high %v726_v41, %v730_v9  ;;  %3009 = vmatpush1.bf16.msra.mxu0 %v4061_v53  ;;  %v699_v53 = vld [vmem:[#allocation8 + $0x278] sm:$0xff] }
 0x1d4   : > { %3010 = vmatprep.subr.bf16.mxu0 %v4062_v8  ;;  %v703_v8 = vld [vmem:[#allocation8 + $0x298] sm:$0xff] }
 0x1d5   : > { %1556 = vmatmul.mubr.bf16.gmra.mrb[24].mxu1 %v5310_v33 }
 0x1d6   : > { %1565 = vmatprep.mubr.bf16.mxu1 %v5322_v59  ;;  %1585 = vmatpush1.bf16.msra.mxu1 %v3533_v12  ;;  %v4064_v12 = vld [vmem:[#allocation11 + $0xe0] ss:$8 sps:$4 sm:$0xff]  }
 0x1d7   : > { %1586 = vmatprep.subr.bf16.mxu1 %v3542_v13  ;;  %v3605_v13 = vcombine.low %v726_v41, %v730_v9  ;;  %3011 = vmatpush1.bf16.msra.mxu0 %v4064_v12  ;;  %v695_v9 = vld [vmem:[#allocation8 + $0x258] sm:$0xff] }
 0x1d8   : > { %3012 = vmatprep.subr.bf16.mxu0 %v4065_v18 }
 0x1da   : > { %1587 = vmatpush1.bf16.msra.mxu1 %v3541_v17  ;;  %v4067_v17 = vld [vmem:[#allocation11 + $0xf0] ss:$8 sps:$4 sm:$0xff]  }
 0x1db   : > { %1588 = vmatprep.subr.bf16.mxu1 %v3550_v20  ;;  %v3613_v20 = vcombine.low %v734_v10, %v738_v11  ;;  %3013 = vmatpush1.bf16.msra.mxu0 %v4067_v17  ;;  %v707_v10 = vld [vmem:[#allocation8 + $0x2b8] sm:$0xff]  ;;  %v3575_v11 = vcombine.low %v695_v9, %v699_v53 }
 0x1dc   : > { %3055 = vmatprep.subr.bf16.mxu0 %v4070_v23  ;;  %v3584_v12 = vcombine.high %v703_v8, %v707_v10  ;;  %v3583_v18 = vcombine.low %v703_v8, %v707_v10  ;;  %v731_v23 = vld [vmem:[#allocation8 + $0x378] sm:$0xff] }
 0x1dd   : > { %1566 = vmatmul.mubr.bf16.gmra.mrb[28].mxu1 %v5324_v15 }
 0x1de   : > { %1589 = vmatpush1.bf16.msra.mxu1 %v3549_v60  ;;  %1608 = vmatprep.mubr.bf16.mxu1 %v5261_v31  ;;  %v3621_v60 = vcombine.low %v742_v19, %v746_v42  ;;  %v719_v19 = vld [vmem:[#allocation8 + $0x318] sm:$0xff] }
 0x1df   : > { %1590 = vmatprep.subr.bf16.mxu1 %v3558_v29  ;;  %v3504_v29 = vcombine.high %v623_v24, %v627_v25  ;;  %v723_v42 = vld [vmem:[#allocation8 + $0x338] sm:$0xff] }
 0x1e0   : > { %v3599_v24 = vcombine.low %v719_v19, %v723_v42 }
 0x1e2   : > { %1591 = vmatpush1.bf16.msra.mxu1 %v3557_v39  ;;  %v639_v39 = vld [vmem:[#allocation8 + $0x98] sm:$0xff] }
 0x1e3   : > { %1592 = vmatprep.subr.bf16.mxu1 %v3566_v6  ;;  %v643_v6 = vld [vmem:[#allocation8 + $0xb8] sm:$0xff] }
 0x1e4   : > { %v3520_v4 = vcombine.high %v639_v39, %v643_v6 }
 0x1e6   : > { %1593 = vmatpush1.bf16.msra.mxu1 %v3565_v45  ;;  %v3519_v45 = vcombine.low %v639_v39, %v643_v6 }
 0x1e7   : > { %1594 = vmatprep.subr.bf16.mxu1 %v3574_v47  ;;  %v3528_v47 = vcombine.high %v647_v43, %v651_v46 }
 0x1ea   : > { %1595 = vmatpush1.bf16.msra.mxu1 %v3573_v52  ;;  %v663_v52 = vld [vmem:[#allocation8 + $0x158] sm:$0xff] }
 0x1eb   : > { %1596 = vmatprep.subr.bf16.mxu1 %v3582_v56  ;;  %v667_v56 = vld [vmem:[#allocation8 + $0x178] sm:$0xff] }
 0x1ec   : > { %v3544_v27 = vcombine.high %v663_v52, %v667_v56 }
 0x1ee   : > { %1597 = vmatpush1.bf16.msra.mxu1 %v3581_v26  ;;  %v3543_v26 = vcombine.low %v663_v52, %v667_v56 }
 0x1ef   : > { %1598 = vmatprep.subr.bf16.mxu1 %v3590_v57  ;;  %v3552_v57 = vcombine.high %v671_v37, %v675_v38 }
 0x1f2   : > { %1599 = vmatpush1.bf16.msra.mxu1 %v3589_v21  ;;  %v687_v21 = vld [vmem:[#allocation8 + $0x218] sm:$0xff] }
 0x1f3   : > { %1600 = vmatprep.subr.bf16.mxu1 %v3598_v36  ;;  %v691_v36 = vld [vmem:[#allocation8 + $0x238] sm:$0xff] }
 0x1f4   : > { %v3568_v41 = vcombine.high %v687_v21, %v691_v36 }
 0x1f6   : > { %1601 = vmatpush1.bf16.msra.mxu1 %v3597_v54  ;;  %v3567_v54 = vcombine.low %v687_v21, %v691_v36 }
 0x1f7   : > { %1602 = vmatprep.subr.bf16.mxu1 %v3606_v55  ;;  %v3576_v55 = vcombine.high %v695_v9, %v699_v53 }
 0x1fa   : > { %1603 = vmatpush1.bf16.msra.mxu1 %v3605_v13  ;;  %v711_v13 = vld [vmem:[#allocation8 + $0x2d8] sm:$0xff] }
 0x1fb   : > { %1604 = vmatprep.subr.bf16.mxu1 %v3614_v14  ;;  %v715_v14 = vld [vmem:[#allocation8 + $0x2f8] sm:$0xff] }
 0x1fc   : > { %v3591_v17 = vcombine.low %v711_v13, %v715_v14 }
 0x1fe   : > { %1605 = vmatpush1.bf16.msra.mxu1 %v3613_v20  ;;  %v3600_v20 = vcombine.high %v719_v19, %v723_v42 }
 0x1ff   : > { %1606 = vmatprep.subr.bf16.mxu1 %v3622_v22  ;;  %v727_v22 = vld [vmem:[#allocation8 + $0x358] sm:$0xff] }
 0x200   : > { %v3608_v25 = vcombine.high %v727_v22, %v731_v23  ;;  %v3607_v61 = vcombine.low %v727_v22, %v731_v23 }
 0x202   : > { %1607 = vmatpush1.bf16.msra.mxu1 %v3621_v60  ;;  %v735_v60 = vld [vmem:[#allocation8 + $0x398] sm:$0xff] }
 0x203   : > { %1649 = vmatprep.subr.bf16.mxu1 %v3504_v29  ;;  %v739_v29 = vld [vmem:[#allocation8 + $0x3b8] sm:$0xff] }
 0x204   : > { %v3616_v30 = vcombine.high %v735_v60, %v739_v29  ;;  %v3615_v39 = vcombine.low %v735_v60, %v739_v29 }
 0x205   : > { %1609 = vmatmul.mubr.bf16.vlgmr.msra.gmra.mrb[32].mxu1 %v5263_v3 }
 0x206   : > { %1618 = vmatprep.mubr.bf16.mxu1 %v5286_v34  ;;  %1650 = vmatpush1.bf16.msra.mxu1 %v3503_v2  ;;  %v743_v2 = vld [vmem:[#allocation8 + $0x3d8] sm:$0xff] }
 0x207   : > { %1651 = vmatprep.subr.bf16.mxu1 %v3512_v32  ;;  %v747_v32 = vld [vmem:[#allocation8 + $0x3f8] sm:$0xff] }
 0x208   : > { %v3624_v6 = vcombine.high %v743_v2, %v747_v32 }
 0x20a   : > { %1652 = vmatpush1.bf16.msra.mxu1 %v3511_v7  ;;  %v3623_v7 = vcombine.low %v743_v2, %v747_v32 }
 0x20b   : > { %1653 = vmatprep.subr.bf16.mxu1 %v3520_v4  ;;  %v5349_v4 = vld [vmem:[#allocation10] sm:$0xff] }
 0x20c   : > { %v5354_v43 = vrot.slane %v5349_v4, %v5211_v0  ;;  %v5359_v46 = vrot.slane %v5349_v4, %v5208_v63 }
 0x20d   : > { %1619 = vmatmul.mubr.bf16.gmra.mrb[36].mxu1 %v5288_v1 }
 0x20e   : > { %1628 = vmatprep.mubr.bf16.mxu1 %v5308_v35  ;;  %1654 = vmatpush1.bf16.msra.mxu1 %v3519_v45 }
 0x20f   : > { %1655 = vmatprep.subr.bf16.mxu1 %v3528_v47 }
 0x212   : > { %1656 = vmatpush1.bf16.msra.mxu1 %v3527_v49 }
 0x213   : > { %1657 = vmatprep.subr.bf16.mxu1 %v3536_v51 }
 0x215   : > { %1629 = vmatmul.mubr.bf16.gmra.mrb[40].mxu1 %v5310_v33 }
 0x216   : > { %1638 = vmatprep.mubr.bf16.mxu1 %v5322_v59  ;;  %1658 = vmatpush1.bf16.msra.mxu1 %v3535_v5 }
 0x217   : > { %1659 = vmatprep.subr.bf16.mxu1 %v3544_v27 }
 0x21a   : > { %1660 = vmatpush1.bf16.msra.mxu1 %v3543_v26 }
 0x21b   : > { %1661 = vmatprep.subr.bf16.mxu1 %v3552_v57 }
 0x21d   : > { %1639 = vmatmul.mubr.bf16.gmra.mrb[44].mxu1 %v5324_v15 }
 0x21e   : > { %1662 = vmatpush1.bf16.msra.mxu1 %v3551_v58  ;;  %1681 = vmatprep.mubr.bf16.mxu1 %v5261_v31  ;;  %v3592_v31 = vcombine.high %v711_v13, %v715_v14 }
 0x21f   : > { %1663 = vmatprep.subr.bf16.mxu1 %v3560_v40 }
 0x222   : > { %1664 = vmatpush1.bf16.msra.mxu1 %v3559_v62 }
 0x223   : > { %1665 = vmatprep.subr.bf16.mxu1 %v3568_v41 }
 0x226   : > { %1666 = vmatpush1.bf16.msra.mxu1 %v3567_v54 }
 0x227   : > { %1667 = vmatprep.subr.bf16.mxu1 %v3576_v55 }
 0x22a   : > { %1668 = vmatpush1.bf16.msra.mxu1 %v3575_v11 }
 0x22b   : > { %1669 = vmatprep.subr.bf16.mxu1 %v3584_v12 }
 0x22e   : > { %1670 = vmatpush1.bf16.msra.mxu1 %v3583_v18 }
 0x22f   : > { %1671 = vmatprep.subr.bf16.mxu1 %v3592_v31 }
 0x232   : > { %1672 = vmatpush1.bf16.msra.mxu1 %v3591_v17 }
 0x233   : > { %1673 = vmatprep.subr.bf16.mxu1 %v3600_v20 }
 0x236   : > { %1674 = vmatpush1.bf16.msra.mxu1 %v3599_v24 }
 0x237   : > { %1675 = vmatprep.subr.bf16.mxu1 %v3608_v25 }
 0x23a   : > { %1676 = vmatpush1.bf16.msra.mxu1 %v3607_v61 }
 0x23b   : > { %1677 = vmatprep.subr.bf16.mxu1 %v3616_v30 }
 0x23e   : > { %1678 = vmatpush1.bf16.msra.mxu1 %v3615_v39 }
 0x23f   : > { %1679 = vmatprep.subr.bf16.mxu1 %v3624_v6 }
 0x242   : > { %1680 = vmatpush1.bf16.msra.mxu1 %v3623_v7 }
 0x245   : > { %1682 = vmatmul.mubr.bf16.vlgmr.msra.gmra.mrb[48].mxu1 %v5263_v3 }
 0x246   : > { %1691 = vmatprep.mubr.bf16.mxu1 %v5286_v34 }
 0x24d   : > { %1692 = vmatmul.mubr.bf16.gmra.mrb[52].mxu1 %v5288_v1 }
 0x24e   : > { %1701 = vmatprep.mubr.bf16.mxu1 %v5308_v35 }
 0x255   : > { %1702 = vmatmul.mubr.bf16.gmra.mrb[56].mxu1 %v5310_v33 }
 0x256   : > { %1711 = vmatprep.mubr.bf16.mxu1 %v5322_v59 }
 0x258   : > { %v1464_v3 = vpop.f32.mrb[0].mxu1 }
 0x259   : > { %v5362_v34 = vadd.f32 %v1464_v3, %v5354_v43  ;;  %v1466_v1 = vpop.f32.mrb[1].mxu1 }
 0x25a   : > { %v5365_v35 = vadd.f32 %v1466_v1, %v5359_v46  ;;  %v1468_v45 = vpop.f32.mrb[2].mxu1 }
 0x25b   : > { %v3625_v33 = vmul.f32 -1.442695, %v5362_v34  ;;  %v5369_v47 = vadd.f32 %v1468_v45, %v5354_v43  ;;  %v1470_v48 = vpop.f32.mrb[3].mxu1 }
 0x25c   : > { %v3626_v59 = vmul.f32 -1.442695, %v5365_v35  ;;  %v5373_v44 = vadd.f32 %v1470_v48, %v5359_v46 }
 0x25d   : > { %4228 = vpow2.f32 %v3625_v33  ;;  %v3633_v49 = vmul.f32 -1.442695, %v5369_v47  ;;  %1712 = vmatmul.mubr.bf16.gmra.mrb[60].mxu1 %v5324_v15 }
 0x25e   : > { %4230 = vpow2.f32 %v3626_v59  ;;  %v3634_v51 = vmul.f32 -1.442695, %v5373_v44 }
 0x25f   : > { %4232 = vpow2.f32 %v3633_v49 }
 0x260   : > { %4234 = vpow2.f32 %v3634_v51  ;;  %v1474_v52 = vpop.f32.mrb[4].mxu1 }
 0x261   : > { %v5379_v56 = vadd.f32 %v1474_v52, %v5354_v43  ;;  %v1476_v5 = vpop.f32.mrb[5].mxu1 }
 0x262   : > { %v5382_v27 = vadd.f32 %v1476_v5, %v5359_v46  ;;  %v1478_v37 = vpop.f32.mrb[6].mxu1 }
 0x263   : > { %v3641_v38 = vmul.f32 -1.442695, %v5379_v56  ;;  %v5386_v26 = vadd.f32 %v1478_v37, %v5354_v43  ;;  %v1480_v15 = vpop.f32.mrb[7].mxu1 }
 0x264   : > { %v3642_v57 = vmul.f32 -1.442695, %v5382_v27  ;;  %v5390_v28 = vadd.f32 %v1480_v15, %v5359_v46 }
 0x265   : > { %4236 = vpow2.f32 %v3641_v38  ;;  %v3649_v16 = vmul.f32 -1.442695, %v5386_v26 }
 0x266   : > { %4238 = vpow2.f32 %v3642_v57  ;;  %v3650_v58 = vmul.f32 -1.442695, %v5390_v28 }
 0x267   : > { %v4229_v40 = vpop.eup %4228  ;;  %4240 = vpow2.f32 %v3649_v16 }
 0x268   : > { %v4231_v21 = vpop.eup %4230  ;;  %v1914_v36 = vadd.f32 1.0, %v4229_v40  ;;  %4242 = vpow2.f32 %v3650_v58  ;;  %v1484_v62 = vpop.f32.mrb[8].mxu1 }
 0x269   : > { %v4233_v41 = vpop.eup %4232  ;;  %v1915_v9 = vadd.f32 1.0, %v4231_v21  ;;  %v5395_v53 = vadd.f32 %v1484_v62, %v5354_v43  ;;  %v1486_v54 = vpop.f32.mrb[9].mxu1  ;;  %v4068_v62 = vld [vmem:[#allocation11 + $0x100] ss:$8 sps:$4 sm:$0xff]  }
 0x26a   : > { %v4235_v55 = vpop.eup %4234  ;;  %4244 = vrcp.f32 %v1914_v36  ;;  %v1922_v8 = vadd.f32 1.0, %v4233_v41  ;;  %v5398_v10 = vadd.f32 %v1486_v54, %v5359_v46  ;;  %v1488_v11 = vpop.f32.mrb[10].mxu1 }
 0x26b   : > { %4246 = vrcp.f32 %v1915_v9  ;;  %v1923_v12 = vadd.f32 1.0, %v4235_v55  ;;  %v3657_v13 = vmul.f32 -1.442695, %v5395_v53  ;;  %v5402_v14 = vadd.f32 %v1488_v11, %v5354_v43  ;;  %v1490_v18 = vpop.f32.mrb[11].mxu1  ;;  %v4073_v9 = vld [vmem:[#allocation11 + $0x114] ss:$8 sps:$4 sm:$0xff]  }
 0x26c   : > { %4248 = vrcp.f32 %v1922_v8  ;;  %v3658_v31 = vmul.f32 -1.442695, %v5398_v10  ;;  %v5406_v19 = vadd.f32 %v1490_v18, %v5359_v46 }
 0x26d   : > { %4250 = vrcp.f32 %v1923_v12  ;;  %v3665_v42 = vmul.f32 -1.442695, %v5402_v14 }
 0x26e   : > { %4252 = vpow2.f32 %v3657_v13  ;;  %v3666_v17 = vmul.f32 -1.442695, %v5406_v19  ;;  %v4076_v13 = vld [vmem:[#allocation11 + $0x124] ss:$8 sps:$4 sm:$0xff]  }
 0x26f   : > { %v4237_v20 = vpop.eup %4236  ;;  %4254 = vpow2.f32 %v3658_v31 }
 0x270   : > { %v4239_v22 = vpop.eup %4238  ;;  %v1930_v23 = vadd.f32 1.0, %v4237_v20  ;;  %4256 = vpow2.f32 %v3665_v42  ;;  %v1494_v24 = vpop.f32.mrb[12].mxu1 }
 0x271   : > { %v4241_v25 = vpop.eup %4240  ;;  %v1931_v60 = vadd.f32 1.0, %v4239_v22  ;;  %4258 = vpow2.f32 %v3666_v17  ;;  %v5411_v29 = vadd.f32 %v1494_v24, %v5354_v43  ;;  %v1496_v61 = vpop.f32.mrb[13].mxu1 }
 0x272   : > { %v4243_v30 = vpop.eup %4242  ;;  %4260 = vrcp.f32 %v1930_v23  ;;  %v1938_v2 = vadd.f32 1.0, %v4241_v25  ;;  %v5414_v32 = vadd.f32 %v1496_v61, %v5359_v46  ;;  %v1498_v39 = vpop.f32.mrb[14].mxu1 }
 0x273   : > { %4262 = vrcp.f32 %v1931_v60  ;;  %v1939_v6 = vadd.f32 1.0, %v4243_v30  ;;  %v3673_v7 = vmul.f32 -1.442695, %v5411_v29  ;;  %v5418_v3 = vadd.f32 %v1498_v39, %v5354_v43  ;;  %v1500_v1 = vpop.f32.mrb[15].mxu1  ;;  %v4074_v60 = vld [vmem:[#allocation11 + $0x120] ss:$8 sps:$4 sm:$0xff]  }
 0x274   : > { %v4245_v45 = vpop.eup %4244  ;;  %4264 = vrcp.f32 %v1938_v2  ;;  %v3674_v33 = vmul.f32 -1.442695, %v5414_v32  ;;  %v5422_v48 = vadd.f32 %v1500_v1, %v5359_v46 }
 0x275   : > { %v4247_v59 = vpop.eup %4246  ;;  %4266 = vrcp.f32 %v1939_v6  ;;  %v3681_v49 = vmul.f32 -1.442695, %v5418_v3  ;;  %v2106_v43 = vmul.f32 %v4245_v45, %v5362_v34  ;;  %v4082_v6 = vld [vmem:[#allocation11 + $0x144] ss:$8 sps:$4 sm:$0xff]  }
 0x276   : > { %v4249_v51 = vpop.eup %4248  ;;  %4268 = vpow2.f32 %v3673_v7  ;;  %v3682_v52 = vmul.f32 -1.442695, %v5422_v48  ;;  %v2107_v15 = vmul.f32 %v4247_v59, %v5365_v35 }
 0x277   : > { %v4251_v5 = vpop.eup %4250  ;;  %v2114_v37 = vmul.f32 %v4249_v51, %v5369_v47  ;;  %4270 = vpow2.f32 %v3674_v33 }
 0x278   : > { %v4253_v38 = vpop.eup %4252  ;;  %4272 = vpow2.f32 %v3681_v49  ;;  %v2115_v46 = vmul.f32 %v4251_v5, %v5373_v44  ;;  %v4071_v44 = vld [vmem:[#allocation11 + $0x110] ss:$8 sps:$4 sm:$0xff]   ;;  %v4085_v5 = vld [vmem:[#allocation11 + $0x154] ss:$8 sps:$4 sm:$0xff]  }
 0x279   : > { %v4255_v57 = vpop.eup %4254  ;;  %v1946_v16 = vadd.f32 1.0, %v4253_v38  ;;  %4274 = vpow2.f32 %v3682_v52  ;;  %v2170_v58 = vpack.c.bf16 %v2114_v37, %v2106_v43  ;;  %v4080_v52 = vld [vmem:[#allocation11 + $0x140] ss:$8 sps:$4 sm:$0xff]  }
 0x27a   : > { %v4257_v40 = vpop.eup %4256  ;;  %v1947_v21 = vadd.f32 1.0, %v4255_v57  ;;  %v2171_v36 = vpack.c.bf16 %v2115_v46, %v2107_v15  ;;  %v4083_v15 = vld [vmem:[#allocation11 + $0x150] ss:$8 sps:$4 sm:$0xff]  }
 0x27b   : > { %v4259_v41 = vpop.eup %4258  ;;  %4276 = vrcp.f32 %v1946_v16  ;;  %v1954_v34 = vadd.f32 1.0, %v4257_v40  ;;  %v760_v16 = vsub.s32 2, %v5203_v50  ;;  %v764_v40 = vsub.s32 3, %v5203_v50 }
 0x27c   : > { %v4261_v47 = vpop.eup %4260  ;;  %4278 = vrcp.f32 %v1947_v21  ;;  %v1955_v54 = vadd.f32 1.0, %v4259_v41  ;;  %3014 = vmatprep.mubr.bf16.mxu0 %v2171_v36  ;;  %v4086_v36 = vld [vmem:[#allocation11 + $0x160] ss:$8 sps:$4 sm:$0xff]   ;;  %v4094_v41 = vld [vmem:[#allocation11 + $0x184] ss:$8 sps:$4 sm:$0xff]  }
 0x27d   : > { %v4263_v55 = vpop.eup %4262  ;;  %4280 = vrcp.f32 %v1954_v34  ;;  %3015 = vmatmul.mubr.bf16.vlgmr.msra.gmra.mrb[0].mxu0 %v2170_v58  ;;  %v2122_v11 = vmul.f32 %v4261_v47, %v5379_v56 }
 0x27e   : > { %v4265_v35 = vpop.eup %4264  ;;  %4282 = vrcp.f32 %v1955_v54  ;;  %3056 = vmatpush1.bf16.msra.mxu0 %v4068_v62  ;;  %v2123_v31 = vmul.f32 %v4263_v55, %v5382_v27  ;;  %v4091_v62 = vld [vmem:[#allocation11 + $0x174] ss:$8 sps:$4 sm:$0xff]  }
 0x27f   : > { %v4267_v8 = vpop.eup %4266  ;;  %v2130_v12 = vmul.f32 %v4265_v35, %v5386_v26  ;;  %3057 = vmatprep.subr.bf16.mxu0 %v4073_v9  ;;  %v4079_v26 = vld [vmem:[#allocation11 + $0x134] ss:$8 sps:$4 sm:$0xff]  }
 0x280   : > { %v4269_v18 = vpop.eup %4268  ;;  %v2131_v42 = vmul.f32 %v4267_v8, %v5390_v28  ;;  %v4077_v28 = vld [vmem:[#allocation11 + $0x130] ss:$8 sps:$4 sm:$0xff]   ;;  %v4092_v8 = vld [vmem:[#allocation11 + $0x180] ss:$8 sps:$4 sm:$0xff]  }
 0x281   : > { %v4271_v17 = vpop.eup %4270  ;;  %v1962_v20 = vadd.f32 1.0, %v4269_v18  ;;  %v2178_v22 = vpack.c.bf16 %v2130_v12, %v2122_v11 }
 0x282   : > { %v4273_v23 = vpop.eup %4272  ;;  %v1963_v24 = vadd.f32 1.0, %v4271_v17  ;;  %3058 = vmatpush1.bf16.msra.mxu0 %v4071_v44  ;;  %v2179_v25 = vpack.c.bf16 %v2131_v42, %v2123_v31  ;;  %v4095_v42 = vld [vmem:[#allocation11 + $0x190] ss:$8 sps:$4 sm:$0xff]  }
 0x283   : > { %v4275_v61 = vpop.eup %4274  ;;  %4284 = vrcp.f32 %v1962_v20  ;;  %v1970_v56 = vadd.f32 1.0, %v4273_v23  ;;  %3059 = vmatprep.subr.bf16.mxu0 %v4076_v13  ;;  %v4097_v13 = vld [vmem:[#allocation11 + $0x194] ss:$8 sps:$4 sm:$0xff]   ;;  %v4100_v20 = vld [vmem:[#allocation11 + $0x1a4] ss:$8 sps:$4 sm:$0xff]  }
 0x284   : > { %4286 = vrcp.f32 %v1963_v24  ;;  %v1971_v30 = vadd.f32 1.0, %v4275_v61  ;;  %3024 = vmatprep.mubr.bf16.mxu0 %v2179_v25 }
 0x285   : > { %v4277_v2 = vpop.eup %4276  ;;  %4288 = vrcp.f32 %v1970_v56  ;;  %3025 = vmatmul.mubr.bf16.gmra.mrb[4].mxu0 %v2178_v22 }
 0x286   : > { %v4279_v27 = vpop.eup %4278  ;;  %4290 = vrcp.f32 %v1971_v30  ;;  %3060 = vmatpush1.bf16.msra.mxu0 %v4074_v60  ;;  %v2138_v1 = vmul.f32 %v4277_v2, %v5395_v53 }
 0x287   : > { %v4281_v39 = vpop.eup %4280  ;;  %3061 = vmatprep.subr.bf16.mxu0 %v4079_v26  ;;  %v2139_v33 = vmul.f32 %v4279_v27, %v5398_v10  ;;  %v4098_v26 = vld [vmem:[#allocation11 + $0x1a0] ss:$8 sps:$4 sm:$0xff]   ;;  %v4103_v27 = vld [vmem:[#allocation11 + $0x1b4] ss:$8 sps:$4 sm:$0xff]  }
 0x288   : > { %v4283_v7 = vpop.eup %4282  ;;  %v2146_v45 = vmul.f32 %v4281_v39, %v5402_v14 }
 0x289   : > { %v2147_v59 = vmul.f32 %v4283_v7, %v5406_v19  ;;  %v4088_v19 = vld [vmem:[#allocation11 + $0x164] ss:$8 sps:$4 sm:$0xff]   ;;  %v4101_v7 = vld [vmem:[#allocation11 + $0x1b0] ss:$8 sps:$4 sm:$0xff]  }
 0x28a   : > { %3062 = vmatpush1.bf16.msra.mxu0 %v4077_v28  ;;  %v2186_v49 = vpack.c.bf16 %v2146_v45, %v2138_v1 }
 0x28b   : > { %v2187_v51 = vpack.c.bf16 %v2147_v59, %v2139_v33  ;;  %3063 = vmatprep.subr.bf16.mxu0 %v4082_v6  ;;  %v4106_v59 = vld [vmem:[#allocation11 + $0x1c4] ss:$8 sps:$4 sm:$0xff]  }
 0x28d   : > { %v4285_v43 = vpop.eup %4284  ;;  %3034 = vmatprep.mubr.bf16.mxu0 %v2187_v51 }
 0x28e   : > { %v4287_v37 = vpop.eup %4286  ;;  %3035 = vmatmul.mubr.bf16.gmra.mrb[8].mxu0 %v2186_v49  ;;  %v2154_v14 = vmul.f32 %v4285_v43, %v5411_v29  ;;  %v5445_v29 = vrot.slane %v5349_v4, %v760_v16 }
 0x28f   : > { %v4289_v38 = vpop.eup %4288  ;;  %3064 = vmatpush1.bf16.msra.mxu0 %v4080_v52  ;;  %v2155_v46 = vmul.f32 %v4287_v37, %v5414_v32  ;;  %v4089_v32 = vld [vmem:[#allocation11 + $0x170] ss:$8 sps:$4 sm:$0xff]  }
 0x290   : > { %v4291_v53 = vpop.eup %4290  ;;  %v2162_v10 = vmul.f32 %v4289_v38, %v5418_v3  ;;  %3065 = vmatprep.subr.bf16.mxu0 %v4085_v5  ;;  %v5448_v3 = vrot.slane %v5349_v4, %v764_v40 }
 0x291   : > { %v2163_v57 = vmul.f32 %v4291_v53, %v5422_v48 }
 0x292   : > { %v2194_v58 = vpack.c.bf16 %v2162_v10, %v2154_v14 }
 0x293   : > { %3066 = vmatpush1.bf16.msra.mxu0 %v4083_v15  ;;  %v2195_v21 = vpack.c.bf16 %v2163_v57, %v2155_v46  ;;  %v4104_v46 = vld [vmem:[#allocation11 + $0x1c0] ss:$8 sps:$4 sm:$0xff]  }
 0x294   : > { %3067 = vmatprep.subr.bf16.mxu0 %v4088_v19 }
 0x295   : > { %3044 = vmatprep.mubr.bf16.mxu0 %v2195_v21 }
 0x296   : > { %3045 = vmatmul.mubr.bf16.gmra.mrb[12].mxu0 %v2194_v58  ;;  %v4109_v58 = vld [vmem:[#allocation11 + $0x1d4] ss:$8 sps:$4 sm:$0xff]  }
 0x297   : > { %3068 = vmatpush1.bf16.msra.mxu0 %v4086_v36 }
 0x298   : > { %v1537_v48 = vpop.f32.mrb[16].mxu1  ;;  %3069 = vmatprep.subr.bf16.mxu0 %v4091_v62  ;;  %v4107_v62 = vld [vmem:[#allocation11 + $0x1d0] ss:$8 sps:$4 sm:$0xff]  }
 0x299   : > { %v5451_v34 = vadd.f32 %v1537_v48, %v5445_v29  ;;  %v1539_v9 = vpop.f32.mrb[17].mxu1 }
 0x29a   : > { %v5454_v47 = vadd.f32 %v1539_v9, %v5448_v3  ;;  %v1541_v54 = vpop.f32.mrb[18].mxu1  ;;  %v4112_v9 = vld [vmem:[#allocation11 + $0x1e4] ss:$8 sps:$4 sm:$0xff]  }
 0x29b   : > { %v3627_v55 = vmul.f32 -1.442695, %v5451_v34  ;;  %v5458_v35 = vadd.f32 %v1541_v54, %v5445_v29  ;;  %3070 = vmatpush1.bf16.msra.mxu0 %v4089_v32  ;;  %v1543_v44 = vpop.f32.mrb[19].mxu1 }
 0x29c   : > { %v3628_v11 = vmul.f32 -1.442695, %v5454_v47  ;;  %v5462_v12 = vadd.f32 %v1543_v44, %v5448_v3  ;;  %3071 = vmatprep.subr.bf16.mxu0 %v4094_v41 }
 0x29d   : > { %4292 = vpow2.f32 %v3627_v55  ;;  %v3635_v18 = vmul.f32 -1.442695, %v5458_v35 }
 0x29e   : > { %4294 = vpow2.f32 %v3628_v11  ;;  %v3636_v31 = vmul.f32 -1.442695, %v5462_v12 }
 0x29f   : > { %4296 = vpow2.f32 %v3635_v18  ;;  %3072 = vmatpush1.bf16.msra.mxu0 %v4092_v8 }
 0x2a0   : > { %4298 = vpow2.f32 %v3636_v31  ;;  %v1547_v17 = vpop.f32.mrb[20].mxu1  ;;  %3073 = vmatprep.subr.bf16.mxu0 %v4097_v13 }
 0x2a1   : > { %v5467_v22 = vadd.f32 %v1547_v17, %v5445_v29  ;;  %v1549_v23 = vpop.f32.mrb[21].mxu1 }
 0x2a2   : > { %v5470_v24 = vadd.f32 %v1549_v23, %v5448_v3  ;;  %v1551_v25 = vpop.f32.mrb[22].mxu1 }
 0x2a3   : > { %v3643_v60 = vmul.f32 -1.442695, %v5467_v22  ;;  %v5474_v61 = vadd.f32 %v1551_v25, %v5445_v29  ;;  %3074 = vmatpush1.bf16.msra.mxu0 %v4095_v42  ;;  %v1553_v56 = vpop.f32.mrb[23].mxu1  ;;  %v4110_v25 = vld [vmem:[#allocation11 + $0x1e0] ss:$8 sps:$4 sm:$0xff]  }
 0x2a4   : > { %v3644_v30 = vmul.f32 -1.442695, %v5470_v24  ;;  %v5478_v2 = vadd.f32 %v1553_v56, %v5448_v3  ;;  %3075 = vmatprep.subr.bf16.mxu0 %v4100_v20 }
 0x2a5   : > { %4300 = vpow2.f32 %v3643_v60  ;;  %v3651_v28 = vmul.f32 -1.442695, %v5474_v61 }
 0x2a6   : > { %4302 = vpow2.f32 %v3644_v30  ;;  %v3652_v39 = vmul.f32 -1.442695, %v5478_v2  ;;  %v4115_v30 = vld [vmem:[#allocation11 + $0x1f4] ss:$8 sps:$4 sm:$0xff]  }
 0x2a7   : > { %v4293_v6 = vpop.eup %4292  ;;  %4304 = vpow2.f32 %v3651_v28  ;;  %3076 = vmatpush1.bf16.msra.mxu0 %v4098_v26 }
 0x2a8   : > { %v4295_v1 = vpop.eup %4294  ;;  %v1916_v45 = vadd.f32 1.0, %v4293_v6  ;;  %4306 = vpow2.f32 %v3652_v39  ;;  %v1557_v33 = vpop.f32.mrb[24].mxu1  ;;  %3077 = vmatprep.subr.bf16.mxu0 %v4103_v27 }
 0x2a9   : > { %v4297_v49 = vpop.eup %4296  ;;  %v1917_v51 = vadd.f32 1.0, %v4295_v1  ;;  %v5483_v52 = vadd.f32 %v1557_v33, %v5445_v29  ;;  %v1559_v5 = vpop.f32.mrb[25].mxu1 }
 0x2aa   : > { %v4299_v43 = vpop.eup %4298  ;;  %4308 = vrcp.f32 %v1916_v45  ;;  %v1924_v37 = vadd.f32 1.0, %v4297_v49  ;;  %v5486_v38 = vadd.f32 %v1559_v5, %v5448_v3  ;;  %v1561_v15 = vpop.f32.mrb[26].mxu1  ;;  %v4113_v45 = vld [vmem:[#allocation11 + $0x1f0] ss:$8 sps:$4 sm:$0xff]   ;;  %v4118_v49 = vld [vmem:[#allocation11 + $0x204] ss:$8 sps:$4 sm:$0xff]  }
 0x2ab   : > { %4310 = vrcp.f32 %v1917_v51  ;;  %v1925_v53 = vadd.f32 1.0, %v4299_v43  ;;  %v3659_v14 = vmul.f32 -1.442695, %v5483_v52  ;;  %v5490_v10 = vadd.f32 %v1561_v15, %v5445_v29  ;;  %3078 = vmatpush1.bf16.msra.mxu0 %v4101_v7  ;;  %v1563_v19 = vpop.f32.mrb[27].mxu1 }
 0x2ac   : > { %4312 = vrcp.f32 %v1924_v37  ;;  %v3660_v57 = vmul.f32 -1.442695, %v5486_v38  ;;  %v5494_v16 = vadd.f32 %v1563_v19, %v5448_v3  ;;  %3079 = vmatprep.subr.bf16.mxu0 %v4106_v59 }
 0x2ad   : > { %4314 = vrcp.f32 %v1925_v53  ;;  %v3667_v40 = vmul.f32 -1.442695, %v5490_v10 }
 0x2ae   : > { %4316 = vpow2.f32 %v3659_v14  ;;  %v3668_v21 = vmul.f32 -1.442695, %v5494_v16  ;;  %v4116_v14 = vld [vmem:[#allocation11 + $0x200] ss:$8 sps:$4 sm:$0xff]  }
 0x2af   : > { %v4301_v36 = vpop.eup %4300  ;;  %4318 = vpow2.f32 %v3660_v57  ;;  %3080 = vmatpush1.bf16.msra.mxu0 %v4104_v46 }
 0x2b0   : > { %v4303_v32 = vpop.eup %4302  ;;  %v1932_v48 = vadd.f32 1.0, %v4301_v36  ;;  %4320 = vpow2.f32 %v3667_v40  ;;  %v1567_v41 = vpop.f32.mrb[28].mxu1  ;;  %3081 = vmatprep.subr.bf16.mxu0 %v4109_v58  ;;  %v4119_v36 = vld [vmem:[#allocation11 + $0x210] ss:$8 sps:$4 sm:$0xff]  }
 0x2b1   : > { %v4305_v54 = vpop.eup %4304  ;;  %v1933_v55 = vadd.f32 1.0, %v4303_v32  ;;  %4322 = vpow2.f32 %v3668_v21  ;;  %v5499_v44 = vadd.f32 %v1567_v41, %v5445_v29  ;;  %v1569_v8 = vpop.f32.mrb[29].mxu1  ;;  %v4124_v41 = vld [vmem:[#allocation11 + $0x224] ss:$8 sps:$4 sm:$0xff]  }
 0x2b2   : > { %v4307_v11 = vpop.eup %4306  ;;  %4324 = vrcp.f32 %v1932_v48  ;;  %v1940_v13 = vadd.f32 1.0, %v4305_v54  ;;  %v5502_v18 = vadd.f32 %v1569_v8, %v5448_v3  ;;  %v1571_v31 = vpop.f32.mrb[30].mxu1 }
 0x2b3   : > { %4326 = vrcp.f32 %v1933_v55  ;;  %v1941_v42 = vadd.f32 1.0, %v4307_v11  ;;  %v3675_v17 = vmul.f32 -1.442695, %v5499_v44  ;;  %v5506_v20 = vadd.f32 %v1571_v31, %v5445_v29  ;;  %3082 = vmatpush1.bf16.msra.mxu0 %v4107_v62  ;;  %v1573_v23 = vpop.f32.mrb[31].mxu1 }
 0x2b4   : > { %v4309_v60 = vpop.eup %4308  ;;  %4328 = vrcp.f32 %v1940_v13  ;;  %v3676_v56 = vmul.f32 -1.442695, %v5502_v18  ;;  %v5510_v26 = vadd.f32 %v1573_v23, %v5448_v3  ;;  %3083 = vmatprep.subr.bf16.mxu0 %v4112_v9 }
 0x2b5   : > { %v4311_v27 = vpop.eup %4310  ;;  %4330 = vrcp.f32 %v1941_v42  ;;  %v3683_v28 = vmul.f32 -1.442695, %v5506_v20  ;;  %v2108_v7 = vmul.f32 %v4309_v60, %v5451_v34 }
 0x2b6   : > { %v4313_v39 = vpop.eup %4312  ;;  %4332 = vpow2.f32 %v3675_v17  ;;  %v3684_v29 = vmul.f32 -1.442695, %v5510_v26  ;;  %v2109_v33 = vmul.f32 %v4311_v27, %v5454_v47  ;;  %v4130_v27 = vld [vmem:[#allocation11 + $0x244] ss:$8 sps:$4 sm:$0xff]  }
 0x2b7   : > { %v4315_v6 = vpop.eup %4314  ;;  %v2116_v1 = vmul.f32 %v4313_v39, %v5458_v35  ;;  %4334 = vpow2.f32 %v3676_v56  ;;  %3084 = vmatpush1.bf16.msra.mxu0 %v4110_v25  ;;  %v4125_v25 = vld [vmem:[#allocation11 + $0x230] ss:$8 sps:$4 sm:$0xff]  }
 0x2b8   : > { %v4317_v3 = vpop.eup %4316  ;;  %v2117_v59 = vmul.f32 %v4315_v6, %v5462_v12  ;;  %4336 = vpow2.f32 %v3683_v28  ;;  %3085 = vmatprep.subr.bf16.mxu0 %v4115_v30  ;;  %v4121_v12 = vld [vmem:[#allocation11 + $0x214] ss:$8 sps:$4 sm:$0xff]  }
 0x2b9   : > { %v4319_v51 = vpop.eup %4318  ;;  %v2172_v5 = vpack.c.bf16 %v2116_v1, %v2108_v7  ;;  %v1948_v43 = vadd.f32 1.0, %v4317_v3  ;;  %4338 = vpow2.f32 %v3684_v29  ;;  %v4128_v7 = vld [vmem:[#allocation11 + $0x240] ss:$8 sps:$4 sm:$0xff]   ;;  %v4133_v1 = vld [vmem:[#allocation11 + $0x254] ss:$8 sps:$4 sm:$0xff]  }
 0x2ba   : > { %v4321_v37 = vpop.eup %4320  ;;  %v1949_v15 = vadd.f32 1.0, %v4319_v51  ;;  %v2173_v34 = vpack.c.bf16 %v2117_v59, %v2109_v33 }
 0x2bb   : > { %v4323_v53 = vpop.eup %4322  ;;  %4340 = vrcp.f32 %v1948_v43  ;;  %v1956_v35 = vadd.f32 1.0, %v4321_v37  ;;  %3086 = vmatpush1.bf16.msra.mxu0 %v4113_v45  ;;  %v772_v37 = vsub.s32 5, %v5203_v50 }
 0x2bc   : > { %v4325_v19 = vpop.eup %4324  ;;  %4342 = vrcp.f32 %v1949_v15  ;;  %v1957_v47 = vadd.f32 1.0, %v4323_v53  ;;  %3087 = vmatprep.mubr.bf16.mxu0 %v2173_v34  ;;  %3128 = vmatprep.subr.bf16.mxu0 %v4118_v49  ;;  %v4134_v34 = vld [vmem:[#allocation11 + $0x260] ss:$8 sps:$4 sm:$0xff]   ;;  %v4139_v53 = vld [vmem:[#allocation11 + $0x274] ss:$8 sps:$4 sm:$0xff]  }
 0x2bd   : > { %v4327_v46 = vpop.eup %4326  ;;  %4344 = vrcp.f32 %v1956_v35  ;;  %v2124_v40 = vmul.f32 %v4325_v19, %v5467_v22  ;;  %v4142_v35 = vld [vmem:[#allocation11 + $0x284] ss:$8 sps:$4 sm:$0xff]  }
 0x2be   : > { %v4329_v57 = vpop.eup %4328  ;;  %4346 = vrcp.f32 %v1957_v47  ;;  %3088 = vmatmul.mubr.bf16.vlgmr.msra.gmra.mrb[0].mxu0 %v2172_v5  ;;  %v2125_v32 = vmul.f32 %v4327_v46, %v5470_v24  ;;  %v4127_v24 = vld [vmem:[#allocation11 + $0x234] ss:$8 sps:$4 sm:$0xff]   ;;  %v768_v5 = vsub.s32 4, %v5203_v50 }
 0x2bf   : > { %v4331_v58 = vpop.eup %4330  ;;  %v2132_v21 = vmul.f32 %v4329_v57, %v5474_v61  ;;  %3129 = vmatpush1.bf16.msra.mxu0 %v4116_v14  ;;  %v4122_v61 = vld [vmem:[#allocation11 + $0x220] ss:$8 sps:$4 sm:$0xff]  }
 0x2c0   : > { %v4333_v62 = vpop.eup %4332  ;;  %v2133_v48 = vmul.f32 %v4331_v58, %v5478_v2  ;;  %3130 = vmatprep.subr.bf16.mxu0 %v4121_v12  ;;  %v4140_v58 = vld [vmem:[#allocation11 + $0x280] ss:$8 sps:$4 sm:$0xff]  }
 0x2c1   : > { %v4335_v9 = vpop.eup %4334  ;;  %v1964_v54 = vadd.f32 1.0, %v4333_v62  ;;  %v2180_v55 = vpack.c.bf16 %v2132_v21, %v2124_v40 }
 0x2c2   : > { %v4337_v8 = vpop.eup %4336  ;;  %v1965_v11 = vadd.f32 1.0, %v4335_v9  ;;  %v2181_v13 = vpack.c.bf16 %v2133_v48, %v2125_v32  ;;  %v4143_v48 = vld [vmem:[#allocation11 + $0x290] ss:$8 sps:$4 sm:$0xff]   ;;  %v4148_v9 = vld [vmem:[#allocation11 + $0x2a4] ss:$8 sps:$4 sm:$0xff]  }
 0x2c3   : > { %v4339_v31 = vpop.eup %4338  ;;  %4348 = vrcp.f32 %v1964_v54  ;;  %v1972_v22 = vadd.f32 1.0, %v4337_v8  ;;  %3131 = vmatpush1.bf16.msra.mxu0 %v4119_v36  ;;  %v4145_v36 = vld [vmem:[#allocation11 + $0x294] ss:$8 sps:$4 sm:$0xff]  }
 0x2c4   : > { %4350 = vrcp.f32 %v1965_v11  ;;  %v1973_v42 = vadd.f32 1.0, %v4339_v31  ;;  %3097 = vmatprep.mubr.bf16.mxu0 %v2181_v13  ;;  %3132 = vmatprep.subr.bf16.mxu0 %v4124_v41 }
 0x2c5   : > { %v4341_v17 = vpop.eup %4340  ;;  %4352 = vrcp.f32 %v1972_v22 }
 0x2c6   : > { %v4343_v2 = vpop.eup %4342  ;;  %4354 = vrcp.f32 %v1973_v42  ;;  %3098 = vmatmul.mubr.bf16.gmra.mrb[4].mxu0 %v2180_v55  ;;  %v2140_v56 = vmul.f32 %v4341_v17, %v5483_v52  ;;  %v4131_v52 = vld [vmem:[#allocation11 + $0x250] ss:$8 sps:$4 sm:$0xff]   ;;  %v4151_v17 = vld [vmem:[#allocation11 + $0x2b4] ss:$8 sps:$4 sm:$0xff]  }
 0x2c7   : > { %v4345_v23 = vpop.eup %4344  ;;  %3133 = vmatpush1.bf16.msra.mxu0 %v4122_v61  ;;  %v2141_v28 = vmul.f32 %v4343_v2, %v5486_v38  ;;  %v4146_v61 = vld [vmem:[#allocation11 + $0x2a0] ss:$8 sps:$4 sm:$0xff]  }
 0x2c8   : > { %v4347_v60 = vpop.eup %4346  ;;  %v2148_v30 = vmul.f32 %v4345_v23, %v5490_v10  ;;  %3134 = vmatprep.subr.bf16.mxu0 %v4127_v24 }
 0x2c9   : > { %v2149_v39 = vmul.f32 %v4347_v60, %v5494_v16  ;;  %v4136_v16 = vld [vmem:[#allocation11 + $0x264] ss:$8 sps:$4 sm:$0xff]   ;;  %v4149_v60 = vld [vmem:[#allocation11 + $0x2b0] ss:$8 sps:$4 sm:$0xff]  }
 0x2ca   : > { %v2188_v29 = vpack.c.bf16 %v2148_v30, %v2140_v56 }
 0x2cb   : > { %3135 = vmatpush1.bf16.msra.mxu0 %v4125_v25  ;;  %v2189_v6 = vpack.c.bf16 %v2149_v39, %v2141_v28  ;;  %v4154_v28 = vld [vmem:[#allocation11 + $0x2c4] ss:$8 sps:$4 sm:$0xff]  }
 0x2cc   : > { %3136 = vmatprep.subr.bf16.mxu0 %v4130_v27 }
 0x2cd   : > { %v4349_v45 = vpop.eup %4348  ;;  %3107 = vmatprep.mubr.bf16.mxu0 %v2189_v6 }
 0x2ce   : > { %v4351_v3 = vpop.eup %4350  ;;  %3108 = vmatmul.mubr.bf16.gmra.mrb[8].mxu0 %v2188_v29  ;;  %v2156_v59 = vmul.f32 %v4349_v45, %v5499_v44  ;;  %v5533_v44 = vrot.slane %v5349_v4, %v768_v5  ;;  %v4157_v5 = vld [vmem:[#allocation11 + $0x2d4] ss:$8 sps:$4 sm:$0xff]  }
 0x2cf   : > { %v4353_v33 = vpop.eup %4352  ;;  %3137 = vmatpush1.bf16.msra.mxu0 %v4128_v7  ;;  %v2157_v49 = vmul.f32 %v4351_v3, %v5502_v18  ;;  %v4137_v18 = vld [vmem:[#allocation11 + $0x270] ss:$8 sps:$4 sm:$0xff]  }
 0x2d0   : > { %v4355_v10 = vpop.eup %4354  ;;  %v2164_v38 = vmul.f32 %v4353_v33, %v5506_v20  ;;  %3138 = vmatprep.subr.bf16.mxu0 %v4133_v1  ;;  %v5536_v20 = vrot.slane %v5349_v4, %v772_v37 }
 0x2d1   : > { %v2165_v51 = vmul.f32 %v4355_v10, %v5510_v26 }
 0x2d2   : > { %v2196_v43 = vpack.c.bf16 %v2164_v38, %v2156_v59 }
 0x2d3   : > { %3139 = vmatpush1.bf16.msra.mxu0 %v4131_v52  ;;  %v2197_v15 = vpack.c.bf16 %v2165_v51, %v2157_v49 }
 0x2d4   : > { %3140 = vmatprep.subr.bf16.mxu0 %v4136_v16  ;;  %v4152_v16 = vld [vmem:[#allocation11 + $0x2c0] ss:$8 sps:$4 sm:$0xff]  }
 0x2d5   : > { %3117 = vmatprep.mubr.bf16.mxu0 %v2197_v15 }
 0x2d6   : > { %3118 = vmatmul.mubr.bf16.gmra.mrb[12].mxu0 %v2196_v43 }
 0x2d7   : > { %3141 = vmatpush1.bf16.msra.mxu0 %v4134_v34  ;;  %v4155_v34 = vld [vmem:[#allocation11 + $0x2d0] ss:$8 sps:$4 sm:$0xff]  }
 0x2d8   : > { %v1610_v26 = vpop.f32.mrb[32].mxu1  ;;  %3142 = vmatprep.subr.bf16.mxu0 %v4139_v53 }
 0x2d9   : > { %v5539_v14 = vadd.f32 %v1610_v26, %v5533_v44  ;;  %v1612_v19 = vpop.f32.mrb[33].mxu1 }
 0x2da   : > { %v5542_v47 = vadd.f32 %v1612_v19, %v5536_v20  ;;  %v1614_v12 = vpop.f32.mrb[34].mxu1 }
 0x2db   : > { %v3629_v46 = vmul.f32 -1.442695, %v5539_v14  ;;  %v5546_v57 = vadd.f32 %v1614_v12, %v5533_v44  ;;  %3143 = vmatpush1.bf16.msra.mxu0 %v4137_v18  ;;  %v1616_v4 = vpop.f32.mrb[35].mxu1 }
 0x2dc   : > { %v3630_v40 = vmul.f32 -1.442695, %v5542_v47  ;;  %v5550_v21 = vadd.f32 %v1616_v4, %v5536_v20  ;;  %3144 = vmatprep.subr.bf16.mxu0 %v4142_v35  ;;  %v4160_v35 = vld [vmem:[#allocation11 + $0x2e4] ss:$8 sps:$4 sm:$0xff]  }
 0x2dd   : > { %4356 = vpow2.f32 %v3629_v46  ;;  %v3637_v62 = vmul.f32 -1.442695, %v5546_v57 }
 0x2de   : > { %4358 = vpow2.f32 %v3630_v40  ;;  %v3638_v32 = vmul.f32 -1.442695, %v5550_v21 }
 0x2df   : > { %4360 = vpow2.f32 %v3637_v62  ;;  %3145 = vmatpush1.bf16.msra.mxu0 %v4140_v58 }
 0x2e0   : > { %4362 = vpow2.f32 %v3638_v32  ;;  %v1620_v41 = vpop.f32.mrb[36].mxu1  ;;  %3146 = vmatprep.subr.bf16.mxu0 %v4145_v36 }
 0x2e1   : > { %v5555_v54 = vadd.f32 %v1620_v41, %v5533_v44  ;;  %v1622_v55 = vpop.f32.mrb[37].mxu1 }
 0x2e2   : > { %v5558_v8 = vadd.f32 %v1622_v55, %v5536_v20  ;;  %v1624_v11 = vpop.f32.mrb[38].mxu1  ;;  %v4158_v55 = vld [vmem:[#allocation11 + $0x2e0] ss:$8 sps:$4 sm:$0xff]  }
 0x2e3   : > { %v3645_v13 = vmul.f32 -1.442695, %v5555_v54  ;;  %v5562_v31 = vadd.f32 %v1624_v11, %v5533_v44  ;;  %3147 = vmatpush1.bf16.msra.mxu0 %v4143_v48  ;;  %v1626_v22 = vpop.f32.mrb[39].mxu1 }
 0x2e4   : > { %v3646_v42 = vmul.f32 -1.442695, %v5558_v8  ;;  %v5566_v24 = vadd.f32 %v1626_v22, %v5536_v20  ;;  %3148 = vmatprep.subr.bf16.mxu0 %v4148_v9 }
 0x2e5   : > { %4364 = vpow2.f32 %v3645_v13  ;;  %v3653_v2 = vmul.f32 -1.442695, %v5562_v31 }
 0x2e6   : > { %4366 = vpow2.f32 %v3646_v42  ;;  %v3654_v23 = vmul.f32 -1.442695, %v5566_v24 }
 0x2e7   : > { %v4357_v25 = vpop.eup %4356  ;;  %4368 = vpow2.f32 %v3653_v2  ;;  %3149 = vmatpush1.bf16.msra.mxu0 %v4146_v61  ;;  %v4163_v61 = vld [vmem:[#allocation11 + $0x2f4] ss:$8 sps:$4 sm:$0xff]  }
 0x2e8   : > { %v4359_v56 = vpop.eup %4358  ;;  %v1918_v30 = vadd.f32 1.0, %v4357_v25  ;;  %4370 = vpow2.f32 %v3654_v23  ;;  %v1630_v27 = vpop.f32.mrb[40].mxu1  ;;  %3150 = vmatprep.subr.bf16.mxu0 %v4151_v17 }
 0x2e9   : > { %v4361_v39 = vpop.eup %4360  ;;  %v1919_v29 = vadd.f32 1.0, %v4359_v56  ;;  %v5571_v6 = vadd.f32 %v1630_v27, %v5533_v44  ;;  %v1632_v7 = vpop.f32.mrb[41].mxu1  ;;  %v4161_v56 = vld [vmem:[#allocation11 + $0x2f0] ss:$8 sps:$4 sm:$0xff]  }
 0x2ea   : > { %v4363_v1 = vpop.eup %4362  ;;  %4372 = vrcp.f32 %v1918_v30  ;;  %v1926_v45 = vadd.f32 1.0, %v4361_v39  ;;  %v5574_v3 = vadd.f32 %v1632_v7, %v5536_v20  ;;  %v1634_v33 = vpop.f32.mrb[42].mxu1 }
 0x2eb   : > { %4374 = vrcp.f32 %v1919_v29  ;;  %v1927_v52 = vadd.f32 1.0, %v4363_v1  ;;  %v3661_v10 = vmul.f32 -1.442695, %v5571_v6  ;;  %v5578_v59 = vadd.f32 %v1634_v33, %v5533_v44  ;;  %3151 = vmatpush1.bf16.msra.mxu0 %v4149_v60  ;;  %v1636_v38 = vpop.f32.mrb[43].mxu1 }
 0x2ec   : > { %4376 = vrcp.f32 %v1926_v45  ;;  %v3662_v49 = vmul.f32 -1.442695, %v5574_v3  ;;  %v5582_v51 = vadd.f32 %v1636_v38, %v5536_v20  ;;  %3152 = vmatprep.subr.bf16.mxu0 %v4154_v28  ;;  %v4166_v28 = vld [vmem:[#allocation11 + $0x304] ss:$8 sps:$4 sm:$0xff]  }
 0x2ed   : > { %4378 = vrcp.f32 %v1927_v52  ;;  %v3669_v43 = vmul.f32 -1.442695, %v5578_v59  ;;  %v4164_v52 = vld [vmem:[#allocation11 + $0x300] ss:$8 sps:$4 sm:$0xff]  }
 0x2ee   : > { %4380 = vpow2.f32 %v3661_v10  ;;  %v3670_v37 = vmul.f32 -1.442695, %v5582_v51 }
 0x2ef   : > { %v4365_v15 = vpop.eup %4364  ;;  %4382 = vpow2.f32 %v3662_v49  ;;  %3153 = vmatpush1.bf16.msra.mxu0 %v4152_v16 }
 0x2f0   : > { %v4367_v53 = vpop.eup %4366  ;;  %v1934_v18 = vadd.f32 1.0, %v4365_v15  ;;  %4384 = vpow2.f32 %v3669_v43  ;;  %v1640_v26 = vpop.f32.mrb[44].mxu1  ;;  %3154 = vmatprep.subr.bf16.mxu0 %v4157_v5 }
 0x2f1   : > { %v4369_v19 = vpop.eup %4368  ;;  %v1935_v12 = vadd.f32 1.0, %v4367_v53  ;;  %4386 = vpow2.f32 %v3670_v37  ;;  %v5587_v46 = vadd.f32 %v1640_v26, %v5533_v44  ;;  %v1642_v4 = vpop.f32.mrb[45].mxu1  ;;  %v4167_v37 = vld [vmem:[#allocation11 + $0x310] ss:$8 sps:$4 sm:$0xff]  }
 0x2f2   : > { %v4371_v58 = vpop.eup %4370  ;;  %4388 = vrcp.f32 %v1934_v18  ;;  %v1942_v40 = vadd.f32 1.0, %v4369_v19  ;;  %v5590_v36 = vadd.f32 %v1642_v4, %v5536_v20  ;;  %v1644_v62 = vpop.f32.mrb[46].mxu1  ;;  %v4172_v18 = vld [vmem:[#allocation11 + $0x324] ss:$8 sps:$4 sm:$0xff]  }
 0x2f3   : > { %4390 = vrcp.f32 %v1935_v12  ;;  %v1943_v32 = vadd.f32 1.0, %v4371_v58  ;;  %v3677_v48 = vmul.f32 -1.442695, %v5587_v46  ;;  %v5594_v41 = vadd.f32 %v1644_v62, %v5533_v44  ;;  %3155 = vmatpush1.bf16.msra.mxu0 %v4155_v34  ;;  %v1646_v9 = vpop.f32.mrb[47].mxu1 }
 0x2f4   : > { %v4373_v11 = vpop.eup %4372  ;;  %4392 = vrcp.f32 %v1942_v40  ;;  %v3678_v13 = vmul.f32 -1.442695, %v5590_v36  ;;  %v5598_v22 = vadd.f32 %v1646_v9, %v5536_v20  ;;  %3156 = vmatprep.subr.bf16.mxu0 %v4160_v35  ;;  %v4173_v9 = vld [vmem:[#allocation11 + $0x330] ss:$8 sps:$4 sm:$0xff]  }
 0x2f5   : > { %v4375_v42 = vpop.eup %4374  ;;  %4394 = vrcp.f32 %v1943_v32  ;;  %v3685_v17 = vmul.f32 -1.442695, %v5594_v41  ;;  %v2110_v25 = vmul.f32 %v4373_v11, %v5539_v14 }
 0x2f6   : > { %v4377_v2 = vpop.eup %4376  ;;  %4396 = vpow2.f32 %v3677_v48  ;;  %v3686_v44 = vmul.f32 -1.442695, %v5598_v22  ;;  %v2111_v30 = vmul.f32 %v4375_v42, %v5542_v47 }
 0x2f7   : > { %v4379_v23 = vpop.eup %4378  ;;  %v2118_v60 = vmul.f32 %v4377_v2, %v5546_v57  ;;  %4398 = vpow2.f32 %v3678_v13  ;;  %3157 = vmatpush1.bf16.msra.mxu0 %v4158_v55 }
 0x2f8   : > { %v4381_v20 = vpop.eup %4380  ;;  %v2119_v27 = vmul.f32 %v4379_v23, %v5550_v21  ;;  %4400 = vpow2.f32 %v3685_v17  ;;  %3158 = vmatprep.subr.bf16.mxu0 %v4163_v61  ;;  %v4169_v21 = vld [vmem:[#allocation11 + $0x314] ss:$8 sps:$4 sm:$0xff]   ;;  %v4178_v61 = vld [vmem:[#allocation11 + $0x344] ss:$8 sps:$4 sm:$0xff]   ;;  %v4176_v23 = vld [vmem:[#allocation11 + $0x340] ss:$8 sps:$4 sm:$0xff]  }
 0x2f9   : > { %v4383_v39 = vpop.eup %4382  ;;  %v2174_v29 = vpack.c.bf16 %v2118_v60, %v2110_v25  ;;  %v1950_v7 = vadd.f32 1.0, %v4381_v20  ;;  %4402 = vpow2.f32 %v3686_v44  ;;  %v4181_v25 = vld [vmem:[#allocation11 + $0x354] ss:$8 sps:$4 sm:$0xff]  }
 0x2fa   : > { %v4385_v1 = vpop.eup %4384  ;;  %v1951_v45 = vadd.f32 1.0, %v4383_v39  ;;  %v2175_v14 = vpack.c.bf16 %v2119_v27, %v2111_v30  ;;  %v776_v39 = vsub.s32 6, %v5203_v50 }
 0x2fb   : > { %v4387_v33 = vpop.eup %4386  ;;  %4404 = vrcp.f32 %v1950_v7  ;;  %v1958_v57 = vadd.f32 1.0, %v4385_v1  ;;  %3159 = vmatpush1.bf16.msra.mxu0 %v4161_v56  ;;  %v780_v7 = vsub.s32 7, %v5203_v50 }
 0x2fc   : > { %v4389_v10 = vpop.eup %4388  ;;  %4406 = vrcp.f32 %v1951_v45  ;;  %v1959_v47 = vadd.f32 1.0, %v4387_v33  ;;  %3160 = vmatprep.mubr.bf16.mxu0 %v2175_v14  ;;  %3201 = vmatprep.subr.bf16.mxu0 %v4166_v28  ;;  %v4182_v45 = vld [vmem:[#allocation11 + $0x360] ss:$8 sps:$4 sm:$0xff]   ;;  %v4187_v14 = vld [vmem:[#allocation11 + $0x374] ss:$8 sps:$4 sm:$0xff]  }
 0x2fd   : > { %v4391_v38 = vpop.eup %4390  ;;  %4408 = vrcp.f32 %v1958_v57  ;;  %v2126_v5 = vmul.f32 %v4389_v10, %v5555_v54  ;;  %v4190_v57 = vld [vmem:[#allocation11 + $0x384] ss:$8 sps:$4 sm:$0xff]  }
 0x2fe   : > { %v4393_v16 = vpop.eup %4392  ;;  %4410 = vrcp.f32 %v1959_v47  ;;  %3161 = vmatmul.mubr.bf16.vlgmr.msra.gmra.mrb[0].mxu0 %v2174_v29  ;;  %v2127_v34 = vmul.f32 %v4391_v38, %v5558_v8  ;;  %v4175_v8 = vld [vmem:[#allocation11 + $0x334] ss:$8 sps:$4 sm:$0xff]  }
 0x2ff   : > { %v4395_v49 = vpop.eup %4394  ;;  %v2134_v43 = vmul.f32 %v4393_v16, %v5562_v31  ;;  %3202 = vmatpush1.bf16.msra.mxu0 %v4164_v52  ;;  %v4170_v31 = vld [vmem:[#allocation11 + $0x320] ss:$8 sps:$4 sm:$0xff]  }
 0x300   : > { %v4397_v15 = vpop.eup %4396  ;;  %v2135_v53 = vmul.f32 %v4395_v49, %v5566_v24  ;;  %3203 = vmatprep.subr.bf16.mxu0 %v4169_v21  ;;  %v4188_v49 = vld [vmem:[#allocation11 + $0x380] ss:$8 sps:$4 sm:$0xff]  }
 0x301   : > { %v4399_v26 = vpop.eup %4398  ;;  %v1966_v35 = vadd.f32 1.0, %v4397_v15  ;;  %v2182_v19 = vpack.c.bf16 %v2134_v43, %v2126_v5 }
 0x302   : > { %v4401_v12 = vpop.eup %4400  ;;  %v1967_v4 = vadd.f32 1.0, %v4399_v26  ;;  %v2183_v58 = vpack.c.bf16 %v2135_v53, %v2127_v34  ;;  %v4191_v53 = vld [vmem:[#allocation11 + $0x390] ss:$8 sps:$4 sm:$0xff]   ;;  %v4196_v26 = vld [vmem:[#allocation11 + $0x3a4] ss:$8 sps:$4 sm:$0xff]  }
 0x303   : > { %v4403_v40 = vpop.eup %4402  ;;  %4412 = vrcp.f32 %v1966_v35  ;;  %v1974_v54 = vadd.f32 1.0, %v4401_v12  ;;  %3204 = vmatpush1.bf16.msra.mxu0 %v4167_v37  ;;  %v4193_v37 = vld [vmem:[#allocation11 + $0x394] ss:$8 sps:$4 sm:$0xff]  }
 0x304   : > { %4414 = vrcp.f32 %v1967_v4  ;;  %v1975_v62 = vadd.f32 1.0, %v4403_v40  ;;  %3170 = vmatprep.mubr.bf16.mxu0 %v2183_v58  ;;  %3205 = vmatprep.subr.bf16.mxu0 %v4172_v18 }
 0x305   : > { %v4405_v32 = vpop.eup %4404  ;;  %4416 = vrcp.f32 %v1974_v54 }
 0x306   : > { %v4407_v24 = vpop.eup %4406  ;;  %4418 = vrcp.f32 %v1975_v62  ;;  %3171 = vmatmul.mubr.bf16.gmra.mrb[4].mxu0 %v2182_v19  ;;  %v2142_v11 = vmul.f32 %v4405_v32, %v5571_v6  ;;  %v4179_v6 = vld [vmem:[#allocation11 + $0x350] ss:$8 sps:$4 sm:$0xff]   ;;  %v4199_v32 = vld [vmem:[#allocation11 + $0x3b4] ss:$8 sps:$4 sm:$0xff]  }
 0x307   : > { %v4409_v48 = vpop.eup %4408  ;;  %3206 = vmatpush1.bf16.msra.mxu0 %v4170_v31  ;;  %v2143_v42 = vmul.f32 %v4407_v24, %v5574_v3  ;;  %v4194_v31 = vld [vmem:[#allocation11 + $0x3a0] ss:$8 sps:$4 sm:$0xff]  }
 0x308   : > { %v4411_v55 = vpop.eup %4410  ;;  %v2150_v13 = vmul.f32 %v4409_v48, %v5578_v59  ;;  %3207 = vmatprep.subr.bf16.mxu0 %v4175_v8 }
 0x309   : > { %v2151_v17 = vmul.f32 %v4411_v55, %v5582_v51  ;;  %v4184_v51 = vld [vmem:[#allocation11 + $0x364] ss:$8 sps:$4 sm:$0xff]   ;;  %v4197_v55 = vld [vmem:[#allocation11 + $0x3b0] ss:$8 sps:$4 sm:$0xff]  }
 0x30a   : > { %v2190_v2 = vpack.c.bf16 %v2150_v13, %v2142_v11 }
 0x30b   : > { %3208 = vmatpush1.bf16.msra.mxu0 %v4173_v9  ;;  %v2191_v44 = vpack.c.bf16 %v2151_v17, %v2143_v42  ;;  %v4202_v42 = vld [vmem:[#allocation11 + $0x3c4] ss:$8 sps:$4 sm:$0xff]  }
 0x30c   : > { %3209 = vmatprep.subr.bf16.mxu0 %v4178_v61 }
 0x30d   : > { %v4413_v60 = vpop.eup %4412  ;;  %3180 = vmatprep.mubr.bf16.mxu0 %v2191_v44 }
 0x30e   : > { %v4415_v56 = vpop.eup %4414  ;;  %3181 = vmatmul.mubr.bf16.gmra.mrb[8].mxu0 %v2190_v2  ;;  %v2158_v30 = vmul.f32 %v4413_v60, %v5587_v46  ;;  %v4484_v46 = vld [vmem:[#allocation10] sm:$0xff] }
 0x30f   : > { %v4417_v20 = vpop.eup %4416  ;;  %3210 = vmatpush1.bf16.msra.mxu0 %v4176_v23  ;;  %v2159_v27 = vmul.f32 %v4415_v56, %v5590_v36  ;;  %v5620_v33 = vrot.slane %v4484_v46, %v776_v39  ;;  %v4185_v36 = vld [vmem:[#allocation11 + $0x370] ss:$8 sps:$4 sm:$0xff]   ;;  %v4205_v39 = vld [vmem:[#allocation11 + $0x3d4] ss:$8 sps:$4 sm:$0xff]  }
 0x310   : > { %v4419_v59 = vpop.eup %4418  ;;  %v2166_v3 = vmul.f32 %v4417_v20, %v5594_v41  ;;  %3211 = vmatprep.subr.bf16.mxu0 %v4181_v25  ;;  %v5622_v41 = vrot.slane %v4484_v46, %v780_v7 }
 0x311   : > { %v2167_v28 = vmul.f32 %v4419_v59, %v5598_v22 }
 0x312   : > { %v2198_v29 = vpack.c.bf16 %v2166_v3, %v2158_v30 }
 0x313   : > { %3212 = vmatpush1.bf16.msra.mxu0 %v4179_v6  ;;  %v2199_v1 = vpack.c.bf16 %v2167_v28, %v2159_v27 }
 0x314   : > { %3213 = vmatprep.subr.bf16.mxu0 %v4184_v51  ;;  %v4200_v51 = vld [vmem:[#allocation11 + $0x3c0] ss:$8 sps:$4 sm:$0xff]  }
 0x315   : > { %3190 = vmatprep.mubr.bf16.mxu0 %v2199_v1 }
 0x316   : > { %3191 = vmatmul.mubr.bf16.gmra.mrb[12].mxu0 %v2198_v29 }
 0x317   : > { %3214 = vmatpush1.bf16.msra.mxu0 %v4182_v45  ;;  %v4203_v45 = vld [vmem:[#allocation11 + $0x3d0] ss:$8 sps:$4 sm:$0xff]  }
 0x318   : > { %v1683_v22 = vpop.f32.mrb[48].mxu1  ;;  %3215 = vmatprep.subr.bf16.mxu0 %v4187_v14 }
 0x319   : > { %v5625_v52 = vadd.f32 %v1683_v22, %v5620_v33  ;;  %v1685_v50 = vpop.f32.mrb[49].mxu1  ;;  %v4208_v22 = vld [vmem:[#allocation11 + $0x3e4] ss:$8 sps:$4 sm:$0xff]  }
 0x31a   : > { %v5628_v10 = vadd.f32 %v1685_v50, %v5622_v41  ;;  %v1687_v47 = vpop.f32.mrb[50].mxu1 }
 0x31b   : > { %v3631_v21 = vmul.f32 -1.442695, %v5625_v52  ;;  %v5632_v38 = vadd.f32 %v1687_v47, %v5620_v33  ;;  %3216 = vmatpush1.bf16.msra.mxu0 %v4185_v36  ;;  %v1689_v16 = vpop.f32.mrb[51].mxu1 }
 0x31c   : > { %v3632_v5 = vmul.f32 -1.442695, %v5628_v10  ;;  %v5636_v43 = vadd.f32 %v1689_v16, %v5622_v41  ;;  %3217 = vmatprep.subr.bf16.mxu0 %v4190_v57 }
 0x31d   : > { %4420 = vpow2.f32 %v3631_v21  ;;  %v3639_v15 = vmul.f32 -1.442695, %v5632_v38 }
 0x31e   : > { %4422 = vpow2.f32 %v3632_v5  ;;  %v3640_v34 = vmul.f32 -1.442695, %v5636_v43 }
 0x31f   : > { %4424 = vpow2.f32 %v3639_v15  ;;  %3218 = vmatpush1.bf16.msra.mxu0 %v4188_v49 }
 0x320   : > { %4426 = vpow2.f32 %v3640_v34  ;;  %v1693_v18 = vpop.f32.mrb[52].mxu1  ;;  %3219 = vmatprep.subr.bf16.mxu0 %v4193_v37 }
 0x321   : > { %v5641_v35 = vadd.f32 %v1693_v18, %v5620_v33  ;;  %v1695_v19 = vpop.f32.mrb[53].mxu1 }
 0x322   : > { %v5644_v12 = vadd.f32 %v1695_v19, %v5622_v41  ;;  %v1697_v4 = vpop.f32.mrb[54].mxu1 }
 0x323   : > { %v3647_v58 = vmul.f32 -1.442695, %v5641_v35  ;;  %v5648_v40 = vadd.f32 %v1697_v4, %v5620_v33  ;;  %3220 = vmatpush1.bf16.msra.mxu0 %v4191_v53  ;;  %v1699_v54 = vpop.f32.mrb[55].mxu1 }
 0x324   : > { %v3648_v62 = vmul.f32 -1.442695, %v5644_v12  ;;  %v5652_v8 = vadd.f32 %v1699_v54, %v5622_v41  ;;  %3221 = vmatprep.subr.bf16.mxu0 %v4196_v26  ;;  %v4206_v26 = vld [vmem:[#allocation11 + $0x3e0] ss:$8 sps:$4 sm:$0xff]   ;;  %v4211_v54 = vld [vmem:[#allocation11 + $0x3f4] ss:$8 sps:$4 sm:$0xff]  }
 0x325   : > { %4428 = vpow2.f32 %v3647_v58  ;;  %v3655_v24 = vmul.f32 -1.442695, %v5648_v40 }
 0x326   : > { %4430 = vpow2.f32 %v3648_v62  ;;  %v3656_v48 = vmul.f32 -1.442695, %v5652_v8 }
 0x327   : > { %v4421_v9 = vpop.eup %4420  ;;  %4432 = vpow2.f32 %v3655_v24  ;;  %3222 = vmatpush1.bf16.msra.mxu0 %v4194_v31 }
 0x328   : > { %v4423_v11 = vpop.eup %4422  ;;  %v1920_v13 = vadd.f32 1.0, %v4421_v9  ;;  %4434 = vpow2.f32 %v3656_v48  ;;  %v1703_v61 = vpop.f32.mrb[56].mxu1  ;;  %3223 = vmatprep.subr.bf16.mxu0 %v4199_v32 }
 0x329   : > { %v4425_v17 = vpop.eup %4424  ;;  %v1921_v2 = vadd.f32 1.0, %v4423_v11  ;;  %v5657_v44 = vadd.f32 %v1703_v61, %v5620_v33  ;;  %v1705_v23 = vpop.f32.mrb[57].mxu1 }
 0x32a   : > { %v4427_v25 = vpop.eup %4426  ;;  %4436 = vrcp.f32 %v1920_v13  ;;  %v1928_v60 = vadd.f32 1.0, %v4425_v17  ;;  %v5660_v56 = vadd.f32 %v1705_v23, %v5622_v41  ;;  %v1707_v20 = vpop.f32.mrb[58].mxu1 }
 0x32b   : > { %4438 = vrcp.f32 %v1921_v2  ;;  %v1929_v6 = vadd.f32 1.0, %v4427_v25  ;;  %v3663_v59 = vmul.f32 -1.442695, %v5657_v44  ;;  %v5664_v30 = vadd.f32 %v1707_v20, %v5620_v33  ;;  %3224 = vmatpush1.bf16.msra.mxu0 %v4197_v55  ;;  %v1709_v3 = vpop.f32.mrb[59].mxu1  ;;  %v4209_v55 = vld [vmem:[#allocation11 + $0x3f0] ss:$8 sps:$4 sm:$0xff]  }
 0x32c   : > { %4440 = vrcp.f32 %v1928_v60  ;;  %v3664_v27 = vmul.f32 -1.442695, %v5660_v56  ;;  %v5668_v28 = vadd.f32 %v1709_v3, %v5622_v41  ;;  %3225 = vmatprep.subr.bf16.mxu0 %v4202_v42 }
 0x32d   : > { %4442 = vrcp.f32 %v1929_v6  ;;  %v3671_v29 = vmul.f32 -1.442695, %v5664_v30 }
 0x32e   : > { %4444 = vpow2.f32 %v3663_v59  ;;  %v3672_v7 = vmul.f32 -1.442695, %v5668_v28 }
 0x32f   : > { %v4429_v1 = vpop.eup %4428  ;;  %4446 = vpow2.f32 %v3664_v27  ;;  %3226 = vmatpush1.bf16.msra.mxu0 %v4200_v51 }
 0x330   : > { %v4431_v14 = vpop.eup %4430  ;;  %v1936_v46 = vadd.f32 1.0, %v4429_v1  ;;  %4448 = vpow2.f32 %v3671_v29  ;;  %v1713_v36 = vpop.f32.mrb[60].mxu1  ;;  %3227 = vmatprep.subr.bf16.mxu0 %v4205_v39 }
 0x331   : > { %v4433_v57 = vpop.eup %4432  ;;  %v1937_v50 = vadd.f32 1.0, %v4431_v14  ;;  %4450 = vpow2.f32 %v3672_v7  ;;  %v5673_v47 = vadd.f32 %v1713_v36, %v5620_v33  ;;  %v1715_v21 = vpop.f32.mrb[61].mxu1 }
 0x332   : > { %v4435_v16 = vpop.eup %4434  ;;  %4452 = vrcp.f32 %v1936_v46  ;;  %v1944_v49 = vadd.f32 1.0, %v4433_v57  ;;  %v5676_v5 = vadd.f32 %v1715_v21, %v5622_v41  ;;  %v1717_v37 = vpop.f32.mrb[62].mxu1 }
 0x333   : > { %4454 = vrcp.f32 %v1937_v50  ;;  %v1945_v15 = vadd.f32 1.0, %v4435_v16  ;;  %v3679_v34 = vmul.f32 -1.442695, %v5673_v47  ;;  %v5680_v53 = vadd.f32 %v1717_v37, %v5620_v33  ;;  %3228 = vmatpush1.bf16.msra.mxu0 %v4203_v45  ;;  %v1719_v18 = vpop.f32.mrb[63].mxu1 }
 0x334   : > { %v4437_v19 = vpop.eup %4436  ;;  %4456 = vrcp.f32 %v1944_v49  ;;  %v3680_v4 = vmul.f32 -1.442695, %v5676_v5  ;;  %v5684_v58 = vadd.f32 %v1719_v18, %v5622_v41  ;;  %3229 = vmatprep.subr.bf16.mxu0 %v4208_v22 }
 0x335   : > { %v4439_v31 = vpop.eup %4438  ;;  %4458 = vrcp.f32 %v1945_v15  ;;  %v3687_v62 = vmul.f32 -1.442695, %v5680_v53  ;;  %v2112_v48 = vmul.f32 %v4437_v19, %v5625_v52 }
 0x336   : > { %v4441_v32 = vpop.eup %4440  ;;  %4460 = vpow2.f32 %v3679_v34  ;;  %v3688_v33 = vmul.f32 -1.442695, %v5684_v58  ;;  %v2113_v11 = vmul.f32 %v4439_v31, %v5628_v10 }
 0x337   : > { %v4443_v24 = vpop.eup %4442  ;;  %v2120_v9 = vmul.f32 %v4441_v32, %v5632_v38  ;;  %4462 = vpow2.f32 %v3680_v4  ;;  %3230 = vmatpush1.bf16.msra.mxu0 %v4206_v26 }
 0x338   : > { %v4445_v41 = vpop.eup %4444  ;;  %v2121_v13 = vmul.f32 %v4443_v24, %v5636_v43  ;;  %4464 = vpow2.f32 %v3687_v62  ;;  %3231 = vmatprep.subr.bf16.mxu0 %v4211_v54 }
 0x339   : > { %v4447_v61 = vpop.eup %4446  ;;  %v2176_v42 = vpack.c.bf16 %v2120_v9, %v2112_v48  ;;  %v1952_v17 = vadd.f32 1.0, %v4445_v41  ;;  %4466 = vpow2.f32 %v3688_v33 }
 0x33a   : > { %v4449_v2 = vpop.eup %4448  ;;  %v1953_v23 = vadd.f32 1.0, %v4447_v61  ;;  %v2177_v25 = vpack.c.bf16 %v2121_v13, %v2113_v11 }
 0x33b   : > { %v4451_v52 = vpop.eup %4450  ;;  %4468 = vrcp.f32 %v1952_v17  ;;  %v1960_v38 = vadd.f32 1.0, %v4449_v2  ;;  %3232 = vmatpush1.bf16.msra.mxu0 %v4209_v55 }
 0x33c   : > { %v4453_v60 = vpop.eup %4452  ;;  %4470 = vrcp.f32 %v1953_v23  ;;  %v1961_v20 = vadd.f32 1.0, %v4451_v52  ;;  %3233 = vmatprep.mubr.bf16.mxu0 %v2177_v25 }
 0x33d   : > { %v4455_v10 = vpop.eup %4454  ;;  %4472 = vrcp.f32 %v1960_v38  ;;  %v2128_v59 = vmul.f32 %v4453_v60, %v5641_v35 }
 0x33e   : > { %v4457_v43 = vpop.eup %4456  ;;  %4474 = vrcp.f32 %v1961_v20  ;;  %3234 = vmatmul.mubr.bf16.vlgmr.msra.gmra.mrb[0].mxu0 %v2176_v42  ;;  %v2129_v27 = vmul.f32 %v4455_v10, %v5644_v12 }
 0x33f   : > { %v4459_v6 = vpop.eup %4458  ;;  %v2136_v3 = vmul.f32 %v4457_v43, %v5648_v40 }
 0x340   : > { %v4461_v51 = vpop.eup %4460  ;;  %v2137_v39 = vmul.f32 %v4459_v6, %v5652_v8 }
 0x341   : > { %v4463_v29 = vpop.eup %4462  ;;  %v1968_v7 = vadd.f32 1.0, %v4461_v51  ;;  %v2184_v1 = vpack.c.bf16 %v2136_v3, %v2128_v59 }
 0x342   : > { %v4465_v45 = vpop.eup %4464  ;;  %v1969_v14 = vadd.f32 1.0, %v4463_v29  ;;  %v2185_v46 = vpack.c.bf16 %v2137_v39, %v2129_v27 }
 0x343   : > { %v4467_v36 = vpop.eup %4466  ;;  %4476 = vrcp.f32 %v1968_v7  ;;  %v1976_v22 = vadd.f32 1.0, %v4465_v45 }
 0x344   : > { %4478 = vrcp.f32 %v1969_v14  ;;  %v1977_v57 = vadd.f32 1.0, %v4467_v36  ;;  %3243 = vmatprep.mubr.bf16.mxu0 %v2185_v46 }
 0x345   : > { %v4469_v35 = vpop.eup %4468  ;;  %4480 = vrcp.f32 %v1976_v22 }
 0x346   : > { %v4471_v40 = vpop.eup %4470  ;;  %4482 = vrcp.f32 %v1977_v57  ;;  %3244 = vmatmul.mubr.bf16.gmra.mrb[4].mxu0 %v2184_v1  ;;  %v2144_v8 = vmul.f32 %v4469_v35, %v5657_v44 }
 0x347   : > { %v4473_v12 = vpop.eup %4472  ;;  %v2145_v16 = vmul.f32 %v4471_v40, %v5660_v56 }
 0x348   : > { %v4475_v50 = vpop.eup %4474  ;;  %v2152_v21 = vmul.f32 %v4473_v12, %v5664_v30 }
 0x349   : > { %v2153_v49 = vmul.f32 %v4475_v50, %v5668_v28  ;;  %v2330_v28 = vld [vmem:[#allocation13] sm:$0x3] }
 0x34a   : > { %v2192_v37 = vpack.c.bf16 %v2152_v21, %v2144_v8  ;;  %v2335_v62 = vrot.slane %v2330_v28, %v5211_v0  ;;  %v2339_v32 = vrot.slane %v2330_v28, %v5208_v63 }
 0x34b   : > { %v2193_v15 = vpack.c.bf16 %v2153_v49, %v2145_v16 }
 0x34d   : > { %v4477_v34 = vpop.eup %4476  ;;  %3253 = vmatprep.mubr.bf16.mxu0 %v2193_v15 }
 0x34e   : > { %v4479_v18 = vpop.eup %4478  ;;  %3254 = vmatmul.mubr.bf16.gmra.mrb[8].mxu0 %v2192_v37  ;;  %v2160_v4 = vmul.f32 %v4477_v34, %v5673_v47 }
 0x34f   : > { %v4481_v26 = vpop.eup %4480  ;;  %v2161_v44 = vmul.f32 %v4479_v18, %v5676_v5 }
 0x350   : > { %v4483_v19 = vpop.eup %4482  ;;  %v2168_v54 = vmul.f32 %v4481_v26, %v5680_v53 }
 0x351   : > { %v2169_v30 = vmul.f32 %v4483_v19, %v5684_v58 }
 0x352   : > { %v2200_v31 = vpack.c.bf16 %v2168_v54, %v2160_v4 }
 0x353   : > { %v2201_v56 = vpack.c.bf16 %v2169_v30, %v2161_v44 }
 0x355   : > { %3263 = vmatprep.mubr.bf16.mxu0 %v2201_v56 }
 0x356   : > { %3264 = vmatmul.mubr.bf16.gmra.mrb[12].mxu0 %v2200_v31 }
 0x411   : > { %v3235_v33 = vpop.f32.mrb[0].mxu0 }
 0x412   : > { %v3843_v24 = vadd.f32 %v3235_v33, %v2335_v62  ;;  %v3237_v48 = vpop.f32.mrb[1].mxu0 }
 0x413   : > { %v3844_v47 = vadd.f32 %v3237_v48, %v2339_v32  ;;  %v3239_v9 = vpop.f32.mrb[2].mxu0 }
 0x414   : > { %v3845_v53 = vadd.f32 %v3239_v9, %v2335_v62  ;;  %v3241_v55 = vpop.f32.mrb[3].mxu0 }
 0x415   : > { %v3833_v5 = vpack.c.bf16 %v3844_v47, %v3843_v24  ;;  %v3846_v41 = vadd.f32 %v3241_v55, %v2339_v32 }
 0x417   : > { %3322 = vst [vmem:[%s5708_s8] sm:$0xff] %v3833_v5  ;;  %v3834_v0 = vpack.c.bf16 %v3846_v41, %v3845_v53 }
 0x419   : > { %3323 = vst [vmem:[%s5708_s8 + $0x8] sm:$0xff] %v3834_v0  ;;  %v3245_v63 = vpop.f32.mrb[4].mxu0 }
 0x41a   : > { %v3847_v58 = vadd.f32 %v3245_v63, %v2335_v62  ;;  %v3247_v11 = vpop.f32.mrb[5].mxu0 }
 0x41b   : > { %v3848_v13 = vadd.f32 %v3247_v11, %v2339_v32  ;;  %v3249_v61 = vpop.f32.mrb[6].mxu0 }
 0x41c   : > { %v3849_v42 = vadd.f32 %v3249_v61, %v2335_v62  ;;  %v3251_v17 = vpop.f32.mrb[7].mxu0 }
 0x41d   : > { %v3835_v2 = vpack.c.bf16 %v3848_v13, %v3847_v58  ;;  %v3850_v23 = vadd.f32 %v3251_v17, %v2339_v32 }
 0x41f   : > { %3324 = vst [vmem:[%s5708_s8 + $0x10] sm:$0xff] %v3835_v2  ;;  %v3836_v25 = vpack.c.bf16 %v3850_v23, %v3849_v42 }
 0x421   : > { %3325 = vst [vmem:[%s5708_s8 + $0x18] sm:$0xff] %v3836_v25  ;;  %v3255_v52 = vpop.f32.mrb[8].mxu0 }
 0x422   : > { %v3851_v38 = vadd.f32 %v3255_v52, %v2335_v62  ;;  %v3257_v60 = vpop.f32.mrb[9].mxu0 }
 0x423   : > { %v3852_v20 = vadd.f32 %v3257_v60, %v2339_v32  ;;  %v3259_v10 = vpop.f32.mrb[10].mxu0 }
 0x424   : > { %v3853_v43 = vadd.f32 %v3259_v10, %v2335_v62  ;;  %v3261_v6 = vpop.f32.mrb[11].mxu0 }
 0x425   : > { %v3837_v59 = vpack.c.bf16 %v3852_v20, %v3851_v38  ;;  %v3854_v3 = vadd.f32 %v3261_v6, %v2339_v32 }
 0x427   : > { %3326 = vst [vmem:[%s5708_s8 + $0x20] sm:$0xff] %v3837_v59  ;;  %v3838_v51 = vpack.c.bf16 %v3854_v3, %v3853_v43 }
 0x429   : > { %3327 = vst [vmem:[%s5708_s8 + $0x28] sm:$0xff] %v3838_v51  ;;  %v3265_v27 = vpop.f32.mrb[12].mxu0 }
 0x42a   : > { %v3855_v39 = vadd.f32 %v3265_v27, %v2335_v62  ;;  %v3267_v29 = vpop.f32.mrb[13].mxu0 }
 0x42b   : > { %v3856_v7 = vadd.f32 %v3267_v29, %v2339_v32  ;;  %v3269_v1 = vpop.f32.mrb[14].mxu0 }
 0x42c   : > { %v3857_v45 = vadd.f32 %v3269_v1, %v2335_v62  ;;  %v3271_v14 = vpop.f32.mrb[15].mxu0 }
 0x42d   : > { %v3839_v46 = vpack.c.bf16 %v3856_v7, %v3855_v39  ;;  %v3858_v36 = vadd.f32 %v3271_v14, %v2339_v32 }
 0x42f   : > { %3328 = vst [vmem:[%s5708_s8 + $0x30] sm:$0xff] %v3839_v46  ;;  %v3840_v22 = vpack.c.bf16 %v3858_v36, %v3857_v45 }
 0x431   : > { %3329 = vst [vmem:[%s5708_s8 + $0x38] sm:$0xff] %v3840_v22 }
 0x432   : > { %4696 = shalt.err (!%p4693_p8)
}
 0x433   : > { %s4697_s9 = scalar_lea.hbm %s5723_s19, 1024  ;;  %s4701_s23 = scalar_lea.hbm %s5776_s7, 2048 }
 0x434   : > { %p4698_p13 = scmp.ne.s32.totalorder %s5723_s19, %s4697_s9  ;;  %p4702_p9 = scmp.lt.u32.totalorder %s5723_s19, %s5776_s7 }
 0x435   : > { %p4703_p10 = scmp.lt.u32.totalorder %s4701_s23, %s4697_s9  ;;  %p4705_p6 = scmp.lt.u32.totalorder %s4697_s9, %s5723_s19 }
 0x436   : > { %p4699_p0 = pnand %p4698_p13, %p5798_p12 }
 0x437   : > { %p4704_p11 = por %p4703_p10, %p4702_p9 }
 0x438   : > { %p4700_p2 = pneg %p4699_p0 }
 0x439   : > { %p4706_p5 = por %p4705_p6, %p4704_p11 }
 0x43b   : > { %p4707_p7 = pnand %p4706_p5, %p4700_p2 }
 0x43d   : > { %4710 = shalt.err (!%p4707_p7)
}
 0x43e   : > { %s4775_s20 = smov 128   ;;  %s4776_s16 = smov 8  }
 0x43f   : > { %3933 = dma.vmem_to_hbm [thread:$0]  (%p5798_p12), %s5718_s18, 1024, %s5723_s19, %s3331_s10, %s4775_s20, %s4775_s20, %s4776_s16  }
 0x440 PF: > { %s3360_s1 = sand.u32 1, %s4749_s24   ;;  %p5799_p4 = scmp.ne.s32.totalorder %s5789_s28, 0 }
 0x441   : > { %p5800_p1 = scmp.ge.s32.totalorder %s4761_s27, 2  ;;  %s3361_s30 = scalar_lea.sflag [#allocation4], %s3360_s1 }
 0x443   : > { %p3959_p3 = pnand %p5800_p1, %p5799_p4 }
 0x445   : > { %4744 = dma.done.wait (!%p3959_p3), %s3361_s30, 1024  }
 0x446   : > { %4746 = vsyncadd (!%p3959_p3), %s3361_s30, 4294966272  ;;  %p23_p8 = scmp.ge.s32.totalorder %s4989_s11, 4   ;;  %s5801_s24 = smov %s4753_s25 }
 0x447   : > { %s5802_s25 = smov %s4757_s26  ;;  %s5803_s26 = smov %s5000_s13 }
 0x448   : > { %s5804_s27 = smov %s4989_s11  ;;  %25 = sbr.rel (!%p23_p8) target bundleno = 10 (0xa), region = 117 }
 0x44f   :  { %3366 = vsyncpa [#allocation3], 1 }
 0x450   :  { %3368 = vsyncpa [#allocation3 + $0x1], 1 }
 0x451   :  { %3369 = vsyncpa [#allocation6], 1 }
 0x452   :  { %3370 = vsyncpa [#allocation9], 1 }
 0x453   :  { %3371 = vsyncpa [#allocation12], 1 }
 0x454   :  { %3372 = vsyncpa [#allocation4], 1 }
 0x455   :  { %3374 = vsyncpa [#allocation4 + $0x1], 1 }

// kernel: tpu_custom_call.1
= control target key start
LH: loop header
LB: loop body
LE: loop exit
PB: predicated region body
PF: predicated region fallthrough
CT: control target
= control target key end

     0   :  { %s5769_s0 = inlined_call_operand.hbm [shape: bf16[128,256], index: 0, kind: input, shape index: {}]   ;;  %s5770_s1 = inlined_call_operand.hbm [shape: f32[1,256], index: 1, kind: input, shape index: {}]   ;;  %s5771_s2 = inlined_call_operand.hbm [shape: f32[1,256], index: 2, kind: input, shape index: {}]   ;;  %s5772_s3 = inlined_call_operand.hbm [shape: bf16[256,1024], index: 3, kind: input, shape index: {}]   ;;  %s5773_s4 = inlined_call_operand.hbm [shape: f32[1,1024], index: 4, kind: input, shape index: {}]   ;;  %s5774_s5 = inlined_call_operand.hbm [shape: bf16[1024,256], index: 5, kind: input, shape index: {}]   ;;  %s5775_s6 = inlined_call_operand.hbm [shape: f32[1,256], index: 6, kind: input, shape index: {}]   ;;  %s5776_s7 = inlined_call_operand.hbm [shape: bf16[128,256], index: 7, kind: output, shape index: {}]  }
   0x1   :  { %5780 = sst [smem:[#allocation20_spill]] %s5770_s1 }
   0x2   :  { %12 = vsyncpa [#allocation3], 0 }
   0x3   :  { %14 = vsyncpa [#allocation3 + $0x1], 0 }
   0x4   :  { %15 = vsyncpa [#allocation6], 0 }
   0x5   :  { %16 = vsyncpa [#allocation9], 0 }
   0x6   :  { %17 = vsyncpa [#allocation12], 0 }
   0x7   :  { %18 = vsyncpa [#allocation4], 0 }
   0x8   :  { %20 = vsyncpa [#allocation4 + $0x1], 0  ;;  %s4817_s24 = smov 0   ;;  %s4819_s25 = smov 0  }
   0x9   :  { %s4821_s26 = smov 0   ;;  %s4823_s27 = smov 0  }
   0xa LB: > { %s4763_s28 = smov [#allocation5]   ;;  %s4838_s30 = sadd.s32 4294967295, %s4761_s27   ;;  %s4761_s27 = sphi %s4823_s27, %s5804_s27   ;;  %s4757_s26 = sphi %s4821_s26, %s5803_s26   ;;  %s4753_s25 = sphi %s4819_s25, %s5802_s25   ;;  %s4749_s24 = sphi %s4817_s24, %s5801_s24  }
   0xb   : > { %s222_s29 = sshll.u32 %s4763_s28, 4  ;;  %p3476_p0 = scmp.ge.s32.totalorder %s4761_s27, 1  ;;  %s223_s29 = int_to_ptr.vmem [resolvable:$true] %s222_s29 }
   0xc   : > { %p5777_p1 = scmp.eq.s32.totalorder %s4838_s30, 0  ;;  %p209_p2 = scmp.lt.s32.totalorder %s4761_s27, 3 }
   0xd   : > { %s4764_s9 = smov [#allocation8]   ;;  %s4765_s12 = smov [#allocation11]  }
   0xe   : > { %p4843_p3 = pnand %p3476_p0, %p209_p2  ;;  %s243_s10 = sshll.u32 %s4764_s9, 4  ;;  %s4850_s10 = int_to_ptr.vmem [resolvable:$true] %s243_s10 }
   0xf   : > { %s267_s13 = sshll.u32 %s4765_s12, 4  ;;  %s5783_s1 = sld [smem:[#allocation20_spill]]  ;;  %s4858_s13 = int_to_ptr.vmem [resolvable:$true] %s267_s13 }
  0x10   : > { %s5781_s8 = scalar_select %p4843_p3, 1, 0 }
  0x11   : > { %p3935_p5 = pneg %p4843_p3 }
  0x13   : > { %p4854_p6 = pnand %p3935_p5, %p5777_p1 }
  0x15   : > { %s4485_s16 = scalar_lea.hbm %s5783_s1, 32  ;;  %p4868_p8 = pneg %p4854_p6 }
  0x16   : > { %p4486_p7 = scmp.ne.s32.totalorder %s5783_s1, %s4485_s16  ;;  %p4492_p11 = scmp.lt.u32.totalorder %s4485_s16, %s5783_s1 }
  0x18   : > { %p4488_p9 = pnand %p4868_p8, %p4486_p7 }
  0x1a   : > { %p4489_p10 = pneg %p4488_p9 }
  0x1c   : > { %p4494_p12 = pnand %p4492_p11, %p4489_p10 }
  0x1e   : > { %4497 = shalt.err (!%p4494_p12)
}
  0x1f   : > { %s4498_s22 = scalar_lea.vmem %s223_s29, 32  ;;  %p4506_p5 = scmp.lt.s32.totalorder %s223_s29, %s223_s29 }
  0x20   : > { %p4499_p13 = scmp.ne.s32.totalorder %s223_s29, %s4498_s22  ;;  %p4507_p4 = scmp.lt.s32.totalorder %s4498_s22, %s4498_s22 }
  0x22   : > { %p4501_p0 = pnand %p4499_p13, %p4868_p8  ;;  %p4508_p1 = por %p4507_p4, %p4506_p5 }
  0x24   : > { %p4502_p2 = pneg %p4501_p0 }
  0x26   : > { %p4509_p3 = pnand %p4508_p1, %p4502_p2 }
  0x28   : > { %4512 = shalt.err (!%p4509_p3)
}
  0x29   : > { %3938 = dma.hbm_to_vmem [thread:$0]  (!%p4854_p6), %s5783_s1, 32, %s223_s29, [#allocation6]  }
  0x2a   : > { %s4513_s14 = scalar_lea.hbm %s5772_s3, 16384 }
  0x2b   : > { %p4514_p7 = scmp.ne.s32.totalorder %s5772_s3, %s4513_s14  ;;  %p4520_p1 = scmp.lt.u32.totalorder %s4513_s14, %s5772_s3 }
  0x2d   : > { %p4516_p9 = pnand %p4514_p7, %p4868_p8 }
  0x2f   : > { %p4517_p4 = pneg %p4516_p9 }
  0x31   : > { %p4522_p3 = pnand %p4520_p1, %p4517_p4 }
  0x33   : > { %4525 = shalt.err (!%p4522_p3)
}
  0x34   : > { %s4526_s29 = scalar_lea.vmem %s4850_s10, 16384  ;;  %p4534_p13 = scmp.lt.s32.totalorder %s4850_s10, %s4850_s10 }
  0x35   : > { %p4527_p10 = scmp.ne.s32.totalorder %s4850_s10, %s4526_s29  ;;  %p4535_p0 = scmp.lt.s32.totalorder %s4526_s29, %s4526_s29 }
  0x37   : > { %p4529_p11 = pnand %p4527_p10, %p4868_p8  ;;  %p4536_p2 = por %p4535_p0, %p4534_p13 }
  0x39   : > { %p4530_p12 = pneg %p4529_p11 }
  0x3b   : > { %p4537_p5 = pnand %p4536_p2, %p4530_p12 }
  0x3d   : > { %4540 = shalt.err (!%p4537_p5)
}
  0x3e   : > { %s4766_s20 = smov 512   ;;  %s4767_s21 = smov 32  }
  0x3f   : > { %3944 = dma.hbm_to_vmem [thread:$0]  (!%p4854_p6), %s5772_s3, 16384, %s4850_s10, [#allocation9], %s4766_s20, %s4766_s20, %s4767_s21  }
  0x40   : > { %s4541_s12 = scalar_lea.hbm %s5774_s5, 16384 }
  0x41   : > { %p4542_p7 = scmp.ne.s32.totalorder %s5774_s5, %s4541_s12  ;;  %p4548_p1 = scmp.lt.u32.totalorder %s4541_s12, %s5774_s5 }
  0x43   : > { %p4544_p9 = pnand %p4542_p7, %p4868_p8 }
  0x45   : > { %p4545_p4 = pneg %p4544_p9 }
  0x47   : > { %p4550_p3 = pnand %p4548_p1, %p4545_p4 }
  0x49   : > { %4553 = shalt.err (!%p4550_p3)
}
  0x4a   : > { %s4554_s10 = scalar_lea.vmem %s4858_s13, 16384  ;;  %p4562_p13 = scmp.lt.s32.totalorder %s4858_s13, %s4858_s13 }
  0x4b   : > { %p4555_p10 = scmp.ne.s32.totalorder %s4858_s13, %s4554_s10  ;;  %p4563_p0 = scmp.lt.s32.totalorder %s4554_s10, %s4554_s10 }
  0x4d   : > { %p4557_p11 = pnand %p4555_p10, %p4868_p8  ;;  %p4564_p2 = por %p4563_p0, %p4562_p13 }
  0x4f   : > { %p4558_p12 = pneg %p4557_p11 }
  0x51   : > { %p4565_p5 = pnand %p4564_p2, %p4558_p12 }
  0x53   : > { %4568 = shalt.err (!%p4565_p5)
}
  0x54   : > { %s4768_s18 = smov 128   ;;  %s4769_s29 = smov 8  }
  0x55   : > { %3950 = dma.hbm_to_vmem [thread:$0]  (!%p4854_p6), %s5774_s5, 16384, %s4858_s13, [#allocation12], %s4768_s18, %s4768_s18, %s4769_s29  }
  0x56   : > { %s4770_s22 = smov [#allocation7]   ;;  %s4771_s28 = smov [#allocation10]  }
  0x57   : > { %s233_s23 = sshll.u32 %s4770_s22, 4  ;;  %s257_s9 = sshll.u32 %s4771_s28, 4  ;;  %s234_s23 = int_to_ptr.vmem [resolvable:$true] %s233_s23  ;;  %s258_s9 = int_to_ptr.vmem [resolvable:$true] %s257_s9 }
  0x58   : > { %s4569_s15 = scalar_lea.hbm %s5771_s2, 32 }
  0x59   : > { %p4570_p7 = scmp.ne.s32.totalorder %s5771_s2, %s4569_s15  ;;  %p4576_p1 = scmp.lt.u32.totalorder %s4569_s15, %s5771_s2 }
  0x5b   : > { %p4572_p9 = pnand %p4570_p7, %p4868_p8 }
  0x5d   : > { %p4573_p4 = pneg %p4572_p9 }
  0x5f   : > { %p4578_p3 = pnand %p4576_p1, %p4573_p4 }
  0x61   : > { %4581 = shalt.err (!%p4578_p3)
}
  0x62   : > { %s4582_s13 = scalar_lea.vmem %s234_s23, 32  ;;  %p4590_p13 = scmp.lt.s32.totalorder %s234_s23, %s234_s23 }
  0x63   : > { %p4583_p10 = scmp.ne.s32.totalorder %s234_s23, %s4582_s13  ;;  %p4591_p0 = scmp.lt.s32.totalorder %s4582_s13, %s4582_s13 }
  0x65   : > { %p4585_p11 = pnand %p4583_p10, %p4868_p8  ;;  %p4592_p2 = por %p4591_p0, %p4590_p13 }
  0x67   : > { %p4586_p12 = pneg %p4585_p11 }
  0x69   : > { %p4593_p5 = pnand %p4592_p2, %p4586_p12 }
  0x6b   : > { %4596 = shalt.err (!%p4593_p5)
}
  0x6c   : > { %3941 = dma.hbm_to_vmem [thread:$0]  (!%p4854_p6), %s5771_s2, 32, %s234_s23, [#allocation6]  }
  0x6d   : > { %s4597_s28 = scalar_lea.hbm %s5773_s4, 128 }
  0x6e   : > { %p4598_p7 = scmp.ne.s32.totalorder %s5773_s4, %s4597_s28  ;;  %p4604_p1 = scmp.lt.u32.totalorder %s4597_s28, %s5773_s4 }
  0x70   : > { %p4600_p9 = pnand %p4598_p7, %p4868_p8 }
  0x72   : > { %p4601_p4 = pneg %p4600_p9 }
  0x74   : > { %p4606_p3 = pnand %p4604_p1, %p4601_p4 }
  0x76   : > { %4609 = shalt.err (!%p4606_p3)
}
  0x77   : > { %s4610_s17 = scalar_lea.vmem %s258_s9, 128  ;;  %p4618_p13 = scmp.lt.s32.totalorder %s258_s9, %s258_s9 }
  0x78   : > { %p4611_p10 = scmp.ne.s32.totalorder %s258_s9, %s4610_s17  ;;  %p4619_p0 = scmp.lt.s32.totalorder %s4610_s17, %s4610_s17 }
  0x7a   : > { %p4613_p11 = pnand %p4611_p10, %p4868_p8  ;;  %p4620_p2 = por %p4619_p0, %p4618_p13 }
  0x7c   : > { %p4614_p12 = pneg %p4613_p11 }
  0x7e   : > { %p4621_p5 = pnand %p4620_p2, %p4614_p12 }
  0x80   : > { %4624 = shalt.err (!%p4621_p5)
}
  0x81   : > { %3947 = dma.hbm_to_vmem [thread:$0]  (!%p4854_p6), %s5773_s4, 128, %s258_s9, [#allocation9]  }
  0x82   : > { %s4772_s13 = smov [#allocation13]   ;;  %s4625_s22 = scalar_lea.hbm %s5775_s6, 32 }
  0x83   : > { %s281_s20 = sshll.u32 %s4772_s13, 4  ;;  %p4626_p7 = scmp.ne.s32.totalorder %s5775_s6, %s4625_s22  ;;  %s282_s20 = int_to_ptr.vmem [resolvable:$true] %s281_s20 }
  0x84   : > { %p4632_p1 = scmp.lt.u32.totalorder %s4625_s22, %s5775_s6 }
  0x85   : > { %p4628_p9 = pnand %p4626_p7, %p4868_p8 }
  0x87   : > { %p4629_p4 = pneg %p4628_p9 }
  0x89   : > { %p4634_p3 = pnand %p4632_p1, %p4629_p4 }
  0x8b   : > { %4637 = shalt.err (!%p4634_p3)
}
  0x8c   : > { %s4638_s9 = scalar_lea.vmem %s282_s20, 32  ;;  %p4646_p13 = scmp.lt.s32.totalorder %s282_s20, %s282_s20 }
  0x8d   : > { %p4639_p10 = scmp.ne.s32.totalorder %s282_s20, %s4638_s9  ;;  %p4647_p0 = scmp.lt.s32.totalorder %s4638_s9, %s4638_s9 }
  0x8f   : > { %p4641_p11 = pnand %p4639_p10, %p4868_p8  ;;  %p4648_p2 = por %p4647_p0, %p4646_p13 }
  0x91   : > { %p4642_p12 = pneg %p4641_p11 }
  0x93   : > { %p4649_p5 = pnand %p4648_p2, %p4642_p12 }
  0x95   : > { %4652 = shalt.err (!%p4649_p5)
}
  0x96   : > { %3953 = dma.hbm_to_vmem [thread:$0]  (!%p4854_p6), %s5775_s6, 32, %s282_s20, [#allocation12]  }
  0x97   : > { %s3475_s19 = sadd.s32 4294967294, %s4761_s27   ;;  %s4989_s11 = sadd.s32 1, %s4761_s27  }
  0x98   : > { %s30_s23 = ssub.s32 %s4761_s27, %s4989_s11  ;;  %s33_s10 = sadd.s32 1, %s4757_s26 }
  0x99   : > { %p31_p8 = scmp.eq.s32.totalorder %s30_s23, 0  ;;  %p40_p7 = scmp.ne.s32.totalorder %s4757_s26, %s4753_s25 }
  0x9a   : > { %p41_p9 = scmp.eq.s32.totalorder %s4761_s27, 0  ;;  %p46_p4 = scmp.ne.s32.totalorder %s4753_s25, %s4749_s24 }
  0x9b   : > { %s5000_s13 = scalar_select %p31_p8, %s4757_s26, %s33_s10  }
  0x9c   : > { %p5002_p1 = por %p41_p9, %p40_p7  ;;  %p5786_p3 = scmp.eq.s32.totalorder %s4838_s30, 0 }
  0x9d   : > { %p196_p10 = scmp.eq.s32.totalorder %s4838_s30, 1  ;;  %p202_p11 = scmp.eq.s32.totalorder %s3475_s19, 1 }
  0x9e   : > { %p5008_p6 = por %p5786_p3, %p46_p4  ;;  %p3968_p12 = scmp.lt.s32.totalorder %s4761_s27, 2 }
  0x9f   : > { %s292_s1 = sand.u32 1, %s4757_s26   ;;  %p5015_p13 = por %p196_p10, %p40_p7 }
  0xa0   : > { %p5019_p0 = por %p202_p11, %p46_p4  ;;  %s3484_s12 = sshll.u32 %s292_s1, 6 }
  0xa1   : > { %s5788_s22 = scalar_select %p5015_p13, 1, 0 }
  0xa2   : > { %s5789_s28 = scalar_select %p5019_p0, 1, 0 }
  0xa3   : > { %s3832_s14 = sshll.u32 %s4761_s27, 10  ;;  %s296_s17 = scalar_lea.vmem [#allocation2], %s3484_s12 }
  0xa4   : > { %s5027_s16 = scalar_lea.hbm %s5769_s0, %s3832_s14  ;;  %s304_s19 = sshll.u32 %s296_s17, 4  ;;  %s5029_s19 = int_to_ptr.vmem [resolvable:$true] %s304_s19 }
  0xa5   : > { %p5033_p2 = pnand %p3968_p12, %p5002_p1  ;;  %s5037_s10 = scalar_lea.sflag [#allocation3], %s292_s1 }
  0xa6   : > { %s4653_s15 = scalar_lea.hbm %s5027_s16, 1024  ;;  %s4658_s21 = scalar_lea.hbm %s5769_s0, 2048 }
  0xa7   : > { %p4654_p5 = scmp.ne.s32.totalorder %s5027_s16, %s4653_s15  ;;  %p4655_p8 = pneg %p5033_p2 }
  0xa8   : > { %p4659_p4 = scmp.lt.u32.totalorder %s5027_s16, %s5769_s0  ;;  %p4660_p1 = scmp.lt.u32.totalorder %s4658_s21, %s4653_s15 }
  0xa9   : > { %p4656_p7 = pnand %p4655_p8, %p4654_p5  ;;  %p4662_p10 = scmp.lt.u32.totalorder %s4653_s15, %s5027_s16 }
  0xaa   : > { %p4661_p3 = por %p4660_p1, %p4659_p4 }
  0xab   : > { %p4657_p9 = pneg %p4656_p7 }
  0xac   : > { %p4663_p11 = por %p4662_p10, %p4661_p3 }
  0xae   : > { %p4664_p12 = pnand %p4663_p11, %p4657_p9 }
  0xb0   : > { %4667 = shalt.err (!%p4664_p12)
}
  0xb1   : > { %s4668_s1 = scalar_lea.vmem %s5029_s19, 1024  ;;  %s4773_s12 = smov [#allocation2]  }
  0xb2   : > { %p4669_p5 = scmp.ne.s32.totalorder %s5029_s19, %s4668_s1  ;;  %s4673_s14 = sshll.u32 %s4773_s12, 4  ;;  %s4674_s14 = int_to_ptr.vmem [resolvable:$false] %s4673_s14 }
  0xb3   : > { %s4675_s9 = scalar_lea.vmem %s4674_s14, 2048  ;;  %p4676_p13 = scmp.lt.s32.totalorder %s5029_s19, %s4674_s14 }
  0xb4   : > { %p4671_p7 = pnand %p4669_p5, %p4655_p8  ;;  %p4677_p4 = scmp.lt.s32.totalorder %s4675_s9, %s4668_s1 }
  0xb6   : > { %p4672_p0 = pneg %p4671_p7  ;;  %p4678_p1 = por %p4677_p4, %p4676_p13 }
  0xb8   : > { %p4679_p3 = pnand %p4678_p1, %p4672_p0 }
  0xba   : > { %4682 = shalt.err (!%p4679_p3)
}
  0xbb   : > { %3957 = dma.hbm_to_vmem [thread:$0]  (!%p5033_p2), %s5027_s16, 1024, %s5029_s19, %s5037_s10, %s4768_s18, %s4768_s18, %s4769_s29  }
  0xbc   : > { %p5791_p8 = scmp.ne.s32.totalorder %s5781_s8, 0 }
  0xbd   : > { %s5071_s15 = sand.u32 (!%p5791_p8), 1, %s4753_s25  }
  0xbe   : > { %316 = sbr.rel (%p5791_p8) target bundleno = 1088 (0x440), region = 48  ;;  %s3489_s21 = sshll.u32 (!%p5791_p8), %s5071_s15, 6 }
  0xbf   : > { %s319_s17 = scalar_lea.sflag (!%p5791_p8), [#allocation3], %s5071_s15  ;;  %s5077_s23 = scalar_lea.vmem (!%p5791_p8), [#allocation2], %s3489_s21 }
  0xc5   : > { %4728 = dma.done.wait (%p5008_p6), %s319_s17, 1024  }
  0xc6   : > { %4730 = vsyncadd (%p5008_p6), %s319_s17, 4294966272  ;;  %p5792_p13 = scmp.eq.s32.totalorder %s4838_s30, 0 }
  0xc8   : > { %4732 = dma.done.wait (%p5792_p13), [#allocation6], 64   ;;  %p5793_p0 = pmov %p5792_p13 }
  0xca   : > { %4734 = vsyncadd (%p5793_p0), [#allocation6], 4294967232  ;;  %p5794_p2 = pmov %p5793_p0 }
  0xcb   : > { %p5795_p9 = pmov %p5793_p0 }
  0xcc   : > { %4736 = dma.done.wait (%p5794_p2), [#allocation9], 16512  }
  0xcd   : > { %4738 = vsyncadd (%p5795_p9), [#allocation9], 4294950784  ;;  %p5796_p10 = pmov %p5793_p0 }
  0xce   : > { %p5797_p11 = pmov %p5793_p0 }
  0xcf   : > { %4740 = dma.done.wait (%p5796_p10), [#allocation12], 16416  }
  0xd0   : > { %4742 = vsyncadd (%p5797_p11), [#allocation12], 4294950880  ;;  %v379_v0 = vld [vmem:[%s5077_s23] sm:$0xff]  ;;  %v380_v1 = vld [vmem:[%s5077_s23 + $0x8] sm:$0xff]  ;;  %s5708_s8 = scalar_lea.vmem [#allocation14], %s3489_s21  ;;  %s3842_s29 = sshll.u32 %s4838_s30, 10 }
  0xd1   : > { %v5097_v2 = vunpack.c.l.bf16 %v379_v0  ;;  %v5099_v3 = vunpack.c.h.bf16 %v379_v0  ;;  %v5101_v4 = vunpack.c.l.bf16 %v380_v1  ;;  %v5103_v5 = vunpack.c.h.bf16 %v380_v1  ;;  %v381_v6 = vld [vmem:[%s5077_s23 + $0x10] sm:$0xff]  ;;  %v382_v12 = vld [vmem:[%s5077_s23 + $0x18] sm:$0xff]  ;;  %v620_v20 = vld [vmem:[#allocation8] sm:$0xff]  ;;  %s3345_s18 = sshll.u32 %s5708_s8, 4  ;;  %s5723_s19 = scalar_lea.hbm %s5776_s7, %s3842_s29  ;;  %s5718_s18 = int_to_ptr.vmem [resolvable:$true] %s3345_s18 }
  0xd2   : > { %v5119_v15 = vunpack.c.l.bf16 %v381_v6  ;;  %v5121_v16 = vunpack.c.h.bf16 %v381_v6  ;;  %v5123_v18 = vunpack.c.l.bf16 %v382_v12  ;;  %v5125_v19 = vunpack.c.h.bf16 %v382_v12  ;;  %v624_v21 = vld [vmem:[#allocation8 + $0x20] sm:$0xff]  ;;  %v385_v50 = vld [vmem:[%s5077_s23 + $0x30] sm:$0xff]  ;;  %v386_v52 = vld [vmem:[%s5077_s23 + $0x38] sm:$0xff]  ;;  %s3331_s10 = scalar_lea.sflag [#allocation4], %s5071_s15  ;;  %s4683_s1 = scalar_lea.vmem %s5718_s18, 1024 }
  0xd3   : > { %v403_v7 = vadd.f32 %v5099_v3, %v5097_v2  ;;  %v436_v8 = vmul.f32 %v5097_v2, %v5097_v2  ;;  %v437_v9 = vmul.f32 %v5099_v3, %v5099_v3  ;;  %v438_v10 = vmul.f32 %v5101_v4, %v5101_v4  ;;  %v383_v22 = vld [vmem:[%s5077_s23 + $0x20] sm:$0xff]  ;;  %v384_v28 = vld [vmem:[%s5077_s23 + $0x28] sm:$0xff]  ;;  %p4684_p6 = scmp.ne.s32.totalorder %s5718_s18, %s4683_s1  ;;  %p5798_p12 = scmp.ne.s32.totalorder %s5788_s22, 0 }
  0xd4   : > { %v439_v11 = vmul.f32 %v5103_v5, %v5103_v5  ;;  %v406_v14 = vadd.f32 %v5103_v5, %v5101_v4  ;;  %v628_v23 = vld [vmem:[#allocation8 + $0x40] sm:$0xff]  ;;  %v409_v25 = vadd.f32 %v5121_v16, %v5119_v15  ;;  %v440_v26 = vmul.f32 %v5119_v15, %v5119_v15  ;;  %s4774_s30 = smov [#allocation14]  }
  0xd5   : > { %404 = vadd.xlane.f32.xlu0 %v403_v7  ;;  %v452_v13 = vadd.f32 %v437_v9, %v436_v8  ;;  %v632_v24 = vld [vmem:[#allocation8 + $0x60] sm:$0xff]  ;;  %v441_v27 = vmul.f32 %v5121_v16, %v5121_v16  ;;  %v412_v31 = vadd.f32 %v5125_v19, %v5123_v18  ;;  %v442_v32 = vmul.f32 %v5123_v18, %v5123_v18  ;;  %p4685_p5 = pnand %p4684_p6, %p5798_p12  ;;  %s4687_s12 = sshll.u32 %s4774_s30, 4  ;;  %s4688_s12 = int_to_ptr.vmem [resolvable:$false] %s4687_s12 }
  0xd6   : > { %v455_v17 = vadd.f32 %v439_v11, %v438_v10  ;;  %v636_v29 = vld [vmem:[#allocation8 + $0x80] sm:$0xff]  ;;  %v443_v33 = vmul.f32 %v5125_v19, %v5125_v19  ;;  %v3498_v34 = vcombine.high %v620_v20, %v624_v21  ;;  %v3497_v35 = vcombine.low %v620_v20, %v624_v21  ;;  %s4689_s14 = scalar_lea.vmem %s4688_s12, 2048  ;;  %p4690_p4 = scmp.lt.s32.totalorder %s5718_s18, %s4688_s12 }
  0xd7   : > { %453 = vadd.xlane.f32.xlu1 %v452_v13  ;;  %v640_v30 = vld [vmem:[#allocation8 + $0xa0] sm:$0xff]  ;;  %v458_v36 = vadd.f32 %v441_v27, %v440_v26  ;;  %v5141_v37 = vunpack.c.l.bf16 %v383_v22  ;;  %v5143_v38 = vunpack.c.h.bf16 %v383_v22  ;;  %v3506_v39 = vcombine.high %v628_v23, %v632_v24  ;;  %p4686_p7 = pneg %p4685_p5  ;;  %p4691_p1 = scmp.lt.s32.totalorder %s4689_s14, %s4683_s1 }
  0xd8   : > { %1430 = vmatprep.subr.bf16.mxu1 %v3498_v34  ;;  %v5145_v40 = vunpack.c.l.bf16 %v384_v28  ;;  %v5147_v41 = vunpack.c.h.bf16 %v384_v28  ;;  %v3505_v42 = vcombine.low %v628_v23, %v632_v24  ;;  %v644_v43 = vld [vmem:[#allocation8 + $0xc0] sm:$0xff]  ;;  %v461_v45 = vadd.f32 %v443_v33, %v442_v32 }
  0xd9   : > { %407 = vadd.xlane.f32.xlu0 %v406_v14  ;;  %1431 = vmatpush1.bf16.msra.mxu1 %v3497_v35  ;;  %v648_v44 = vld [vmem:[#allocation8 + $0xe0] sm:$0xff]  ;;  %v3514_v46 = vcombine.high %v636_v29, %v640_v30  ;;  %v415_v47 = vadd.f32 %v5143_v38, %v5141_v37  ;;  %v444_v48 = vmul.f32 %v5141_v37, %v5141_v37  ;;  %v5163_v60 = vunpack.c.l.bf16 %v385_v50  ;;  %p4692_p3 = por %p4691_p1, %p4690_p4 }
  0xda   : > { %1432 = vmatprep.subr.bf16.mxu1 %v3506_v39  ;;  %v445_v49 = vmul.f32 %v5143_v38, %v5143_v38  ;;  %v418_v51 = vadd.f32 %v5147_v41, %v5145_v40  ;;  %v3513_v53 = vcombine.low %v636_v29, %v640_v30  ;;  %v652_v54 = vld [vmem:[#allocation8 + $0x100] sm:$0xff]  ;;  %v446_v56 = vmul.f32 %v5145_v40, %v5145_v40 }
  0xdb   : > { %456 = vadd.xlane.f32.xlu1 %v455_v17  ;;  %v656_v55 = vld [vmem:[#allocation8 + $0x120] sm:$0xff]  ;;  %v447_v57 = vmul.f32 %v5147_v41, %v5147_v41  ;;  %v3522_v58 = vcombine.high %v644_v43, %v648_v44  ;;  %v5165_v61 = vunpack.c.h.bf16 %v385_v50  ;;  %v3521_v62 = vcombine.low %v644_v43, %v648_v44  ;;  %p4693_p8 = pnand %p4692_p3, %p4686_p7 }
  0xdc   : > { %v464_v59 = vadd.f32 %v445_v49, %v444_v48  ;;  %v660_v63 = vld [vmem:[#allocation8 + $0x140] sm:$0xff]  ;;  %v5167_v6 = vunpack.c.l.bf16 %v386_v52  ;;  %v5169_v7 = vunpack.c.h.bf16 %v386_v52  ;;  %v3530_v8 = vcombine.high %v652_v54, %v656_v55 }
  0xdd   : > { %410 = vadd.xlane.f32.xlu0 %v409_v25  ;;  %1433 = vmatpush1.bf16.msra.mxu1 %v3505_v42  ;;  %v664_v0 = vld [vmem:[#allocation8 + $0x160] sm:$0xff]  ;;  %v467_v1 = vadd.f32 %v447_v57, %v446_v56  ;;  %v421_v9 = vadd.f32 %v5165_v61, %v5163_v60  ;;  %v448_v10 = vmul.f32 %v5163_v60, %v5163_v60 }
  0xde   : > { %1434 = vmatprep.subr.bf16.mxu1 %v3514_v46  ;;  %v449_v11 = vmul.f32 %v5165_v61, %v5165_v61  ;;  %v450_v12 = vmul.f32 %v5167_v6, %v5167_v6  ;;  %v3529_v13 = vcombine.low %v652_v54, %v656_v55  ;;  %v668_v14 = vld [vmem:[#allocation8 + $0x180] sm:$0xff]  ;;  %v424_v20 = vadd.f32 %v5169_v7, %v5167_v6  ;;  %v5185_v54 = vld [vmem:[#allocation8 + $0x28] sm:$0xff] }
  0xdf   : > { %413 = vadd.xlane.f32.xlu1 %v412_v31  ;;  %v672_v17 = vld [vmem:[#allocation8 + $0x1a0] sm:$0xff]  ;;  %v451_v21 = vmul.f32 %v5169_v7, %v5169_v7  ;;  %v3538_v22 = vcombine.high %v660_v63, %v664_v0  ;;  %v3537_v24 = vcombine.low %v660_v63, %v664_v0 }
  0xe0   : > { %v470_v23 = vadd.f32 %v449_v11, %v448_v10  ;;  %v676_v25 = vld [vmem:[#allocation8 + $0x1c0] sm:$0xff]  ;;  %v3546_v28 = vcombine.high %v668_v14, %v672_v17  ;;  %v3545_v29 = vcombine.low %v668_v14, %v672_v17 }
  0xe1   : > { %459 = vadd.xlane.f32.xlu0 %v458_v36  ;;  %1435 = vmatpush1.bf16.msra.mxu1 %v3513_v53  ;;  %v680_v26 = vld [vmem:[#allocation8 + $0x1e0] sm:$0xff]  ;;  %v473_v27 = vadd.f32 %v451_v21, %v450_v12  ;;  %v5183_v53 = vld [vmem:[#allocation8 + $0x8] sm:$0xff] }
  0xe2   : > { %1436 = vmatprep.subr.bf16.mxu1 %v3522_v58  ;;  %v684_v30 = vld [vmem:[#allocation8 + $0x200] sm:$0xff]  ;;  %v3554_v32 = vcombine.high %v676_v25, %v680_v26  ;;  %v3553_v33 = vcombine.low %v676_v25, %v680_v26  ;;  %v3499_v55 = vcombine.low %v5183_v53, %v5185_v54  ;;  %v3500_v17 = vcombine.high %v5183_v53, %v5185_v54 }
  0xe3   : > { %462 = vadd.xlane.f32.xlu1 %v461_v45  ;;  %v688_v31 = vld [vmem:[#allocation8 + $0x220] sm:$0xff] }
  0xe4   : > { %v692_v34 = vld [vmem:[#allocation8 + $0x240] sm:$0xff]  ;;  %v3562_v36 = vcombine.high %v684_v30, %v688_v31  ;;  %v3561_v39 = vcombine.low %v684_v30, %v688_v31 }
  0xe5   : > { %416 = vadd.xlane.f32.xlu0 %v415_v47  ;;  %1437 = vmatpush1.bf16.msra.mxu1 %v3521_v62  ;;  %v696_v35 = vld [vmem:[#allocation8 + $0x260] sm:$0xff] }
  0xe6   : > { %1438 = vmatprep.subr.bf16.mxu1 %v3530_v8  ;;  %v700_v42 = vld [vmem:[#allocation8 + $0x280] sm:$0xff]  ;;  %v3570_v43 = vcombine.high %v692_v34, %v696_v35  ;;  %v3569_v45 = vcombine.low %v692_v34, %v696_v35 }
  0xe7   : > { %419 = vadd.xlane.f32.xlu1 %v418_v51  ;;  %v704_v44 = vld [vmem:[#allocation8 + $0x2a0] sm:$0xff] }
  0xe8   : > { %v708_v46 = vld [vmem:[#allocation8 + $0x2c0] sm:$0xff]  ;;  %v3578_v48 = vcombine.high %v700_v42, %v704_v44  ;;  %v3577_v49 = vcombine.low %v700_v42, %v704_v44 }
  0xe9   : > { %465 = vadd.xlane.f32.xlu0 %v464_v59  ;;  %1439 = vmatpush1.bf16.msra.mxu1 %v3529_v13  ;;  %v712_v47 = vld [vmem:[#allocation8 + $0x2e0] sm:$0xff] }
  0xea   : > { %1440 = vmatprep.subr.bf16.mxu1 %v3538_v22  ;;  %v716_v50 = vld [vmem:[#allocation8 + $0x300] sm:$0xff]  ;;  %v3586_v52 = vcombine.high %v708_v46, %v712_v47  ;;  %v3585_v56 = vcombine.low %v708_v46, %v712_v47 }
  0xeb   : > { %468 = vadd.xlane.f32.xlu1 %v467_v1  ;;  %v720_v51 = vld [vmem:[#allocation8 + $0x320] sm:$0xff] }
  0xec   : > { %v3594_v57 = vcombine.high %v716_v50, %v720_v51  ;;  %v724_v58 = vld [vmem:[#allocation8 + $0x340] sm:$0xff]  ;;  %v3593_v62 = vcombine.low %v716_v50, %v720_v51 }
  0xed   : > { %422 = vadd.xlane.f32.xlu0 %v421_v9  ;;  %1441 = vmatpush1.bf16.msra.mxu1 %v3537_v24  ;;  %v728_v59 = vld [vmem:[#allocation8 + $0x360] sm:$0xff] }
  0xee   : > { %1442 = vmatprep.subr.bf16.mxu1 %v3546_v28  ;;  %v3602_v63 = vcombine.high %v724_v58, %v728_v59  ;;  %v732_v0 = vld [vmem:[#allocation8 + $0x380] sm:$0xff]  ;;  %v3601_v8 = vcombine.low %v724_v58, %v728_v59 }
  0xef   : > { %425 = vadd.xlane.f32.xlu1 %v424_v20  ;;  %v736_v1 = vld [vmem:[#allocation8 + $0x3a0] sm:$0xff] }
  0xf0   : > { %v3610_v9 = vcombine.high %v732_v0, %v736_v1  ;;  %v740_v10 = vld [vmem:[#allocation8 + $0x3c0] sm:$0xff]  ;;  %v3609_v12 = vcombine.low %v732_v0, %v736_v1 }
  0xf1   : > { %471 = vadd.xlane.f32.xlu0 %v470_v23  ;;  %1443 = vmatpush1.bf16.msra.mxu1 %v3545_v29  ;;  %v744_v11 = vld [vmem:[#allocation8 + $0x3e0] sm:$0xff] }
  0xf2   : > { %1444 = vmatprep.subr.bf16.mxu1 %v3554_v32  ;;  %v3618_v13 = vcombine.high %v740_v10, %v744_v11  ;;  %v3617_v14 = vcombine.low %v740_v10, %v744_v11  ;;  %v556_v10 = vld [vmem:[#allocation5] sm:$0x3] }
  0xf3   : > { %474 = vadd.xlane.f32.xlu1 %v473_v27 }
  0xf5   : > { %1445 = vmatpush1.bf16.msra.mxu1 %v3553_v33 }
  0xf6   : > { %1446 = vmatprep.subr.bf16.mxu1 %v3562_v36 }
  0xf9   : > { %1447 = vmatpush1.bf16.msra.mxu1 %v3561_v39  ;;  %v558_v39 = vlaneseq }
  0xfa   : > { %1448 = vmatprep.subr.bf16.mxu1 %v3570_v43 }
  0xfb   : > { %v5203_v50 = vshrl.u32 %v558_v39, 7 }
  0xfd   : > { %1449 = vmatpush1.bf16.msra.mxu1 %v3569_v45  ;;  %v5211_v0 = vsub.s32 0, %v5203_v50 }
  0xfe   : > { %1450 = vmatprep.subr.bf16.mxu1 %v3578_v48 }
 0x101   : > { %1451 = vmatpush1.bf16.msra.mxu1 %v3577_v49 }
 0x102   : > { %1452 = vmatprep.subr.bf16.mxu1 %v3586_v52 }
 0x105   : > { %1453 = vmatpush1.bf16.msra.mxu1 %v3585_v56 }
 0x106   : > { %1454 = vmatprep.subr.bf16.mxu1 %v3594_v57 }
 0x109   : > { %1455 = vmatpush1.bf16.msra.mxu1 %v3593_v62 }
 0x10a   : > { %1456 = vmatprep.subr.bf16.mxu1 %v3602_v63  ;;  %v5208_v63 = vsub.s32 1, %v5203_v50 }
 0x10d   : > { %1457 = vmatpush1.bf16.msra.mxu1 %v3601_v8 }
 0x10e   : > { %1458 = vmatprep.subr.bf16.mxu1 %v3610_v9 }
 0x111   : > { %1459 = vmatpush1.bf16.msra.mxu1 %v3609_v12 }
 0x112   : > { %1460 = vmatprep.subr.bf16.mxu1 %v3618_v13 }
 0x115   : > { %1461 = vmatpush1.bf16.msra.mxu1 %v3617_v14 }
 0x116   : > { %1503 = vmatprep.subr.bf16.mxu1 %v3500_v17 }
 0x162   : > { %v405_v20 = vpop.xlane.xlu0 %404 }
 0x163   : > { %v428_v21 = vmul.f32 0.00390625, %v405_v20 }
 0x164   : > { %v454_v22 = vpop.xlane.xlu1 %453 }
 0x165   : > { %v476_v23 = vmul.f32 0.00390625, %v454_v22  ;;  %v484_v24 = vmul.f32 %v428_v21, %v428_v21  ;;  %v508_v14 = vsub.f32 %v5097_v2, %v428_v21  ;;  %v509_v17 = vsub.f32 %v5099_v3, %v428_v21  ;;  %v584_v22 = vld [vmem:[#allocation7] sm:$0x3] }
 0x166   : > { %v408_v25 = vpop.xlane.xlu0 %407  ;;  %v5228_v21 = vrot.slane %v584_v22, %v5208_v63 }
 0x167   : > { %v492_v26 = vsub.f32 %v476_v23, %v484_v24  ;;  %v5191_v27 = vmul.f32 0.00390625, %v408_v25 }
 0x168   : > { %v457_v28 = vpop.xlane.xlu1 %456 }
 0x169   : > { %v500_v29 = vmax.f32 %v492_v26, 0.0  ;;  %v477_v30 = vmul.f32 0.00390625, %v457_v28  ;;  %v485_v31 = vmul.f32 %v5191_v27, %v5191_v27  ;;  %v5222_v26 = vrot.slane %v556_v10, %v5208_v63 }
 0x16a   : > { %v411_v32 = vpop.xlane.xlu0 %410  ;;  %v5225_v28 = vrot.slane %v556_v10, %v5211_v0 }
 0x16b   : > { %v524_v33 = vadd.f32 1e-05, %v500_v29  ;;  %v5195_v34 = vmul.f32 0.00390625, %v411_v32  ;;  %v493_v35 = vsub.f32 %v477_v30, %v485_v31  ;;  %v510_v32 = vsub.f32 %v5101_v4, %v5191_v27 }
 0x16c   : > { %v414_v36 = vpop.xlane.xlu1 %413 }
 0x16d   : > { %4212 = vrsqrt.f32 %v524_v33  ;;  %v5197_v42 = vmul.f32 0.00390625, %v414_v36  ;;  %v501_v43 = vmax.f32 %v493_v35, 0.0  ;;  %v486_v44 = vmul.f32 %v5195_v34, %v5195_v34 }
 0x16e   : > { %v460_v45 = vpop.xlane.xlu0 %459  ;;  %v5235_v36 = vrot.slane %v584_v22, %v5211_v0 }
 0x16f   : > { %v487_v46 = vmul.f32 %v5197_v42, %v5197_v42  ;;  %v478_v47 = vmul.f32 0.00390625, %v460_v45  ;;  %v525_v48 = vadd.f32 1e-05, %v501_v43  ;;  %v511_v43 = vsub.f32 %v5103_v5, %v5191_v27 }
 0x170   : > { %v463_v49 = vpop.xlane.xlu1 %462  ;;  %v513_v45 = vsub.f32 %v5121_v16, %v5195_v34  ;;  %v515_v16 = vsub.f32 %v5125_v19, %v5197_v42 }
 0x171   : > { %v479_v51 = vmul.f32 0.00390625, %v463_v49  ;;  %v494_v52 = vsub.f32 %v478_v47, %v486_v44  ;;  %4214 = vrsqrt.f32 %v525_v48  ;;  %v512_v44 = vsub.f32 %v5119_v15, %v5195_v34 }
 0x172   : > { %v417_v56 = vpop.xlane.xlu0 %416  ;;  %v514_v15 = vsub.f32 %v5123_v18, %v5197_v42 }
 0x173   : > { %v495_v57 = vsub.f32 %v479_v51, %v487_v46  ;;  %v502_v58 = vmax.f32 %v494_v52, 0.0  ;;  %v5205_v59 = vmul.f32 0.00390625, %v417_v56 }
 0x174   : > { %v420_v62 = vpop.xlane.xlu1 %419 }
 0x175   : > { %v503_v1 = vmax.f32 %v495_v57, 0.0  ;;  %v526_v8 = vadd.f32 1e-05, %v502_v58  ;;  %v5213_v9 = vmul.f32 0.00390625, %v420_v62  ;;  %v488_v11 = vmul.f32 %v5205_v59, %v5205_v59 }
 0x176   : > { %v466_v12 = vpop.xlane.xlu0 %465 }
 0x177   : > { %v4213_v13 = vpop.eup %4212  ;;  %v527_v20 = vadd.f32 1e-05, %v503_v1  ;;  %4216 = vrsqrt.f32 %v526_v8  ;;  %v489_v23 = vmul.f32 %v5213_v9, %v5213_v9  ;;  %v480_v25 = vmul.f32 0.00390625, %v466_v12  ;;  %v633_v12 = vld [vmem:[#allocation8 + $0x68] sm:$0xff] }
 0x178   : > { %v469_v24 = vpop.xlane.xlu1 %468  ;;  %v541_v30 = vmul.f32 %v4213_v13, %v509_v17  ;;  %v540_v2 = vmul.f32 %v4213_v13, %v508_v14 }
 0x179   : > { %4218 = vrsqrt.f32 %v527_v20  ;;  %v481_v29 = vmul.f32 0.00390625, %v469_v24  ;;  %v496_v31 = vsub.f32 %v480_v25, %v488_v11  ;;  %v629_v11 = vld [vmem:[#allocation8 + $0x48] sm:$0xff] }
 0x17a   : > { %v423_v3 = vpop.xlane.xlu0 %422  ;;  %v569_v49 = vmul.f32 %v5222_v26, %v541_v30  ;;  %v568_v51 = vmul.f32 %v5225_v28, %v540_v2  ;;  %v3507_v25 = vcombine.low %v629_v11, %v633_v12 }
 0x17b   : > { %v497_v33 = vsub.f32 %v481_v29, %v489_v23  ;;  %v5232_v35 = vmul.f32 0.00390625, %v423_v3  ;;  %v4215_v39 = vpop.eup %4214  ;;  %v504_v46 = vmax.f32 %v496_v31, 0.0  ;;  %v3508_v29 = vcombine.high %v629_v11, %v633_v12 }
 0x17c   : > { %v426_v47 = vpop.xlane.xlu1 %425  ;;  %v543_v27 = vmul.f32 %v4215_v39, %v511_v43  ;;  %v542_v57 = vmul.f32 %v4215_v39, %v510_v32  ;;  %v597_v18 = vadd.f32 %v5228_v21, %v569_v49  ;;  %v596_v19 = vadd.f32 %v5235_v36, %v568_v51  ;;  %v637_v49 = vld [vmem:[#allocation8 + $0x88] sm:$0xff] }
 0x17d   : > { %v505_v48 = vmax.f32 %v497_v33, 0.0  ;;  %v5243_v4 = vmul.f32 0.00390625, %v426_v47  ;;  %v528_v52 = vadd.f32 1e-05, %v504_v46  ;;  %v490_v56 = vmul.f32 %v5232_v35, %v5232_v35  ;;  %v641_v51 = vld [vmem:[#allocation8 + $0xa8] sm:$0xff] }
 0x17e   : > { %v472_v5 = vpop.xlane.xlu0 %471  ;;  %v571_v8 = vmul.f32 %v5222_v26, %v543_v27  ;;  %v570_v10 = vmul.f32 %v5225_v28, %v542_v57  ;;  %v517_v47 = vsub.f32 %v5143_v38, %v5205_v59  ;;  %v519_v38 = vsub.f32 %v5147_v41, %v5213_v9 }
 0x17f   : > { %v529_v34 = vadd.f32 1e-05, %v505_v48  ;;  %v491_v58 = vmul.f32 %v5243_v4, %v5243_v4  ;;  %4220 = vrsqrt.f32 %v528_v52  ;;  %v482_v1 = vmul.f32 0.00390625, %v472_v5 }
 0x180   : > { %v475_v62 = vpop.xlane.xlu1 %474  ;;  %v599_v17 = vadd.f32 %v5228_v21, %v571_v8  ;;  %v598_v20 = vadd.f32 %v5235_v36, %v570_v10  ;;  %v3516_v57 = vcombine.high %v637_v49, %v641_v51  ;;  %v3515_v53 = vcombine.low %v637_v49, %v641_v51  ;;  %v673_v49 = vld [vmem:[#allocation8 + $0x1a8] sm:$0xff] }
 0x181   : > { %v4217_v13 = vpop.eup %4216  ;;  %4222 = vrsqrt.f32 %v529_v34  ;;  %v483_v14 = vmul.f32 0.00390625, %v475_v62  ;;  %v498_v42 = vsub.f32 %v482_v1, %v490_v56 }
 0x182   : > { %v545_v22 = vmul.f32 %v4217_v13, %v513_v45  ;;  %v544_v30 = vmul.f32 %v4217_v13, %v512_v44  ;;  %v5261_v31 = vpack.c.bf16 %v599_v17, %v597_v18  ;;  %v5263_v3 = vpack.c.bf16 %v598_v20, %v596_v19  ;;  %v657_v18 = vld [vmem:[#allocation8 + $0x128] sm:$0xff] }
 0x183   : > { %v4219_v23 = vpop.eup %4218  ;;  %v499_v24 = vsub.f32 %v483_v14, %v491_v58  ;;  %v506_v2 = vmax.f32 %v498_v42, 0.0  ;;  %v516_v45 = vsub.f32 %v5141_v37, %v5205_v59  ;;  %v518_v37 = vsub.f32 %v5145_v40, %v5213_v9  ;;  %v645_v58 = vld [vmem:[#allocation8 + $0xc8] sm:$0xff] }
 0x184   : > { %v547_v32 = vmul.f32 %v4219_v23, %v515_v16  ;;  %v573_v39 = vmul.f32 %v5222_v26, %v545_v22  ;;  %v546_v43 = vmul.f32 %v4219_v23, %v514_v15  ;;  %v572_v46 = vmul.f32 %v5225_v28, %v544_v30  ;;  %1462 = vmatprep.mubr.bf16.mxu1 %v5261_v31  ;;  %v649_v40 = vld [vmem:[#allocation8 + $0xe8] sm:$0xff] }
 0x185   : > { %v507_v33 = vmax.f32 %v499_v24, 0.0  ;;  %v530_v48 = vadd.f32 1e-05, %v506_v2  ;;  %1463 = vmatmul.mubr.bf16.vlgmr.msra.gmra.mrb[0].mxu1 %v5263_v3  ;;  %v3524_v8 = vcombine.high %v645_v58, %v649_v40  ;;  %v3523_v12 = vcombine.low %v645_v58, %v649_v40  ;;  %v653_v14 = vld [vmem:[#allocation8 + $0x108] sm:$0xff] }
 0x186   : > { %v575_v44 = vmul.f32 %v5222_v26, %v547_v32  ;;  %v601_v56 = vadd.f32 %v5228_v21, %v573_v39  ;;  %v574_v5 = vmul.f32 %v5225_v28, %v546_v43  ;;  %v600_v27 = vadd.f32 %v5235_v36, %v572_v46  ;;  %1504 = vmatpush1.bf16.msra.mxu1 %v3499_v55  ;;  %v661_v30 = vld [vmem:[#allocation8 + $0x148] sm:$0xff] }
 0x187   : > { %v531_v52 = vadd.f32 1e-05, %v507_v33  ;;  %4224 = vrsqrt.f32 %v530_v48  ;;  %1505 = vmatprep.subr.bf16.mxu1 %v3508_v29  ;;  %v520_v42 = vsub.f32 %v5163_v60, %v5232_v35  ;;  %v521_v17 = vsub.f32 %v5165_v61, %v5232_v35  ;;  %v665_v2 = vld [vmem:[#allocation8 + $0x168] sm:$0xff] }
 0x188   : > { %v603_v59 = vadd.f32 %v5228_v21, %v575_v44  ;;  %v602_v15 = vadd.f32 %v5235_v36, %v574_v5  ;;  %v522_v23 = vsub.f32 %v5167_v6, %v5243_v4  ;;  %v523_v24 = vsub.f32 %v5169_v7, %v5243_v4  ;;  %v669_v44 = vld [vmem:[#allocation8 + $0x188] sm:$0xff] }
 0x189   : > { %4226 = vrsqrt.f32 %v531_v52  ;;  %v4221_v16 = vpop.eup %4220  ;;  %v3532_v29 = vcombine.high %v653_v14, %v657_v18  ;;  %v3531_v7 = vcombine.low %v653_v14, %v657_v18  ;;  %v3540_v46 = vcombine.high %v661_v30, %v665_v2  ;;  %v685_v58 = vld [vmem:[#allocation8 + $0x208] sm:$0xff] }
 0x18a   : > { %v5286_v34 = vpack.c.bf16 %v603_v59, %v601_v56  ;;  %v5288_v1 = vpack.c.bf16 %v602_v15, %v600_v27  ;;  %v549_v41 = vmul.f32 %v4221_v16, %v517_v47  ;;  %v548_v9 = vmul.f32 %v4221_v16, %v516_v45  ;;  %1506 = vmatpush1.bf16.msra.mxu1 %v3507_v25  ;;  %v689_v40 = vld [vmem:[#allocation8 + $0x228] sm:$0xff] }
 0x18b   : > { %v4223_v62 = vpop.eup %4222  ;;  %1507 = vmatprep.subr.bf16.mxu1 %v3516_v57  ;;  %v3539_v5 = vcombine.low %v661_v30, %v665_v2  ;;  %v681_v57 = vld [vmem:[#allocation8 + $0x1e8] sm:$0xff] }
 0x18c   : > { %1472 = vmatprep.mubr.bf16.mxu1 %v5286_v34  ;;  %v551_v54 = vmul.f32 %v4223_v62, %v519_v38  ;;  %v550_v55 = vmul.f32 %v4223_v62, %v518_v37  ;;  %v577_v10 = vmul.f32 %v5222_v26, %v549_v41  ;;  %v576_v11 = vmul.f32 %v5225_v28, %v548_v9  ;;  %v693_v62 = vld [vmem:[#allocation8 + $0x248] sm:$0xff] }
 0x18d   : > { %1473 = vmatmul.mubr.bf16.gmra.mrb[4].mxu1 %v5288_v1  ;;  %v3548_v38 = vcombine.high %v669_v44, %v673_v49  ;;  %v697_v41 = vld [vmem:[#allocation8 + $0x268] sm:$0xff]  ;;  %v3563_v9 = vcombine.low %v685_v58, %v689_v40 }
 0x18e   : > { %v579_v13 = vmul.f32 %v5222_v26, %v551_v54  ;;  %v578_v19 = vmul.f32 %v5225_v28, %v550_v55  ;;  %v605_v20 = vadd.f32 %v5228_v21, %v577_v10  ;;  %v604_v22 = vadd.f32 %v5235_v36, %v576_v11  ;;  %1508 = vmatpush1.bf16.msra.mxu1 %v3515_v53  ;;  %v701_v54 = vld [vmem:[#allocation8 + $0x288] sm:$0xff] }
 0x18f   : > { %1509 = vmatprep.subr.bf16.mxu1 %v3524_v8  ;;  %v3572_v53 = vcombine.high %v693_v62, %v697_v41  ;;  %v705_v55 = vld [vmem:[#allocation8 + $0x2a8] sm:$0xff]  ;;  %v3571_v8 = vcombine.low %v693_v62, %v697_v41  ;;  %v654_v62 = vld [vmem:[#allocation8 + $0x110] sm:$0xff] }
 0x190   : > { %v607_v25 = vadd.f32 %v5228_v21, %v579_v13  ;;  %v606_v60 = vadd.f32 %v5235_v36, %v578_v19  ;;  %v3580_v10 = vcombine.high %v701_v54, %v705_v55  ;;  %v709_v11 = vld [vmem:[#allocation8 + $0x2c8] sm:$0xff]  ;;  %v3579_v13 = vcombine.low %v701_v54, %v705_v55  ;;  %v658_v41 = vld [vmem:[#allocation8 + $0x130] sm:$0xff]  ;;  %v4035_v54 = vld [vmem:[#allocation11 + $0x54] ss:$8 sps:$4 sm:$0xff]  }
 0x191   : > { %v4225_v61 = vpop.eup %4224  ;;  %v717_v18 = vld [vmem:[#allocation8 + $0x308] sm:$0xff]  ;;  %v3534_v55 = vcombine.high %v654_v62, %v658_v41 }
 0x192   : > { %v5308_v35 = vpack.c.bf16 %v607_v25, %v605_v20  ;;  %v5310_v33 = vpack.c.bf16 %v606_v60, %v604_v22  ;;  %v553_v39 = vmul.f32 %v4225_v61, %v521_v17  ;;  %v552_v6 = vmul.f32 %v4225_v61, %v520_v42  ;;  %1510 = vmatpush1.bf16.msra.mxu1 %v3523_v12  ;;  %v713_v12 = vld [vmem:[#allocation8 + $0x2e8] sm:$0xff] }
 0x193   : > { %v4227_v32 = vpop.eup %4226  ;;  %1511 = vmatprep.subr.bf16.mxu1 %v3532_v29  ;;  %v3588_v14 = vcombine.high %v709_v11, %v713_v12  ;;  %v721_v19 = vld [vmem:[#allocation8 + $0x328] sm:$0xff]  ;;  %v3587_v42 = vcombine.low %v709_v11, %v713_v12  ;;  %v666_v11 = vld [vmem:[#allocation8 + $0x170] sm:$0xff]  ;;  %v3533_v12 = vcombine.low %v654_v62, %v658_v41  ;;  %v4059_v62 = vld [vmem:[#allocation11 + $0xd4] ss:$8 sps:$4 sm:$0xff]  }
 0x194   : > { %1482 = vmatprep.mubr.bf16.mxu1 %v5308_v35  ;;  %v555_v4 = vmul.f32 %v4227_v32, %v523_v24  ;;  %v554_v43 = vmul.f32 %v4227_v32, %v522_v23  ;;  %v581_v45 = vmul.f32 %v5222_v26, %v553_v39  ;;  %v580_v47 = vmul.f32 %v5225_v28, %v552_v6  ;;  %v725_v20 = vld [vmem:[#allocation8 + $0x348] sm:$0xff]  ;;  %v726_v41 = vld [vmem:[#allocation8 + $0x350] sm:$0xff] }
 0x195   : > { %1483 = vmatmul.mubr.bf16.gmra.mrb[8].mxu1 %v5310_v33  ;;  %v3596_v17 = vcombine.high %v717_v18, %v721_v19  ;;  %v729_v22 = vld [vmem:[#allocation8 + $0x368] sm:$0xff]  ;;  %v3595_v23 = vcombine.low %v717_v18, %v721_v19  ;;  %v670_v18 = vld [vmem:[#allocation8 + $0x190] sm:$0xff] }
 0x196   : > { %v583_v48 = vmul.f32 %v5222_v26, %v555_v4  ;;  %v582_v51 = vmul.f32 %v5225_v28, %v554_v43  ;;  %v609_v52 = vadd.f32 %v5228_v21, %v581_v45  ;;  %v608_v56 = vadd.f32 %v5235_v36, %v580_v47  ;;  %1512 = vmatpush1.bf16.msra.mxu1 %v3531_v7  ;;  %v677_v26 = vld [vmem:[#allocation8 + $0x1c8] sm:$0xff]  ;;  %v622_v7 = vld [vmem:[#allocation8 + $0x10] sm:$0xff]  ;;  %v4023_v47 = vld [vmem:[#allocation11 + $0x14] ss:$8 sps:$4 sm:$0xff]  }
 0x197   : > { %1513 = vmatprep.subr.bf16.mxu1 %v3540_v46  ;;  %v3547_v28 = vcombine.low %v669_v44, %v673_v49  ;;  %v3556_v16 = vcombine.high %v677_v26, %v681_v57  ;;  %v3604_v24 = vcombine.high %v725_v20, %v729_v22  ;;  %v733_v25 = vld [vmem:[#allocation8 + $0x388] sm:$0xff]  ;;  %v3603_v29 = vcombine.low %v725_v20, %v729_v22  ;;  %v626_v4 = vld [vmem:[#allocation8 + $0x30] sm:$0xff]  ;;  %v4025_v49 = vld [vmem:[#allocation11 + $0x10] ss:$8 sps:$4 sm:$0xff]  }
 0x198   : > { %v611_v27 = vadd.f32 %v5228_v21, %v583_v48  ;;  %v610_v37 = vadd.f32 %v5235_v36, %v582_v51  ;;  %v3555_v21 = vcombine.low %v677_v26, %v681_v57  ;;  %v3564_v36 = vcombine.high %v685_v58, %v689_v40  ;;  %v737_v60 = vld [vmem:[#allocation8 + $0x3a8] sm:$0xff]  ;;  %v630_v48 = vld [vmem:[#allocation8 + $0x50] sm:$0xff]  ;;  %v4029_v26 = vld [vmem:[#allocation11 + $0x34] ss:$8 sps:$4 sm:$0xff]  }
 0x199   : > { %v3612_v61 = vcombine.high %v733_v25, %v737_v60  ;;  %v741_v30 = vld [vmem:[#allocation8 + $0x3c8] sm:$0xff]  ;;  %v3611_v32 = vcombine.low %v733_v25, %v737_v60  ;;  %v3502_v45 = vcombine.high %v622_v7, %v626_v4  ;;  %v634_v44 = vld [vmem:[#allocation8 + $0x70] sm:$0xff]  ;;  %v3501_v51 = vcombine.low %v622_v7, %v626_v4  ;;  %v4041_v22 = vld [vmem:[#allocation11 + $0x74] ss:$8 sps:$4 sm:$0xff]  }
 0x19a   : > { %v5322_v59 = vpack.c.bf16 %v611_v27, %v609_v52  ;;  %v5324_v15 = vpack.c.bf16 %v610_v37, %v608_v56  ;;  %1514 = vmatpush1.bf16.msra.mxu1 %v3539_v5  ;;  %v745_v2 = vld [vmem:[#allocation8 + $0x3e8] sm:$0xff]  ;;  %v3510_v52 = vcombine.high %v630_v48, %v634_v44  ;;  %v638_v5 = vld [vmem:[#allocation8 + $0x90] sm:$0xff]  ;;  %v4043_v25 = vld [vmem:[#allocation11 + $0x70] ss:$8 sps:$4 sm:$0xff]  }
 0x19b   : > { %1515 = vmatprep.subr.bf16.mxu1 %v3548_v38  ;;  %v3620_v39 = vcombine.high %v741_v30, %v745_v2  ;;  %v4020_v6 = vld [vmem:[#allocation11 + $0x4] ss:$8 sps:$4 sm:$0xff]   ;;  %v4022_v43 = vld [vmem:[#allocation11] ss:$8 sps:$4 sm:$0xff]   ;;  %v3619_v46 = vcombine.low %v741_v30, %v745_v2  ;;  %v3509_v38 = vcombine.low %v630_v48, %v634_v44  ;;  %v4047_v7 = vld [vmem:[#allocation11 + $0x94] ss:$8 sps:$4 sm:$0xff]  }
 0x19c   : > { %1492 = vmatprep.mubr.bf16.mxu1 %v5322_v59  ;;  %2982 = vmatprep.subr.bf16.mxu0 %v4020_v6  ;;  %v4026_v56 = vld [vmem:[#allocation11 + $0x24] ss:$8 sps:$4 sm:$0xff]   ;;  %v4028_v37 = vld [vmem:[#allocation11 + $0x20] ss:$8 sps:$4 sm:$0xff]  }
 0x19d   : > { %1493 = vmatmul.mubr.bf16.gmra.mrb[12].mxu1 %v5324_v15  ;;  %2983 = vmatpush1.bf16.msra.mxu0 %v4022_v43  ;;  %v642_v27 = vld [vmem:[#allocation8 + $0xb0] sm:$0xff] }
 0x19e   : > { %1516 = vmatpush1.bf16.msra.mxu1 %v3547_v28  ;;  %1535 = vmatprep.mubr.bf16.mxu1 %v5261_v31  ;;  %v3518_v57 = vcombine.high %v638_v5, %v642_v27  ;;  %v4031_v28 = vld [vmem:[#allocation11 + $0x30] ss:$8 sps:$4 sm:$0xff]   ;;  %v650_v58 = vld [vmem:[#allocation8 + $0xf0] sm:$0xff]  ;;  %v3517_v40 = vcombine.low %v638_v5, %v642_v27  ;;  %v4053_v5 = vld [vmem:[#allocation11 + $0xb4] ss:$8 sps:$4 sm:$0xff]  }
 0x19f   : > { %1517 = vmatprep.subr.bf16.mxu1 %v3556_v16  ;;  %2984 = vmatprep.subr.bf16.mxu0 %v4023_v47  ;;  %v646_v16 = vld [vmem:[#allocation8 + $0xd0] sm:$0xff] }
 0x1a0   : > { %v674_v19 = vld [vmem:[#allocation8 + $0x1b0] sm:$0xff] }
 0x1a1   : > { %2985 = vmatpush1.bf16.msra.mxu0 %v4025_v49  ;;  %v3550_v20 = vcombine.high %v670_v18, %v674_v19  ;;  %v3549_v60 = vcombine.low %v670_v18, %v674_v19  ;;  %v686_v30 = vld [vmem:[#allocation8 + $0x210] sm:$0xff]  ;;  %v4065_v18 = vld [vmem:[#allocation11 + $0xf4] ss:$8 sps:$4 sm:$0xff]  }
 0x1a2   : > { %1518 = vmatpush1.bf16.msra.mxu1 %v3555_v21  ;;  %2986 = vmatprep.subr.bf16.mxu0 %v4026_v56  ;;  %v3526_v21 = vcombine.high %v646_v16, %v650_v58  ;;  %v690_v2 = vld [vmem:[#allocation8 + $0x230] sm:$0xff] }
 0x1a3   : > { %1519 = vmatprep.subr.bf16.mxu1 %v3564_v36  ;;  %v4032_v36 = vld [vmem:[#allocation11 + $0x44] ss:$8 sps:$4 sm:$0xff]   ;;  %v3566_v6 = vcombine.high %v686_v30, %v690_v2 }
 0x1a4   : > { %v694_v4 = vld [vmem:[#allocation8 + $0x250] sm:$0xff] }
 0x1a5   : > { %2987 = vmatpush1.bf16.msra.mxu0 %v4028_v37  ;;  %v698_v43 = vld [vmem:[#allocation8 + $0x270] sm:$0xff] }
 0x1a6   : > { %1520 = vmatpush1.bf16.msra.mxu1 %v3563_v9  ;;  %2988 = vmatprep.subr.bf16.mxu0 %v4029_v26  ;;  %v4034_v9 = vld [vmem:[#allocation11 + $0x40] ss:$8 sps:$4 sm:$0xff]   ;;  %v3574_v47 = vcombine.high %v694_v4, %v698_v43  ;;  %v4050_v48 = vld [vmem:[#allocation11 + $0xa4] ss:$8 sps:$4 sm:$0xff]  }
 0x1a7   : > { %1521 = vmatprep.subr.bf16.mxu1 %v3572_v53  ;;  %v3525_v53 = vcombine.low %v646_v16, %v650_v58  ;;  %v702_v44 = vld [vmem:[#allocation8 + $0x290] sm:$0xff] }
 0x1a8   : > { %v706_v49 = vld [vmem:[#allocation8 + $0x2b0] sm:$0xff] }
 0x1a9   : > { %2989 = vmatpush1.bf16.msra.mxu0 %v4031_v28  ;;  %v3582_v56 = vcombine.high %v702_v44, %v706_v49  ;;  %v710_v27 = vld [vmem:[#allocation8 + $0x2d0] sm:$0xff]  ;;  %v3581_v26 = vcombine.low %v702_v44, %v706_v49  ;;  %v659_v44 = vld [vmem:[#allocation8 + $0x138] sm:$0xff] }
 0x1aa   : > { %1522 = vmatpush1.bf16.msra.mxu1 %v3571_v8  ;;  %2990 = vmatprep.subr.bf16.mxu0 %v4032_v36  ;;  %v4037_v8 = vld [vmem:[#allocation11 + $0x50] ss:$8 sps:$4 sm:$0xff]   ;;  %v714_v37 = vld [vmem:[#allocation8 + $0x2f0] sm:$0xff] }
 0x1ab   : > { %1523 = vmatprep.subr.bf16.mxu1 %v3580_v10  ;;  %v662_v10 = vld [vmem:[#allocation8 + $0x150] sm:$0xff] }
 0x1ac   : > { %v4056_v28 = vld [vmem:[#allocation11 + $0xc4] ss:$8 sps:$4 sm:$0xff]  }
 0x1ad   : > { %2991 = vmatpush1.bf16.msra.mxu0 %v4034_v9  ;;  %v718_v16 = vld [vmem:[#allocation8 + $0x310] sm:$0xff] }
 0x1ae   : > { %1524 = vmatpush1.bf16.msra.mxu1 %v3579_v13  ;;  %2992 = vmatprep.subr.bf16.mxu0 %v4035_v54  ;;  %v3542_v13 = vcombine.high %v662_v10, %v666_v11  ;;  %v722_v58 = vld [vmem:[#allocation8 + $0x330] sm:$0xff] }
 0x1af   : > { %1525 = vmatprep.subr.bf16.mxu1 %v3588_v14  ;;  %v4038_v14 = vld [vmem:[#allocation11 + $0x64] ss:$8 sps:$4 sm:$0xff]   ;;  %v3598_v36 = vcombine.high %v718_v16, %v722_v58  ;;  %v3597_v54 = vcombine.low %v718_v16, %v722_v58  ;;  %v683_v16 = vld [vmem:[#allocation8 + $0x1f8] sm:$0xff] }
 0x1b0   : > { %v730_v9 = vld [vmem:[#allocation8 + $0x370] sm:$0xff] }
 0x1b1   : > { %2993 = vmatpush1.bf16.msra.mxu0 %v4037_v8  ;;  %v4062_v8 = vld [vmem:[#allocation11 + $0xe4] ss:$8 sps:$4 sm:$0xff]  }
 0x1b2   : > { %1526 = vmatpush1.bf16.msra.mxu1 %v3587_v42  ;;  %v4040_v42 = vld [vmem:[#allocation11 + $0x60] ss:$8 sps:$4 sm:$0xff]   ;;  %2994 = vmatprep.subr.bf16.mxu0 %v4038_v14 }
 0x1b3   : > { %1527 = vmatprep.subr.bf16.mxu1 %v3596_v17  ;;  %v3541_v17 = vcombine.low %v662_v10, %v666_v11  ;;  %v734_v10 = vld [vmem:[#allocation8 + $0x390] sm:$0xff] }
 0x1b4   : > { %v738_v11 = vld [vmem:[#allocation8 + $0x3b0] sm:$0xff] }
 0x1b5   : > { %2995 = vmatpush1.bf16.msra.mxu0 %v4040_v42  ;;  %v3614_v14 = vcombine.high %v734_v10, %v738_v11  ;;  %v742_v19 = vld [vmem:[#allocation8 + $0x3d0] sm:$0xff] }
 0x1b6   : > { %1528 = vmatpush1.bf16.msra.mxu1 %v3595_v23  ;;  %v678_v23 = vld [vmem:[#allocation8 + $0x1d0] sm:$0xff]  ;;  %2996 = vmatprep.subr.bf16.mxu0 %v4041_v22 }
 0x1b7   : > { %1529 = vmatprep.subr.bf16.mxu1 %v3604_v24  ;;  %v682_v24 = vld [vmem:[#allocation8 + $0x1f0] sm:$0xff] }
 0x1b8   : > { %v746_v42 = vld [vmem:[#allocation8 + $0x3f0] sm:$0xff] }
 0x1b9   : > { %2997 = vmatpush1.bf16.msra.mxu0 %v4043_v25  ;;  %v3622_v22 = vcombine.high %v742_v19, %v746_v42  ;;  %v627_v25 = vld [vmem:[#allocation8 + $0x38] sm:$0xff] }
 0x1ba   : > { %1530 = vmatpush1.bf16.msra.mxu1 %v3603_v29  ;;  %v3558_v29 = vcombine.high %v678_v23, %v682_v24 }
 0x1bb   : > { %1531 = vmatprep.subr.bf16.mxu1 %v3612_v61  ;;  %v4044_v61 = vld [vmem:[#allocation11 + $0x84] ss:$8 sps:$4 sm:$0xff]  }
 0x1bc   : > { %2998 = vmatprep.subr.bf16.mxu0 %v4044_v61  ;;  %v631_v61 = vld [vmem:[#allocation8 + $0x58] sm:$0xff] }
 0x1be   : > { %1532 = vmatpush1.bf16.msra.mxu1 %v3611_v32  ;;  %v4046_v32 = vld [vmem:[#allocation11 + $0x80] ss:$8 sps:$4 sm:$0xff]  }
 0x1bf   : > { %1533 = vmatprep.subr.bf16.mxu1 %v3620_v39  ;;  %v3557_v39 = vcombine.low %v678_v23, %v682_v24  ;;  %2999 = vmatpush1.bf16.msra.mxu0 %v4046_v32  ;;  %v4070_v23 = vld [vmem:[#allocation11 + $0x104] ss:$8 sps:$4 sm:$0xff]   ;;  %v623_v24 = vld [vmem:[#allocation8 + $0x18] sm:$0xff] }
 0x1c0   : > { %3000 = vmatprep.subr.bf16.mxu0 %v4047_v7 }
 0x1c2   : > { %1534 = vmatpush1.bf16.msra.mxu1 %v3619_v46  ;;  %v4049_v46 = vld [vmem:[#allocation11 + $0x90] ss:$8 sps:$4 sm:$0xff]  }
 0x1c3   : > { %1576 = vmatprep.subr.bf16.mxu1 %v3502_v45  ;;  %v3565_v45 = vcombine.low %v686_v30, %v690_v2  ;;  %3001 = vmatpush1.bf16.msra.mxu0 %v4049_v46  ;;  %v635_v30 = vld [vmem:[#allocation8 + $0x78] sm:$0xff]  ;;  %v3503_v2 = vcombine.low %v623_v24, %v627_v25 }
 0x1c4   : > { %3002 = vmatprep.subr.bf16.mxu0 %v4050_v48  ;;  %v3512_v32 = vcombine.high %v631_v61, %v635_v30  ;;  %v3511_v7 = vcombine.low %v631_v61, %v635_v30  ;;  %v651_v46 = vld [vmem:[#allocation8 + $0xf8] sm:$0xff] }
 0x1c5   : > { %1536 = vmatmul.mubr.bf16.vlgmr.msra.gmra.mrb[16].mxu1 %v5263_v3  ;;  %v655_v48 = vld [vmem:[#allocation8 + $0x118] sm:$0xff] }
 0x1c6   : > { %1545 = vmatprep.mubr.bf16.mxu1 %v5286_v34  ;;  %1577 = vmatpush1.bf16.msra.mxu1 %v3501_v51  ;;  %v4052_v51 = vld [vmem:[#allocation11 + $0xa0] ss:$8 sps:$4 sm:$0xff]  }
 0x1c7   : > { %1578 = vmatprep.subr.bf16.mxu1 %v3510_v52  ;;  %v3573_v52 = vcombine.low %v694_v4, %v698_v43  ;;  %3003 = vmatpush1.bf16.msra.mxu0 %v4052_v51  ;;  %v647_v43 = vld [vmem:[#allocation8 + $0xd8] sm:$0xff]  ;;  %v3536_v51 = vcombine.high %v655_v48, %v659_v44 }
 0x1c8   : > { %3004 = vmatprep.subr.bf16.mxu0 %v4053_v5  ;;  %v3527_v49 = vcombine.low %v647_v43, %v651_v46  ;;  %v3535_v5 = vcombine.low %v655_v48, %v659_v44 }
 0x1ca   : > { %1579 = vmatpush1.bf16.msra.mxu1 %v3509_v38  ;;  %v4055_v38 = vld [vmem:[#allocation11 + $0xb0] ss:$8 sps:$4 sm:$0xff]  }
 0x1cb   : > { %1580 = vmatprep.subr.bf16.mxu1 %v3518_v57  ;;  %v3590_v57 = vcombine.high %v710_v27, %v714_v37  ;;  %3005 = vmatpush1.bf16.msra.mxu0 %v4055_v38  ;;  %v675_v38 = vld [vmem:[#allocation8 + $0x1b8] sm:$0xff] }
 0x1cc   : > { %3006 = vmatprep.subr.bf16.mxu0 %v4056_v28  ;;  %v679_v28 = vld [vmem:[#allocation8 + $0x1d8] sm:$0xff] }
 0x1cd   : > { %1546 = vmatmul.mubr.bf16.gmra.mrb[20].mxu1 %v5288_v1 }
 0x1ce   : > { %1555 = vmatprep.mubr.bf16.mxu1 %v5308_v35  ;;  %1581 = vmatpush1.bf16.msra.mxu1 %v3517_v40  ;;  %v4058_v40 = vld [vmem:[#allocation11 + $0xc0] ss:$8 sps:$4 sm:$0xff]  }
 0x1cf   : > { %1582 = vmatprep.subr.bf16.mxu1 %v3526_v21  ;;  %v3589_v21 = vcombine.low %v710_v27, %v714_v37  ;;  %3007 = vmatpush1.bf16.msra.mxu0 %v4058_v40  ;;  %v671_v37 = vld [vmem:[#allocation8 + $0x198] sm:$0xff]  ;;  %v3560_v40 = vcombine.high %v679_v28, %v683_v16 }
 0x1d0   : > { %3008 = vmatprep.subr.bf16.mxu0 %v4059_v62  ;;  %v3551_v58 = vcombine.low %v671_v37, %v675_v38  ;;  %v3559_v62 = vcombine.low %v679_v28, %v683_v16 }
 0x1d2   : > { %1583 = vmatpush1.bf16.msra.mxu1 %v3525_v53  ;;  %v4061_v53 = vld [vmem:[#allocation11 + $0xd0] ss:$8 sps:$4 sm:$0xff]  }
 0x1d3   : > { %1584 = vmatprep.subr.bf16.mxu1 %v3534_v55  ;;  %v3606_v55 = vcombine.high %v726_v41, %v730_v9  ;;  %3009 = vmatpush1.bf16.msra.mxu0 %v4061_v53  ;;  %v699_v53 = vld [vmem:[#allocation8 + $0x278] sm:$0xff] }
 0x1d4   : > { %3010 = vmatprep.subr.bf16.mxu0 %v4062_v8  ;;  %v703_v8 = vld [vmem:[#allocation8 + $0x298] sm:$0xff] }
 0x1d5   : > { %1556 = vmatmul.mubr.bf16.gmra.mrb[24].mxu1 %v5310_v33 }
 0x1d6   : > { %1565 = vmatprep.mubr.bf16.mxu1 %v5322_v59  ;;  %1585 = vmatpush1.bf16.msra.mxu1 %v3533_v12  ;;  %v4064_v12 = vld [vmem:[#allocation11 + $0xe0] ss:$8 sps:$4 sm:$0xff]  }
 0x1d7   : > { %1586 = vmatprep.subr.bf16.mxu1 %v3542_v13  ;;  %v3605_v13 = vcombine.low %v726_v41, %v730_v9  ;;  %3011 = vmatpush1.bf16.msra.mxu0 %v4064_v12  ;;  %v695_v9 = vld [vmem:[#allocation8 + $0x258] sm:$0xff] }
 0x1d8   : > { %3012 = vmatprep.subr.bf16.mxu0 %v4065_v18 }
 0x1da   : > { %1587 = vmatpush1.bf16.msra.mxu1 %v3541_v17  ;;  %v4067_v17 = vld [vmem:[#allocation11 + $0xf0] ss:$8 sps:$4 sm:$0xff]  }
 0x1db   : > { %1588 = vmatprep.subr.bf16.mxu1 %v3550_v20  ;;  %v3613_v20 = vcombine.low %v734_v10, %v738_v11  ;;  %3013 = vmatpush1.bf16.msra.mxu0 %v4067_v17  ;;  %v707_v10 = vld [vmem:[#allocation8 + $0x2b8] sm:$0xff]  ;;  %v3575_v11 = vcombine.low %v695_v9, %v699_v53 }
 0x1dc   : > { %3055 = vmatprep.subr.bf16.mxu0 %v4070_v23  ;;  %v3584_v12 = vcombine.high %v703_v8, %v707_v10  ;;  %v3583_v18 = vcombine.low %v703_v8, %v707_v10  ;;  %v731_v23 = vld [vmem:[#allocation8 + $0x378] sm:$0xff] }
 0x1dd   : > { %1566 = vmatmul.mubr.bf16.gmra.mrb[28].mxu1 %v5324_v15 }
 0x1de   : > { %1589 = vmatpush1.bf16.msra.mxu1 %v3549_v60  ;;  %1608 = vmatprep.mubr.bf16.mxu1 %v5261_v31  ;;  %v3621_v60 = vcombine.low %v742_v19, %v746_v42  ;;  %v719_v19 = vld [vmem:[#allocation8 + $0x318] sm:$0xff] }
 0x1df   : > { %1590 = vmatprep.subr.bf16.mxu1 %v3558_v29  ;;  %v3504_v29 = vcombine.high %v623_v24, %v627_v25  ;;  %v723_v42 = vld [vmem:[#allocation8 + $0x338] sm:$0xff] }
 0x1e0   : > { %v3599_v24 = vcombine.low %v719_v19, %v723_v42 }
 0x1e2   : > { %1591 = vmatpush1.bf16.msra.mxu1 %v3557_v39  ;;  %v639_v39 = vld [vmem:[#allocation8 + $0x98] sm:$0xff] }
 0x1e3   : > { %1592 = vmatprep.subr.bf16.mxu1 %v3566_v6  ;;  %v643_v6 = vld [vmem:[#allocation8 + $0xb8] sm:$0xff] }
 0x1e4   : > { %v3520_v4 = vcombine.high %v639_v39, %v643_v6 }
 0x1e6   : > { %1593 = vmatpush1.bf16.msra.mxu1 %v3565_v45  ;;  %v3519_v45 = vcombine.low %v639_v39, %v643_v6 }
 0x1e7   : > { %1594 = vmatprep.subr.bf16.mxu1 %v3574_v47  ;;  %v3528_v47 = vcombine.high %v647_v43, %v651_v46 }
 0x1ea   : > { %1595 = vmatpush1.bf16.msra.mxu1 %v3573_v52  ;;  %v663_v52 = vld [vmem:[#allocation8 + $0x158] sm:$0xff] }
 0x1eb   : > { %1596 = vmatprep.subr.bf16.mxu1 %v3582_v56  ;;  %v667_v56 = vld [vmem:[#allocation8 + $0x178] sm:$0xff] }
 0x1ec   : > { %v3544_v27 = vcombine.high %v663_v52, %v667_v56 }
 0x1ee   : > { %1597 = vmatpush1.bf16.msra.mxu1 %v3581_v26  ;;  %v3543_v26 = vcombine.low %v663_v52, %v667_v56 }
 0x1ef   : > { %1598 = vmatprep.subr.bf16.mxu1 %v3590_v57  ;;  %v3552_v57 = vcombine.high %v671_v37, %v675_v38 }
 0x1f2   : > { %1599 = vmatpush1.bf16.msra.mxu1 %v3589_v21  ;;  %v687_v21 = vld [vmem:[#allocation8 + $0x218] sm:$0xff] }
 0x1f3   : > { %1600 = vmatprep.subr.bf16.mxu1 %v3598_v36  ;;  %v691_v36 = vld [vmem:[#allocation8 + $0x238] sm:$0xff] }
 0x1f4   : > { %v3568_v41 = vcombine.high %v687_v21, %v691_v36 }
 0x1f6   : > { %1601 = vmatpush1.bf16.msra.mxu1 %v3597_v54  ;;  %v3567_v54 = vcombine.low %v687_v21, %v691_v36 }
 0x1f7   : > { %1602 = vmatprep.subr.bf16.mxu1 %v3606_v55  ;;  %v3576_v55 = vcombine.high %v695_v9, %v699_v53 }
 0x1fa   : > { %1603 = vmatpush1.bf16.msra.mxu1 %v3605_v13  ;;  %v711_v13 = vld [vmem:[#allocation8 + $0x2d8] sm:$0xff] }
 0x1fb   : > { %1604 = vmatprep.subr.bf16.mxu1 %v3614_v14  ;;  %v715_v14 = vld [vmem:[#allocation8 + $0x2f8] sm:$0xff] }
 0x1fc   : > { %v3591_v17 = vcombine.low %v711_v13, %v715_v14 }
 0x1fe   : > { %1605 = vmatpush1.bf16.msra.mxu1 %v3613_v20  ;;  %v3600_v20 = vcombine.high %v719_v19, %v723_v42 }
 0x1ff   : > { %1606 = vmatprep.subr.bf16.mxu1 %v3622_v22  ;;  %v727_v22 = vld [vmem:[#allocation8 + $0x358] sm:$0xff] }
 0x200   : > { %v3608_v25 = vcombine.high %v727_v22, %v731_v23  ;;  %v3607_v61 = vcombine.low %v727_v22, %v731_v23 }
 0x202   : > { %1607 = vmatpush1.bf16.msra.mxu1 %v3621_v60  ;;  %v735_v60 = vld [vmem:[#allocation8 + $0x398] sm:$0xff] }
 0x203   : > { %1649 = vmatprep.subr.bf16.mxu1 %v3504_v29  ;;  %v739_v29 = vld [vmem:[#allocation8 + $0x3b8] sm:$0xff] }
 0x204   : > { %v3616_v30 = vcombine.high %v735_v60, %v739_v29  ;;  %v3615_v39 = vcombine.low %v735_v60, %v739_v29 }
 0x205   : > { %1609 = vmatmul.mubr.bf16.vlgmr.msra.gmra.mrb[32].mxu1 %v5263_v3 }
 0x206   : > { %1618 = vmatprep.mubr.bf16.mxu1 %v5286_v34  ;;  %1650 = vmatpush1.bf16.msra.mxu1 %v3503_v2  ;;  %v743_v2 = vld [vmem:[#allocation8 + $0x3d8] sm:$0xff] }
 0x207   : > { %1651 = vmatprep.subr.bf16.mxu1 %v3512_v32  ;;  %v747_v32 = vld [vmem:[#allocation8 + $0x3f8] sm:$0xff] }
 0x208   : > { %v3624_v6 = vcombine.high %v743_v2, %v747_v32 }
 0x20a   : > { %1652 = vmatpush1.bf16.msra.mxu1 %v3511_v7  ;;  %v3623_v7 = vcombine.low %v743_v2, %v747_v32 }
 0x20b   : > { %1653 = vmatprep.subr.bf16.mxu1 %v3520_v4  ;;  %v5349_v4 = vld [vmem:[#allocation10] sm:$0xff] }
 0x20c   : > { %v5354_v43 = vrot.slane %v5349_v4, %v5211_v0  ;;  %v5359_v46 = vrot.slane %v5349_v4, %v5208_v63 }
 0x20d   : > { %1619 = vmatmul.mubr.bf16.gmra.mrb[36].mxu1 %v5288_v1 }
 0x20e   : > { %1628 = vmatprep.mubr.bf16.mxu1 %v5308_v35  ;;  %1654 = vmatpush1.bf16.msra.mxu1 %v3519_v45 }
 0x20f   : > { %1655 = vmatprep.subr.bf16.mxu1 %v3528_v47 }
 0x212   : > { %1656 = vmatpush1.bf16.msra.mxu1 %v3527_v49 }
 0x213   : > { %1657 = vmatprep.subr.bf16.mxu1 %v3536_v51 }
 0x215   : > { %1629 = vmatmul.mubr.bf16.gmra.mrb[40].mxu1 %v5310_v33 }
 0x216   : > { %1638 = vmatprep.mubr.bf16.mxu1 %v5322_v59  ;;  %1658 = vmatpush1.bf16.msra.mxu1 %v3535_v5 }
 0x217   : > { %1659 = vmatprep.subr.bf16.mxu1 %v3544_v27 }
 0x21a   : > { %1660 = vmatpush1.bf16.msra.mxu1 %v3543_v26 }
 0x21b   : > { %1661 = vmatprep.subr.bf16.mxu1 %v3552_v57 }
 0x21d   : > { %1639 = vmatmul.mubr.bf16.gmra.mrb[44].mxu1 %v5324_v15 }
 0x21e   : > { %1662 = vmatpush1.bf16.msra.mxu1 %v3551_v58  ;;  %1681 = vmatprep.mubr.bf16.mxu1 %v5261_v31  ;;  %v3592_v31 = vcombine.high %v711_v13, %v715_v14 }
 0x21f   : > { %1663 = vmatprep.subr.bf16.mxu1 %v3560_v40 }
 0x222   : > { %1664 = vmatpush1.bf16.msra.mxu1 %v3559_v62 }
 0x223   : > { %1665 = vmatprep.subr.bf16.mxu1 %v3568_v41 }
 0x226   : > { %1666 = vmatpush1.bf16.msra.mxu1 %v3567_v54 }
 0x227   : > { %1667 = vmatprep.subr.bf16.mxu1 %v3576_v55 }
 0x22a   : > { %1668 = vmatpush1.bf16.msra.mxu1 %v3575_v11 }
 0x22b   : > { %1669 = vmatprep.subr.bf16.mxu1 %v3584_v12 }
 0x22e   : > { %1670 = vmatpush1.bf16.msra.mxu1 %v3583_v18 }
 0x22f   : > { %1671 = vmatprep.subr.bf16.mxu1 %v3592_v31 }
 0x232   : > { %1672 = vmatpush1.bf16.msra.mxu1 %v3591_v17 }
 0x233   : > { %1673 = vmatprep.subr.bf16.mxu1 %v3600_v20 }
 0x236   : > { %1674 = vmatpush1.bf16.msra.mxu1 %v3599_v24 }
 0x237   : > { %1675 = vmatprep.subr.bf16.mxu1 %v3608_v25 }
 0x23a   : > { %1676 = vmatpush1.bf16.msra.mxu1 %v3607_v61 }
 0x23b   : > { %1677 = vmatprep.subr.bf16.mxu1 %v3616_v30 }
 0x23e   : > { %1678 = vmatpush1.bf16.msra.mxu1 %v3615_v39 }
 0x23f   : > { %1679 = vmatprep.subr.bf16.mxu1 %v3624_v6 }
 0x242   : > { %1680 = vmatpush1.bf16.msra.mxu1 %v3623_v7 }
 0x245   : > { %1682 = vmatmul.mubr.bf16.vlgmr.msra.gmra.mrb[48].mxu1 %v5263_v3 }
 0x246   : > { %1691 = vmatprep.mubr.bf16.mxu1 %v5286_v34 }
 0x24d   : > { %1692 = vmatmul.mubr.bf16.gmra.mrb[52].mxu1 %v5288_v1 }
 0x24e   : > { %1701 = vmatprep.mubr.bf16.mxu1 %v5308_v35 }
 0x255   : > { %1702 = vmatmul.mubr.bf16.gmra.mrb[56].mxu1 %v5310_v33 }
 0x256   : > { %1711 = vmatprep.mubr.bf16.mxu1 %v5322_v59 }
 0x258   : > { %v1464_v3 = vpop.f32.mrb[0].mxu1 }
 0x259   : > { %v5362_v34 = vadd.f32 %v1464_v3, %v5354_v43  ;;  %v1466_v1 = vpop.f32.mrb[1].mxu1 }
 0x25a   : > { %v5365_v35 = vadd.f32 %v1466_v1, %v5359_v46  ;;  %v1468_v45 = vpop.f32.mrb[2].mxu1 }
 0x25b   : > { %v3625_v33 = vmul.f32 -1.442695, %v5362_v34  ;;  %v5369_v47 = vadd.f32 %v1468_v45, %v5354_v43  ;;  %v1470_v48 = vpop.f32.mrb[3].mxu1 }
 0x25c   : > { %v3626_v59 = vmul.f32 -1.442695, %v5365_v35  ;;  %v5373_v44 = vadd.f32 %v1470_v48, %v5359_v46 }
 0x25d   : > { %4228 = vpow2.f32 %v3625_v33  ;;  %v3633_v49 = vmul.f32 -1.442695, %v5369_v47  ;;  %1712 = vmatmul.mubr.bf16.gmra.mrb[60].mxu1 %v5324_v15 }
 0x25e   : > { %4230 = vpow2.f32 %v3626_v59  ;;  %v3634_v51 = vmul.f32 -1.442695, %v5373_v44 }
 0x25f   : > { %4232 = vpow2.f32 %v3633_v49 }
 0x260   : > { %4234 = vpow2.f32 %v3634_v51  ;;  %v1474_v52 = vpop.f32.mrb[4].mxu1 }
 0x261   : > { %v5379_v56 = vadd.f32 %v1474_v52, %v5354_v43  ;;  %v1476_v5 = vpop.f32.mrb[5].mxu1 }
 0x262   : > { %v5382_v27 = vadd.f32 %v1476_v5, %v5359_v46  ;;  %v1478_v37 = vpop.f32.mrb[6].mxu1 }
 0x263   : > { %v3641_v38 = vmul.f32 -1.442695, %v5379_v56  ;;  %v5386_v26 = vadd.f32 %v1478_v37, %v5354_v43  ;;  %v1480_v15 = vpop.f32.mrb[7].mxu1 }
 0x264   : > { %v3642_v57 = vmul.f32 -1.442695, %v5382_v27  ;;  %v5390_v28 = vadd.f32 %v1480_v15, %v5359_v46 }
 0x265   : > { %4236 = vpow2.f32 %v3641_v38  ;;  %v3649_v16 = vmul.f32 -1.442695, %v5386_v26 }
 0x266   : > { %4238 = vpow2.f32 %v3642_v57  ;;  %v3650_v58 = vmul.f32 -1.442695, %v5390_v28 }
 0x267   : > { %v4229_v40 = vpop.eup %4228  ;;  %4240 = vpow2.f32 %v3649_v16 }
 0x268   : > { %v4231_v21 = vpop.eup %4230  ;;  %v1914_v36 = vadd.f32 1.0, %v4229_v40  ;;  %4242 = vpow2.f32 %v3650_v58  ;;  %v1484_v62 = vpop.f32.mrb[8].mxu1 }
 0x269   : > { %v4233_v41 = vpop.eup %4232  ;;  %v1915_v9 = vadd.f32 1.0, %v4231_v21  ;;  %v5395_v53 = vadd.f32 %v1484_v62, %v5354_v43  ;;  %v1486_v54 = vpop.f32.mrb[9].mxu1  ;;  %v4068_v62 = vld [vmem:[#allocation11 + $0x100] ss:$8 sps:$4 sm:$0xff]  }
 0x26a   : > { %v4235_v55 = vpop.eup %4234  ;;  %4244 = vrcp.f32 %v1914_v36  ;;  %v1922_v8 = vadd.f32 1.0, %v4233_v41  ;;  %v5398_v10 = vadd.f32 %v1486_v54, %v5359_v46  ;;  %v1488_v11 = vpop.f32.mrb[10].mxu1 }
 0x26b   : > { %4246 = vrcp.f32 %v1915_v9  ;;  %v1923_v12 = vadd.f32 1.0, %v4235_v55  ;;  %v3657_v13 = vmul.f32 -1.442695, %v5395_v53  ;;  %v5402_v14 = vadd.f32 %v1488_v11, %v5354_v43  ;;  %v1490_v18 = vpop.f32.mrb[11].mxu1  ;;  %v4073_v9 = vld [vmem:[#allocation11 + $0x114] ss:$8 sps:$4 sm:$0xff]  }
 0x26c   : > { %4248 = vrcp.f32 %v1922_v8  ;;  %v3658_v31 = vmul.f32 -1.442695, %v5398_v10  ;;  %v5406_v19 = vadd.f32 %v1490_v18, %v5359_v46 }
 0x26d   : > { %4250 = vrcp.f32 %v1923_v12  ;;  %v3665_v42 = vmul.f32 -1.442695, %v5402_v14 }
 0x26e   : > { %4252 = vpow2.f32 %v3657_v13  ;;  %v3666_v17 = vmul.f32 -1.442695, %v5406_v19  ;;  %v4076_v13 = vld [vmem:[#allocation11 + $0x124] ss:$8 sps:$4 sm:$0xff]  }
 0x26f   : > { %v4237_v20 = vpop.eup %4236  ;;  %4254 = vpow2.f32 %v3658_v31 }
 0x270   : > { %v4239_v22 = vpop.eup %4238  ;;  %v1930_v23 = vadd.f32 1.0, %v4237_v20  ;;  %4256 = vpow2.f32 %v3665_v42  ;;  %v1494_v24 = vpop.f32.mrb[12].mxu1 }
 0x271   : > { %v4241_v25 = vpop.eup %4240  ;;  %v1931_v60 = vadd.f32 1.0, %v4239_v22  ;;  %4258 = vpow2.f32 %v3666_v17  ;;  %v5411_v29 = vadd.f32 %v1494_v24, %v5354_v43  ;;  %v1496_v61 = vpop.f32.mrb[13].mxu1 }
 0x272   : > { %v4243_v30 = vpop.eup %4242  ;;  %4260 = vrcp.f32 %v1930_v23  ;;  %v1938_v2 = vadd.f32 1.0, %v4241_v25  ;;  %v5414_v32 = vadd.f32 %v1496_v61, %v5359_v46  ;;  %v1498_v39 = vpop.f32.mrb[14].mxu1 }
 0x273   : > { %4262 = vrcp.f32 %v1931_v60  ;;  %v1939_v6 = vadd.f32 1.0, %v4243_v30  ;;  %v3673_v7 = vmul.f32 -1.442695, %v5411_v29  ;;  %v5418_v3 = vadd.f32 %v1498_v39, %v5354_v43  ;;  %v1500_v1 = vpop.f32.mrb[15].mxu1  ;;  %v4074_v60 = vld [vmem:[#allocation11 + $0x120] ss:$8 sps:$4 sm:$0xff]  }
 0x274   : > { %v4245_v45 = vpop.eup %4244  ;;  %4264 = vrcp.f32 %v1938_v2  ;;  %v3674_v33 = vmul.f32 -1.442695, %v5414_v32  ;;  %v5422_v48 = vadd.f32 %v1500_v1, %v5359_v46 }
 0x275   : > { %v4247_v59 = vpop.eup %4246  ;;  %4266 = vrcp.f32 %v1939_v6  ;;  %v3681_v49 = vmul.f32 -1.442695, %v5418_v3  ;;  %v2106_v43 = vmul.f32 %v4245_v45, %v5362_v34  ;;  %v4082_v6 = vld [vmem:[#allocation11 + $0x144] ss:$8 sps:$4 sm:$0xff]  }
 0x276   : > { %v4249_v51 = vpop.eup %4248  ;;  %4268 = vpow2.f32 %v3673_v7  ;;  %v3682_v52 = vmul.f32 -1.442695, %v5422_v48  ;;  %v2107_v15 = vmul.f32 %v4247_v59, %v5365_v35 }
 0x277   : > { %v4251_v5 = vpop.eup %4250  ;;  %v2114_v37 = vmul.f32 %v4249_v51, %v5369_v47  ;;  %4270 = vpow2.f32 %v3674_v33 }
 0x278   : > { %v4253_v38 = vpop.eup %4252  ;;  %4272 = vpow2.f32 %v3681_v49  ;;  %v2115_v46 = vmul.f32 %v4251_v5, %v5373_v44  ;;  %v4071_v44 = vld [vmem:[#allocation11 + $0x110] ss:$8 sps:$4 sm:$0xff]   ;;  %v4085_v5 = vld [vmem:[#allocation11 + $0x154] ss:$8 sps:$4 sm:$0xff]  }
 0x279   : > { %v4255_v57 = vpop.eup %4254  ;;  %v1946_v16 = vadd.f32 1.0, %v4253_v38  ;;  %4274 = vpow2.f32 %v3682_v52  ;;  %v2170_v58 = vpack.c.bf16 %v2114_v37, %v2106_v43  ;;  %v4080_v52 = vld [vmem:[#allocation11 + $0x140] ss:$8 sps:$4 sm:$0xff]  }
 0x27a   : > { %v4257_v40 = vpop.eup %4256  ;;  %v1947_v21 = vadd.f32 1.0, %v4255_v57  ;;  %v2171_v36 = vpack.c.bf16 %v2115_v46, %v2107_v15  ;;  %v4083_v15 = vld [vmem:[#allocation11 + $0x150] ss:$8 sps:$4 sm:$0xff]  }
 0x27b   : > { %v4259_v41 = vpop.eup %4258  ;;  %4276 = vrcp.f32 %v1946_v16  ;;  %v1954_v34 = vadd.f32 1.0, %v4257_v40  ;;  %v760_v16 = vsub.s32 2, %v5203_v50  ;;  %v764_v40 = vsub.s32 3, %v5203_v50 }
 0x27c   : > { %v4261_v47 = vpop.eup %4260  ;;  %4278 = vrcp.f32 %v1947_v21  ;;  %v1955_v54 = vadd.f32 1.0, %v4259_v41  ;;  %3014 = vmatprep.mubr.bf16.mxu0 %v2171_v36  ;;  %v4086_v36 = vld [vmem:[#allocation11 + $0x160] ss:$8 sps:$4 sm:$0xff]   ;;  %v4094_v41 = vld [vmem:[#allocation11 + $0x184] ss:$8 sps:$4 sm:$0xff]  }
 0x27d   : > { %v4263_v55 = vpop.eup %4262  ;;  %4280 = vrcp.f32 %v1954_v34  ;;  %3015 = vmatmul.mubr.bf16.vlgmr.msra.gmra.mrb[0].mxu0 %v2170_v58  ;;  %v2122_v11 = vmul.f32 %v4261_v47, %v5379_v56 }
 0x27e   : > { %v4265_v35 = vpop.eup %4264  ;;  %4282 = vrcp.f32 %v1955_v54  ;;  %3056 = vmatpush1.bf16.msra.mxu0 %v4068_v62  ;;  %v2123_v31 = vmul.f32 %v4263_v55, %v5382_v27  ;;  %v4091_v62 = vld [vmem:[#allocation11 + $0x174] ss:$8 sps:$4 sm:$0xff]  }
 0x27f   : > { %v4267_v8 = vpop.eup %4266  ;;  %v2130_v12 = vmul.f32 %v4265_v35, %v5386_v26  ;;  %3057 = vmatprep.subr.bf16.mxu0 %v4073_v9  ;;  %v4079_v26 = vld [vmem:[#allocation11 + $0x134] ss:$8 sps:$4 sm:$0xff]  }
 0x280   : > { %v4269_v18 = vpop.eup %4268  ;;  %v2131_v42 = vmul.f32 %v4267_v8, %v5390_v28  ;;  %v4077_v28 = vld [vmem:[#allocation11 + $0x130] ss:$8 sps:$4 sm:$0xff]   ;;  %v4092_v8 = vld [vmem:[#allocation11 + $0x180] ss:$8 sps:$4 sm:$0xff]  }
 0x281   : > { %v4271_v17 = vpop.eup %4270  ;;  %v1962_v20 = vadd.f32 1.0, %v4269_v18  ;;  %v2178_v22 = vpack.c.bf16 %v2130_v12, %v2122_v11 }
 0x282   : > { %v4273_v23 = vpop.eup %4272  ;;  %v1963_v24 = vadd.f32 1.0, %v4271_v17  ;;  %3058 = vmatpush1.bf16.msra.mxu0 %v4071_v44  ;;  %v2179_v25 = vpack.c.bf16 %v2131_v42, %v2123_v31  ;;  %v4095_v42 = vld [vmem:[#allocation11 + $0x190] ss:$8 sps:$4 sm:$0xff]  }
 0x283   : > { %v4275_v61 = vpop.eup %4274  ;;  %4284 = vrcp.f32 %v1962_v20  ;;  %v1970_v56 = vadd.f32 1.0, %v4273_v23  ;;  %3059 = vmatprep.subr.bf16.mxu0 %v4076_v13  ;;  %v4097_v13 = vld [vmem:[#allocation11 + $0x194] ss:$8 sps:$4 sm:$0xff]   ;;  %v4100_v20 = vld [vmem:[#allocation11 + $0x1a4] ss:$8 sps:$4 sm:$0xff]  }
 0x284   : > { %4286 = vrcp.f32 %v1963_v24  ;;  %v1971_v30 = vadd.f32 1.0, %v4275_v61  ;;  %3024 = vmatprep.mubr.bf16.mxu0 %v2179_v25 }
 0x285   : > { %v4277_v2 = vpop.eup %4276  ;;  %4288 = vrcp.f32 %v1970_v56  ;;  %3025 = vmatmul.mubr.bf16.gmra.mrb[4].mxu0 %v2178_v22 }
 0x286   : > { %v4279_v27 = vpop.eup %4278  ;;  %4290 = vrcp.f32 %v1971_v30  ;;  %3060 = vmatpush1.bf16.msra.mxu0 %v4074_v60  ;;  %v2138_v1 = vmul.f32 %v4277_v2, %v5395_v53 }
 0x287   : > { %v4281_v39 = vpop.eup %4280  ;;  %3061 = vmatprep.subr.bf16.mxu0 %v4079_v26  ;;  %v2139_v33 = vmul.f32 %v4279_v27, %v5398_v10  ;;  %v4098_v26 = vld [vmem:[#allocation11 + $0x1a0] ss:$8 sps:$4 sm:$0xff]   ;;  %v4103_v27 = vld [vmem:[#allocation11 + $0x1b4] ss:$8 sps:$4 sm:$0xff]  }
 0x288   : > { %v4283_v7 = vpop.eup %4282  ;;  %v2146_v45 = vmul.f32 %v4281_v39, %v5402_v14 }
 0x289   : > { %v2147_v59 = vmul.f32 %v4283_v7, %v5406_v19  ;;  %v4088_v19 = vld [vmem:[#allocation11 + $0x164] ss:$8 sps:$4 sm:$0xff]   ;;  %v4101_v7 = vld [vmem:[#allocation11 + $0x1b0] ss:$8 sps:$4 sm:$0xff]  }
 0x28a   : > { %3062 = vmatpush1.bf16.msra.mxu0 %v4077_v28  ;;  %v2186_v49 = vpack.c.bf16 %v2146_v45, %v2138_v1 }
 0x28b   : > { %v2187_v51 = vpack.c.bf16 %v2147_v59, %v2139_v33  ;;  %3063 = vmatprep.subr.bf16.mxu0 %v4082_v6  ;;  %v4106_v59 = vld [vmem:[#allocation11 + $0x1c4] ss:$8 sps:$4 sm:$0xff]  }
 0x28d   : > { %v4285_v43 = vpop.eup %4284  ;;  %3034 = vmatprep.mubr.bf16.mxu0 %v2187_v51 }
 0x28e   : > { %v4287_v37 = vpop.eup %4286  ;;  %3035 = vmatmul.mubr.bf16.gmra.mrb[8].mxu0 %v2186_v49  ;;  %v2154_v14 = vmul.f32 %v4285_v43, %v5411_v29  ;;  %v5445_v29 = vrot.slane %v5349_v4, %v760_v16 }
 0x28f   : > { %v4289_v38 = vpop.eup %4288  ;;  %3064 = vmatpush1.bf16.msra.mxu0 %v4080_v52  ;;  %v2155_v46 = vmul.f32 %v4287_v37, %v5414_v32  ;;  %v4089_v32 = vld [vmem:[#allocation11 + $0x170] ss:$8 sps:$4 sm:$0xff]  }
 0x290   : > { %v4291_v53 = vpop.eup %4290  ;;  %v2162_v10 = vmul.f32 %v4289_v38, %v5418_v3  ;;  %3065 = vmatprep.subr.bf16.mxu0 %v4085_v5  ;;  %v5448_v3 = vrot.slane %v5349_v4, %v764_v40 }
 0x291   : > { %v2163_v57 = vmul.f32 %v4291_v53, %v5422_v48 }
 0x292   : > { %v2194_v58 = vpack.c.bf16 %v2162_v10, %v2154_v14 }
 0x293   : > { %3066 = vmatpush1.bf16.msra.mxu0 %v4083_v15  ;;  %v2195_v21 = vpack.c.bf16 %v2163_v57, %v2155_v46  ;;  %v4104_v46 = vld [vmem:[#allocation11 + $0x1c0] ss:$8 sps:$4 sm:$0xff]  }
 0x294   : > { %3067 = vmatprep.subr.bf16.mxu0 %v4088_v19 }
 0x295   : > { %3044 = vmatprep.mubr.bf16.mxu0 %v2195_v21 }
 0x296   : > { %3045 = vmatmul.mubr.bf16.gmra.mrb[12].mxu0 %v2194_v58  ;;  %v4109_v58 = vld [vmem:[#allocation11 + $0x1d4] ss:$8 sps:$4 sm:$0xff]  }
 0x297   : > { %3068 = vmatpush1.bf16.msra.mxu0 %v4086_v36 }
 0x298   : > { %v1537_v48 = vpop.f32.mrb[16].mxu1  ;;  %3069 = vmatprep.subr.bf16.mxu0 %v4091_v62  ;;  %v4107_v62 = vld [vmem:[#allocation11 + $0x1d0] ss:$8 sps:$4 sm:$0xff]  }
 0x299   : > { %v5451_v34 = vadd.f32 %v1537_v48, %v5445_v29  ;;  %v1539_v9 = vpop.f32.mrb[17].mxu1 }
 0x29a   : > { %v5454_v47 = vadd.f32 %v1539_v9, %v5448_v3  ;;  %v1541_v54 = vpop.f32.mrb[18].mxu1  ;;  %v4112_v9 = vld [vmem:[#allocation11 + $0x1e4] ss:$8 sps:$4 sm:$0xff]  }
 0x29b   : > { %v3627_v55 = vmul.f32 -1.442695, %v5451_v34  ;;  %v5458_v35 = vadd.f32 %v1541_v54, %v5445_v29  ;;  %3070 = vmatpush1.bf16.msra.mxu0 %v4089_v32  ;;  %v1543_v44 = vpop.f32.mrb[19].mxu1 }
 0x29c   : > { %v3628_v11 = vmul.f32 -1.442695, %v5454_v47  ;;  %v5462_v12 = vadd.f32 %v1543_v44, %v5448_v3  ;;  %3071 = vmatprep.subr.bf16.mxu0 %v4094_v41 }
 0x29d   : > { %4292 = vpow2.f32 %v3627_v55  ;;  %v3635_v18 = vmul.f32 -1.442695, %v5458_v35 }
 0x29e   : > { %4294 = vpow2.f32 %v3628_v11  ;;  %v3636_v31 = vmul.f32 -1.442695, %v5462_v12 }
 0x29f   : > { %4296 = vpow2.f32 %v3635_v18  ;;  %3072 = vmatpush1.bf16.msra.mxu0 %v4092_v8 }
 0x2a0   : > { %4298 = vpow2.f32 %v3636_v31  ;;  %v1547_v17 = vpop.f32.mrb[20].mxu1  ;;  %3073 = vmatprep.subr.bf16.mxu0 %v4097_v13 }
 0x2a1   : > { %v5467_v22 = vadd.f32 %v1547_v17, %v5445_v29  ;;  %v1549_v23 = vpop.f32.mrb[21].mxu1 }
 0x2a2   : > { %v5470_v24 = vadd.f32 %v1549_v23, %v5448_v3  ;;  %v1551_v25 = vpop.f32.mrb[22].mxu1 }
 0x2a3   : > { %v3643_v60 = vmul.f32 -1.442695, %v5467_v22  ;;  %v5474_v61 = vadd.f32 %v1551_v25, %v5445_v29  ;;  %3074 = vmatpush1.bf16.msra.mxu0 %v4095_v42  ;;  %v1553_v56 = vpop.f32.mrb[23].mxu1  ;;  %v4110_v25 = vld [vmem:[#allocation11 + $0x1e0] ss:$8 sps:$4 sm:$0xff]  }
 0x2a4   : > { %v3644_v30 = vmul.f32 -1.442695, %v5470_v24  ;;  %v5478_v2 = vadd.f32 %v1553_v56, %v5448_v3  ;;  %3075 = vmatprep.subr.bf16.mxu0 %v4100_v20 }
 0x2a5   : > { %4300 = vpow2.f32 %v3643_v60  ;;  %v3651_v28 = vmul.f32 -1.442695, %v5474_v61 }
 0x2a6   : > { %4302 = vpow2.f32 %v3644_v30  ;;  %v3652_v39 = vmul.f32 -1.442695, %v5478_v2  ;;  %v4115_v30 = vld [vmem:[#allocation11 + $0x1f4] ss:$8 sps:$4 sm:$0xff]  }
 0x2a7   : > { %v4293_v6 = vpop.eup %4292  ;;  %4304 = vpow2.f32 %v3651_v28  ;;  %3076 = vmatpush1.bf16.msra.mxu0 %v4098_v26 }
 0x2a8   : > { %v4295_v1 = vpop.eup %4294  ;;  %v1916_v45 = vadd.f32 1.0, %v4293_v6  ;;  %4306 = vpow2.f32 %v3652_v39  ;;  %v1557_v33 = vpop.f32.mrb[24].mxu1  ;;  %3077 = vmatprep.subr.bf16.mxu0 %v4103_v27 }
 0x2a9   : > { %v4297_v49 = vpop.eup %4296  ;;  %v1917_v51 = vadd.f32 1.0, %v4295_v1  ;;  %v5483_v52 = vadd.f32 %v1557_v33, %v5445_v29  ;;  %v1559_v5 = vpop.f32.mrb[25].mxu1 }
 0x2aa   : > { %v4299_v43 = vpop.eup %4298  ;;  %4308 = vrcp.f32 %v1916_v45  ;;  %v1924_v37 = vadd.f32 1.0, %v4297_v49  ;;  %v5486_v38 = vadd.f32 %v1559_v5, %v5448_v3  ;;  %v1561_v15 = vpop.f32.mrb[26].mxu1  ;;  %v4113_v45 = vld [vmem:[#allocation11 + $0x1f0] ss:$8 sps:$4 sm:$0xff]   ;;  %v4118_v49 = vld [vmem:[#allocation11 + $0x204] ss:$8 sps:$4 sm:$0xff]  }
 0x2ab   : > { %4310 = vrcp.f32 %v1917_v51  ;;  %v1925_v53 = vadd.f32 1.0, %v4299_v43  ;;  %v3659_v14 = vmul.f32 -1.442695, %v5483_v52  ;;  %v5490_v10 = vadd.f32 %v1561_v15, %v5445_v29  ;;  %3078 = vmatpush1.bf16.msra.mxu0 %v4101_v7  ;;  %v1563_v19 = vpop.f32.mrb[27].mxu1 }
 0x2ac   : > { %4312 = vrcp.f32 %v1924_v37  ;;  %v3660_v57 = vmul.f32 -1.442695, %v5486_v38  ;;  %v5494_v16 = vadd.f32 %v1563_v19, %v5448_v3  ;;  %3079 = vmatprep.subr.bf16.mxu0 %v4106_v59 }
 0x2ad   : > { %4314 = vrcp.f32 %v1925_v53  ;;  %v3667_v40 = vmul.f32 -1.442695, %v5490_v10 }
 0x2ae   : > { %4316 = vpow2.f32 %v3659_v14  ;;  %v3668_v21 = vmul.f32 -1.442695, %v5494_v16  ;;  %v4116_v14 = vld [vmem:[#allocation11 + $0x200] ss:$8 sps:$4 sm:$0xff]  }
 0x2af   : > { %v4301_v36 = vpop.eup %4300  ;;  %4318 = vpow2.f32 %v3660_v57  ;;  %3080 = vmatpush1.bf16.msra.mxu0 %v4104_v46 }
 0x2b0   : > { %v4303_v32 = vpop.eup %4302  ;;  %v1932_v48 = vadd.f32 1.0, %v4301_v36  ;;  %4320 = vpow2.f32 %v3667_v40  ;;  %v1567_v41 = vpop.f32.mrb[28].mxu1  ;;  %3081 = vmatprep.subr.bf16.mxu0 %v4109_v58  ;;  %v4119_v36 = vld [vmem:[#allocation11 + $0x210] ss:$8 sps:$4 sm:$0xff]  }
 0x2b1   : > { %v4305_v54 = vpop.eup %4304  ;;  %v1933_v55 = vadd.f32 1.0, %v4303_v32  ;;  %4322 = vpow2.f32 %v3668_v21  ;;  %v5499_v44 = vadd.f32 %v1567_v41, %v5445_v29  ;;  %v1569_v8 = vpop.f32.mrb[29].mxu1  ;;  %v4124_v41 = vld [vmem:[#allocation11 + $0x224] ss:$8 sps:$4 sm:$0xff]  }
 0x2b2   : > { %v4307_v11 = vpop.eup %4306  ;;  %4324 = vrcp.f32 %v1932_v48  ;;  %v1940_v13 = vadd.f32 1.0, %v4305_v54  ;;  %v5502_v18 = vadd.f32 %v1569_v8, %v5448_v3  ;;  %v1571_v31 = vpop.f32.mrb[30].mxu1 }
 0x2b3   : > { %4326 = vrcp.f32 %v1933_v55  ;;  %v1941_v42 = vadd.f32 1.0, %v4307_v11  ;;  %v3675_v17 = vmul.f32 -1.442695, %v5499_v44  ;;  %v5506_v20 = vadd.f32 %v1571_v31, %v5445_v29  ;;  %3082 = vmatpush1.bf16.msra.mxu0 %v4107_v62  ;;  %v1573_v23 = vpop.f32.mrb[31].mxu1 }
 0x2b4   : > { %v4309_v60 = vpop.eup %4308  ;;  %4328 = vrcp.f32 %v1940_v13  ;;  %v3676_v56 = vmul.f32 -1.442695, %v5502_v18  ;;  %v5510_v26 = vadd.f32 %v1573_v23, %v5448_v3  ;;  %3083 = vmatprep.subr.bf16.mxu0 %v4112_v9 }
 0x2b5   : > { %v4311_v27 = vpop.eup %4310  ;;  %4330 = vrcp.f32 %v1941_v42  ;;  %v3683_v28 = vmul.f32 -1.442695, %v5506_v20  ;;  %v2108_v7 = vmul.f32 %v4309_v60, %v5451_v34 }
 0x2b6   : > { %v4313_v39 = vpop.eup %4312  ;;  %4332 = vpow2.f32 %v3675_v17  ;;  %v3684_v29 = vmul.f32 -1.442695, %v5510_v26  ;;  %v2109_v33 = vmul.f32 %v4311_v27, %v5454_v47  ;;  %v4130_v27 = vld [vmem:[#allocation11 + $0x244] ss:$8 sps:$4 sm:$0xff]  }
 0x2b7   : > { %v4315_v6 = vpop.eup %4314  ;;  %v2116_v1 = vmul.f32 %v4313_v39, %v5458_v35  ;;  %4334 = vpow2.f32 %v3676_v56  ;;  %3084 = vmatpush1.bf16.msra.mxu0 %v4110_v25  ;;  %v4125_v25 = vld [vmem:[#allocation11 + $0x230] ss:$8 sps:$4 sm:$0xff]  }
 0x2b8   : > { %v4317_v3 = vpop.eup %4316  ;;  %v2117_v59 = vmul.f32 %v4315_v6, %v5462_v12  ;;  %4336 = vpow2.f32 %v3683_v28  ;;  %3085 = vmatprep.subr.bf16.mxu0 %v4115_v30  ;;  %v4121_v12 = vld [vmem:[#allocation11 + $0x214] ss:$8 sps:$4 sm:$0xff]  }
 0x2b9   : > { %v4319_v51 = vpop.eup %4318  ;;  %v2172_v5 = vpack.c.bf16 %v2116_v1, %v2108_v7  ;;  %v1948_v43 = vadd.f32 1.0, %v4317_v3  ;;  %4338 = vpow2.f32 %v3684_v29  ;;  %v4128_v7 = vld [vmem:[#allocation11 + $0x240] ss:$8 sps:$4 sm:$0xff]   ;;  %v4133_v1 = vld [vmem:[#allocation11 + $0x254] ss:$8 sps:$4 sm:$0xff]  }
 0x2ba   : > { %v4321_v37 = vpop.eup %4320  ;;  %v1949_v15 = vadd.f32 1.0, %v4319_v51  ;;  %v2173_v34 = vpack.c.bf16 %v2117_v59, %v2109_v33 }
 0x2bb   : > { %v4323_v53 = vpop.eup %4322  ;;  %4340 = vrcp.f32 %v1948_v43  ;;  %v1956_v35 = vadd.f32 1.0, %v4321_v37  ;;  %3086 = vmatpush1.bf16.msra.mxu0 %v4113_v45  ;;  %v772_v37 = vsub.s32 5, %v5203_v50 }
 0x2bc   : > { %v4325_v19 = vpop.eup %4324  ;;  %4342 = vrcp.f32 %v1949_v15  ;;  %v1957_v47 = vadd.f32 1.0, %v4323_v53  ;;  %3087 = vmatprep.mubr.bf16.mxu0 %v2173_v34  ;;  %3128 = vmatprep.subr.bf16.mxu0 %v4118_v49  ;;  %v4134_v34 = vld [vmem:[#allocation11 + $0x260] ss:$8 sps:$4 sm:$0xff]   ;;  %v4139_v53 = vld [vmem:[#allocation11 + $0x274] ss:$8 sps:$4 sm:$0xff]  }
 0x2bd   : > { %v4327_v46 = vpop.eup %4326  ;;  %4344 = vrcp.f32 %v1956_v35  ;;  %v2124_v40 = vmul.f32 %v4325_v19, %v5467_v22  ;;  %v4142_v35 = vld [vmem:[#allocation11 + $0x284] ss:$8 sps:$4 sm:$0xff]  }
 0x2be   : > { %v4329_v57 = vpop.eup %4328  ;;  %4346 = vrcp.f32 %v1957_v47  ;;  %3088 = vmatmul.mubr.bf16.vlgmr.msra.gmra.mrb[0].mxu0 %v2172_v5  ;;  %v2125_v32 = vmul.f32 %v4327_v46, %v5470_v24  ;;  %v4127_v24 = vld [vmem:[#allocation11 + $0x234] ss:$8 sps:$4 sm:$0xff]   ;;  %v768_v5 = vsub.s32 4, %v5203_v50 }
 0x2bf   : > { %v4331_v58 = vpop.eup %4330  ;;  %v2132_v21 = vmul.f32 %v4329_v57, %v5474_v61  ;;  %3129 = vmatpush1.bf16.msra.mxu0 %v4116_v14  ;;  %v4122_v61 = vld [vmem:[#allocation11 + $0x220] ss:$8 sps:$4 sm:$0xff]  }
 0x2c0   : > { %v4333_v62 = vpop.eup %4332  ;;  %v2133_v48 = vmul.f32 %v4331_v58, %v5478_v2  ;;  %3130 = vmatprep.subr.bf16.mxu0 %v4121_v12  ;;  %v4140_v58 = vld [vmem:[#allocation11 + $0x280] ss:$8 sps:$4 sm:$0xff]  }
 0x2c1   : > { %v4335_v9 = vpop.eup %4334  ;;  %v1964_v54 = vadd.f32 1.0, %v4333_v62  ;;  %v2180_v55 = vpack.c.bf16 %v2132_v21, %v2124_v40 }
 0x2c2   : > { %v4337_v8 = vpop.eup %4336  ;;  %v1965_v11 = vadd.f32 1.0, %v4335_v9  ;;  %v2181_v13 = vpack.c.bf16 %v2133_v48, %v2125_v32  ;;  %v4143_v48 = vld [vmem:[#allocation11 + $0x290] ss:$8 sps:$4 sm:$0xff]   ;;  %v4148_v9 = vld [vmem:[#allocation11 + $0x2a4] ss:$8 sps:$4 sm:$0xff]  }
 0x2c3   : > { %v4339_v31 = vpop.eup %4338  ;;  %4348 = vrcp.f32 %v1964_v54  ;;  %v1972_v22 = vadd.f32 1.0, %v4337_v8  ;;  %3131 = vmatpush1.bf16.msra.mxu0 %v4119_v36  ;;  %v4145_v36 = vld [vmem:[#allocation11 + $0x294] ss:$8 sps:$4 sm:$0xff]  }
 0x2c4   : > { %4350 = vrcp.f32 %v1965_v11  ;;  %v1973_v42 = vadd.f32 1.0, %v4339_v31  ;;  %3097 = vmatprep.mubr.bf16.mxu0 %v2181_v13  ;;  %3132 = vmatprep.subr.bf16.mxu0 %v4124_v41 }
 0x2c5   : > { %v4341_v17 = vpop.eup %4340  ;;  %4352 = vrcp.f32 %v1972_v22 }
 0x2c6   : > { %v4343_v2 = vpop.eup %4342  ;;  %4354 = vrcp.f32 %v1973_v42  ;;  %3098 = vmatmul.mubr.bf16.gmra.mrb[4].mxu0 %v2180_v55  ;;  %v2140_v56 = vmul.f32 %v4341_v17, %v5483_v52  ;;  %v4131_v52 = vld [vmem:[#allocation11 + $0x250] ss:$8 sps:$4 sm:$0xff]   ;;  %v4151_v17 = vld [vmem:[#allocation11 + $0x2b4] ss:$8 sps:$4 sm:$0xff]  }
 0x2c7   : > { %v4345_v23 = vpop.eup %4344  ;;  %3133 = vmatpush1.bf16.msra.mxu0 %v4122_v61  ;;  %v2141_v28 = vmul.f32 %v4343_v2, %v5486_v38  ;;  %v4146_v61 = vld [vmem:[#allocation11 + $0x2a0] ss:$8 sps:$4 sm:$0xff]  }
 0x2c8   : > { %v4347_v60 = vpop.eup %4346  ;;  %v2148_v30 = vmul.f32 %v4345_v23, %v5490_v10  ;;  %3134 = vmatprep.subr.bf16.mxu0 %v4127_v24 }
 0x2c9   : > { %v2149_v39 = vmul.f32 %v4347_v60, %v5494_v16  ;;  %v4136_v16 = vld [vmem:[#allocation11 + $0x264] ss:$8 sps:$4 sm:$0xff]   ;;  %v4149_v60 = vld [vmem:[#allocation11 + $0x2b0] ss:$8 sps:$4 sm:$0xff]  }
 0x2ca   : > { %v2188_v29 = vpack.c.bf16 %v2148_v30, %v2140_v56 }
 0x2cb   : > { %3135 = vmatpush1.bf16.msra.mxu0 %v4125_v25  ;;  %v2189_v6 = vpack.c.bf16 %v2149_v39, %v2141_v28  ;;  %v4154_v28 = vld [vmem:[#allocation11 + $0x2c4] ss:$8 sps:$4 sm:$0xff]  }
 0x2cc   : > { %3136 = vmatprep.subr.bf16.mxu0 %v4130_v27 }
 0x2cd   : > { %v4349_v45 = vpop.eup %4348  ;;  %3107 = vmatprep.mubr.bf16.mxu0 %v2189_v6 }
 0x2ce   : > { %v4351_v3 = vpop.eup %4350  ;;  %3108 = vmatmul.mubr.bf16.gmra.mrb[8].mxu0 %v2188_v29  ;;  %v2156_v59 = vmul.f32 %v4349_v45, %v5499_v44  ;;  %v5533_v44 = vrot.slane %v5349_v4, %v768_v5  ;;  %v4157_v5 = vld [vmem:[#allocation11 + $0x2d4] ss:$8 sps:$4 sm:$0xff]  }
 0x2cf   : > { %v4353_v33 = vpop.eup %4352  ;;  %3137 = vmatpush1.bf16.msra.mxu0 %v4128_v7  ;;  %v2157_v49 = vmul.f32 %v4351_v3, %v5502_v18  ;;  %v4137_v18 = vld [vmem:[#allocation11 + $0x270] ss:$8 sps:$4 sm:$0xff]  }
 0x2d0   : > { %v4355_v10 = vpop.eup %4354  ;;  %v2164_v38 = vmul.f32 %v4353_v33, %v5506_v20  ;;  %3138 = vmatprep.subr.bf16.mxu0 %v4133_v1  ;;  %v5536_v20 = vrot.slane %v5349_v4, %v772_v37 }
 0x2d1   : > { %v2165_v51 = vmul.f32 %v4355_v10, %v5510_v26 }
 0x2d2   : > { %v2196_v43 = vpack.c.bf16 %v2164_v38, %v2156_v59 }
 0x2d3   : > { %3139 = vmatpush1.bf16.msra.mxu0 %v4131_v52  ;;  %v2197_v15 = vpack.c.bf16 %v2165_v51, %v2157_v49 }
 0x2d4   : > { %3140 = vmatprep.subr.bf16.mxu0 %v4136_v16  ;;  %v4152_v16 = vld [vmem:[#allocation11 + $0x2c0] ss:$8 sps:$4 sm:$0xff]  }
 0x2d5   : > { %3117 = vmatprep.mubr.bf16.mxu0 %v2197_v15 }
 0x2d6   : > { %3118 = vmatmul.mubr.bf16.gmra.mrb[12].mxu0 %v2196_v43 }
 0x2d7   : > { %3141 = vmatpush1.bf16.msra.mxu0 %v4134_v34  ;;  %v4155_v34 = vld [vmem:[#allocation11 + $0x2d0] ss:$8 sps:$4 sm:$0xff]  }
 0x2d8   : > { %v1610_v26 = vpop.f32.mrb[32].mxu1  ;;  %3142 = vmatprep.subr.bf16.mxu0 %v4139_v53 }
 0x2d9   : > { %v5539_v14 = vadd.f32 %v1610_v26, %v5533_v44  ;;  %v1612_v19 = vpop.f32.mrb[33].mxu1 }
 0x2da   : > { %v5542_v47 = vadd.f32 %v1612_v19, %v5536_v20  ;;  %v1614_v12 = vpop.f32.mrb[34].mxu1 }
 0x2db   : > { %v3629_v46 = vmul.f32 -1.442695, %v5539_v14  ;;  %v5546_v57 = vadd.f32 %v1614_v12, %v5533_v44  ;;  %3143 = vmatpush1.bf16.msra.mxu0 %v4137_v18  ;;  %v1616_v4 = vpop.f32.mrb[35].mxu1 }
 0x2dc   : > { %v3630_v40 = vmul.f32 -1.442695, %v5542_v47  ;;  %v5550_v21 = vadd.f32 %v1616_v4, %v5536_v20  ;;  %3144 = vmatprep.subr.bf16.mxu0 %v4142_v35  ;;  %v4160_v35 = vld [vmem:[#allocation11 + $0x2e4] ss:$8 sps:$4 sm:$0xff]  }
 0x2dd   : > { %4356 = vpow2.f32 %v3629_v46  ;;  %v3637_v62 = vmul.f32 -1.442695, %v5546_v57 }
 0x2de   : > { %4358 = vpow2.f32 %v3630_v40  ;;  %v3638_v32 = vmul.f32 -1.442695, %v5550_v21 }
 0x2df   : > { %4360 = vpow2.f32 %v3637_v62  ;;  %3145 = vmatpush1.bf16.msra.mxu0 %v4140_v58 }
 0x2e0   : > { %4362 = vpow2.f32 %v3638_v32  ;;  %v1620_v41 = vpop.f32.mrb[36].mxu1  ;;  %3146 = vmatprep.subr.bf16.mxu0 %v4145_v36 }
 0x2e1   : > { %v5555_v54 = vadd.f32 %v1620_v41, %v5533_v44  ;;  %v1622_v55 = vpop.f32.mrb[37].mxu1 }
 0x2e2   : > { %v5558_v8 = vadd.f32 %v1622_v55, %v5536_v20  ;;  %v1624_v11 = vpop.f32.mrb[38].mxu1  ;;  %v4158_v55 = vld [vmem:[#allocation11 + $0x2e0] ss:$8 sps:$4 sm:$0xff]  }
 0x2e3   : > { %v3645_v13 = vmul.f32 -1.442695, %v5555_v54  ;;  %v5562_v31 = vadd.f32 %v1624_v11, %v5533_v44  ;;  %3147 = vmatpush1.bf16.msra.mxu0 %v4143_v48  ;;  %v1626_v22 = vpop.f32.mrb[39].mxu1 }
 0x2e4   : > { %v3646_v42 = vmul.f32 -1.442695, %v5558_v8  ;;  %v5566_v24 = vadd.f32 %v1626_v22, %v5536_v20  ;;  %3148 = vmatprep.subr.bf16.mxu0 %v4148_v9 }
 0x2e5   : > { %4364 = vpow2.f32 %v3645_v13  ;;  %v3653_v2 = vmul.f32 -1.442695, %v5562_v31 }
 0x2e6   : > { %4366 = vpow2.f32 %v3646_v42  ;;  %v3654_v23 = vmul.f32 -1.442695, %v5566_v24 }
 0x2e7   : > { %v4357_v25 = vpop.eup %4356  ;;  %4368 = vpow2.f32 %v3653_v2  ;;  %3149 = vmatpush1.bf16.msra.mxu0 %v4146_v61  ;;  %v4163_v61 = vld [vmem:[#allocation11 + $0x2f4] ss:$8 sps:$4 sm:$0xff]  }
 0x2e8   : > { %v4359_v56 = vpop.eup %4358  ;;  %v1918_v30 = vadd.f32 1.0, %v4357_v25  ;;  %4370 = vpow2.f32 %v3654_v23  ;;  %v1630_v27 = vpop.f32.mrb[40].mxu1  ;;  %3150 = vmatprep.subr.bf16.mxu0 %v4151_v17 }
 0x2e9   : > { %v4361_v39 = vpop.eup %4360  ;;  %v1919_v29 = vadd.f32 1.0, %v4359_v56  ;;  %v5571_v6 = vadd.f32 %v1630_v27, %v5533_v44  ;;  %v1632_v7 = vpop.f32.mrb[41].mxu1  ;;  %v4161_v56 = vld [vmem:[#allocation11 + $0x2f0] ss:$8 sps:$4 sm:$0xff]  }
 0x2ea   : > { %v4363_v1 = vpop.eup %4362  ;;  %4372 = vrcp.f32 %v1918_v30  ;;  %v1926_v45 = vadd.f32 1.0, %v4361_v39  ;;  %v5574_v3 = vadd.f32 %v1632_v7, %v5536_v20  ;;  %v1634_v33 = vpop.f32.mrb[42].mxu1 }
 0x2eb   : > { %4374 = vrcp.f32 %v1919_v29  ;;  %v1927_v52 = vadd.f32 1.0, %v4363_v1  ;;  %v3661_v10 = vmul.f32 -1.442695, %v5571_v6  ;;  %v5578_v59 = vadd.f32 %v1634_v33, %v5533_v44  ;;  %3151 = vmatpush1.bf16.msra.mxu0 %v4149_v60  ;;  %v1636_v38 = vpop.f32.mrb[43].mxu1 }
 0x2ec   : > { %4376 = vrcp.f32 %v1926_v45  ;;  %v3662_v49 = vmul.f32 -1.442695, %v5574_v3  ;;  %v5582_v51 = vadd.f32 %v1636_v38, %v5536_v20  ;;  %3152 = vmatprep.subr.bf16.mxu0 %v4154_v28  ;;  %v4166_v28 = vld [vmem:[#allocation11 + $0x304] ss:$8 sps:$4 sm:$0xff]  }
 0x2ed   : > { %4378 = vrcp.f32 %v1927_v52  ;;  %v3669_v43 = vmul.f32 -1.442695, %v5578_v59  ;;  %v4164_v52 = vld [vmem:[#allocation11 + $0x300] ss:$8 sps:$4 sm:$0xff]  }
 0x2ee   : > { %4380 = vpow2.f32 %v3661_v10  ;;  %v3670_v37 = vmul.f32 -1.442695, %v5582_v51 }
 0x2ef   : > { %v4365_v15 = vpop.eup %4364  ;;  %4382 = vpow2.f32 %v3662_v49  ;;  %3153 = vmatpush1.bf16.msra.mxu0 %v4152_v16 }
 0x2f0   : > { %v4367_v53 = vpop.eup %4366  ;;  %v1934_v18 = vadd.f32 1.0, %v4365_v15  ;;  %4384 = vpow2.f32 %v3669_v43  ;;  %v1640_v26 = vpop.f32.mrb[44].mxu1  ;;  %3154 = vmatprep.subr.bf16.mxu0 %v4157_v5 }
 0x2f1   : > { %v4369_v19 = vpop.eup %4368  ;;  %v1935_v12 = vadd.f32 1.0, %v4367_v53  ;;  %4386 = vpow2.f32 %v3670_v37  ;;  %v5587_v46 = vadd.f32 %v1640_v26, %v5533_v44  ;;  %v1642_v4 = vpop.f32.mrb[45].mxu1  ;;  %v4167_v37 = vld [vmem:[#allocation11 + $0x310] ss:$8 sps:$4 sm:$0xff]  }
 0x2f2   : > { %v4371_v58 = vpop.eup %4370  ;;  %4388 = vrcp.f32 %v1934_v18  ;;  %v1942_v40 = vadd.f32 1.0, %v4369_v19  ;;  %v5590_v36 = vadd.f32 %v1642_v4, %v5536_v20  ;;  %v1644_v62 = vpop.f32.mrb[46].mxu1  ;;  %v4172_v18 = vld [vmem:[#allocation11 + $0x324] ss:$8 sps:$4 sm:$0xff]  }
 0x2f3   : > { %4390 = vrcp.f32 %v1935_v12  ;;  %v1943_v32 = vadd.f32 1.0, %v4371_v58  ;;  %v3677_v48 = vmul.f32 -1.442695, %v5587_v46  ;;  %v5594_v41 = vadd.f32 %v1644_v62, %v5533_v44  ;;  %3155 = vmatpush1.bf16.msra.mxu0 %v4155_v34  ;;  %v1646_v9 = vpop.f32.mrb[47].mxu1 }
 0x2f4   : > { %v4373_v11 = vpop.eup %4372  ;;  %4392 = vrcp.f32 %v1942_v40  ;;  %v3678_v13 = vmul.f32 -1.442695, %v5590_v36  ;;  %v5598_v22 = vadd.f32 %v1646_v9, %v5536_v20  ;;  %3156 = vmatprep.subr.bf16.mxu0 %v4160_v35  ;;  %v4173_v9 = vld [vmem:[#allocation11 + $0x330] ss:$8 sps:$4 sm:$0xff]  }
 0x2f5   : > { %v4375_v42 = vpop.eup %4374  ;;  %4394 = vrcp.f32 %v1943_v32  ;;  %v3685_v17 = vmul.f32 -1.442695, %v5594_v41  ;;  %v2110_v25 = vmul.f32 %v4373_v11, %v5539_v14 }
 0x2f6   : > { %v4377_v2 = vpop.eup %4376  ;;  %4396 = vpow2.f32 %v3677_v48  ;;  %v3686_v44 = vmul.f32 -1.442695, %v5598_v22  ;;  %v2111_v30 = vmul.f32 %v4375_v42, %v5542_v47 }
 0x2f7   : > { %v4379_v23 = vpop.eup %4378  ;;  %v2118_v60 = vmul.f32 %v4377_v2, %v5546_v57  ;;  %4398 = vpow2.f32 %v3678_v13  ;;  %3157 = vmatpush1.bf16.msra.mxu0 %v4158_v55 }
 0x2f8   : > { %v4381_v20 = vpop.eup %4380  ;;  %v2119_v27 = vmul.f32 %v4379_v23, %v5550_v21  ;;  %4400 = vpow2.f32 %v3685_v17  ;;  %3158 = vmatprep.subr.bf16.mxu0 %v4163_v61  ;;  %v4169_v21 = vld [vmem:[#allocation11 + $0x314] ss:$8 sps:$4 sm:$0xff]   ;;  %v4178_v61 = vld [vmem:[#allocation11 + $0x344] ss:$8 sps:$4 sm:$0xff]   ;;  %v4176_v23 = vld [vmem:[#allocation11 + $0x340] ss:$8 sps:$4 sm:$0xff]  }
 0x2f9   : > { %v4383_v39 = vpop.eup %4382  ;;  %v2174_v29 = vpack.c.bf16 %v2118_v60, %v2110_v25  ;;  %v1950_v7 = vadd.f32 1.0, %v4381_v20  ;;  %4402 = vpow2.f32 %v3686_v44  ;;  %v4181_v25 = vld [vmem:[#allocation11 + $0x354] ss:$8 sps:$4 sm:$0xff]  }
 0x2fa   : > { %v4385_v1 = vpop.eup %4384  ;;  %v1951_v45 = vadd.f32 1.0, %v4383_v39  ;;  %v2175_v14 = vpack.c.bf16 %v2119_v27, %v2111_v30  ;;  %v776_v39 = vsub.s32 6, %v5203_v50 }
 0x2fb   : > { %v4387_v33 = vpop.eup %4386  ;;  %4404 = vrcp.f32 %v1950_v7  ;;  %v1958_v57 = vadd.f32 1.0, %v4385_v1  ;;  %3159 = vmatpush1.bf16.msra.mxu0 %v4161_v56  ;;  %v780_v7 = vsub.s32 7, %v5203_v50 }
 0x2fc   : > { %v4389_v10 = vpop.eup %4388  ;;  %4406 = vrcp.f32 %v1951_v45  ;;  %v1959_v47 = vadd.f32 1.0, %v4387_v33  ;;  %3160 = vmatprep.mubr.bf16.mxu0 %v2175_v14  ;;  %3201 = vmatprep.subr.bf16.mxu0 %v4166_v28  ;;  %v4182_v45 = vld [vmem:[#allocation11 + $0x360] ss:$8 sps:$4 sm:$0xff]   ;;  %v4187_v14 = vld [vmem:[#allocation11 + $0x374] ss:$8 sps:$4 sm:$0xff]  }
 0x2fd   : > { %v4391_v38 = vpop.eup %4390  ;;  %4408 = vrcp.f32 %v1958_v57  ;;  %v2126_v5 = vmul.f32 %v4389_v10, %v5555_v54  ;;  %v4190_v57 = vld [vmem:[#allocation11 + $0x384] ss:$8 sps:$4 sm:$0xff]  }
 0x2fe   : > { %v4393_v16 = vpop.eup %4392  ;;  %4410 = vrcp.f32 %v1959_v47  ;;  %3161 = vmatmul.mubr.bf16.vlgmr.msra.gmra.mrb[0].mxu0 %v2174_v29  ;;  %v2127_v34 = vmul.f32 %v4391_v38, %v5558_v8  ;;  %v4175_v8 = vld [vmem:[#allocation11 + $0x334] ss:$8 sps:$4 sm:$0xff]  }
 0x2ff   : > { %v4395_v49 = vpop.eup %4394  ;;  %v2134_v43 = vmul.f32 %v4393_v16, %v5562_v31  ;;  %3202 = vmatpush1.bf16.msra.mxu0 %v4164_v52  ;;  %v4170_v31 = vld [vmem:[#allocation11 + $0x320] ss:$8 sps:$4 sm:$0xff]  }
 0x300   : > { %v4397_v15 = vpop.eup %4396  ;;  %v2135_v53 = vmul.f32 %v4395_v49, %v5566_v24  ;;  %3203 = vmatprep.subr.bf16.mxu0 %v4169_v21  ;;  %v4188_v49 = vld [vmem:[#allocation11 + $0x380] ss:$8 sps:$4 sm:$0xff]  }
 0x301   : > { %v4399_v26 = vpop.eup %4398  ;;  %v1966_v35 = vadd.f32 1.0, %v4397_v15  ;;  %v2182_v19 = vpack.c.bf16 %v2134_v43, %v2126_v5 }
 0x302   : > { %v4401_v12 = vpop.eup %4400  ;;  %v1967_v4 = vadd.f32 1.0, %v4399_v26  ;;  %v2183_v58 = vpack.c.bf16 %v2135_v53, %v2127_v34  ;;  %v4191_v53 = vld [vmem:[#allocation11 + $0x390] ss:$8 sps:$4 sm:$0xff]   ;;  %v4196_v26 = vld [vmem:[#allocation11 + $0x3a4] ss:$8 sps:$4 sm:$0xff]  }
 0x303   : > { %v4403_v40 = vpop.eup %4402  ;;  %4412 = vrcp.f32 %v1966_v35  ;;  %v1974_v54 = vadd.f32 1.0, %v4401_v12  ;;  %3204 = vmatpush1.bf16.msra.mxu0 %v4167_v37  ;;  %v4193_v37 = vld [vmem:[#allocation11 + $0x394] ss:$8 sps:$4 sm:$0xff]  }
 0x304   : > { %4414 = vrcp.f32 %v1967_v4  ;;  %v1975_v62 = vadd.f32 1.0, %v4403_v40  ;;  %3170 = vmatprep.mubr.bf16.mxu0 %v2183_v58  ;;  %3205 = vmatprep.subr.bf16.mxu0 %v4172_v18 }
 0x305   : > { %v4405_v32 = vpop.eup %4404  ;;  %4416 = vrcp.f32 %v1974_v54 }
 0x306   : > { %v4407_v24 = vpop.eup %4406  ;;  %4418 = vrcp.f32 %v1975_v62  ;;  %3171 = vmatmul.mubr.bf16.gmra.mrb[4].mxu0 %v2182_v19  ;;  %v2142_v11 = vmul.f32 %v4405_v32, %v5571_v6  ;;  %v4179_v6 = vld [vmem:[#allocation11 + $0x350] ss:$8 sps:$4 sm:$0xff]   ;;  %v4199_v32 = vld [vmem:[#allocation11 + $0x3b4] ss:$8 sps:$4 sm:$0xff]  }
 0x307   : > { %v4409_v48 = vpop.eup %4408  ;;  %3206 = vmatpush1.bf16.msra.mxu0 %v4170_v31  ;;  %v2143_v42 = vmul.f32 %v4407_v24, %v5574_v3  ;;  %v4194_v31 = vld [vmem:[#allocation11 + $0x3a0] ss:$8 sps:$4 sm:$0xff]  }
 0x308   : > { %v4411_v55 = vpop.eup %4410  ;;  %v2150_v13 = vmul.f32 %v4409_v48, %v5578_v59  ;;  %3207 = vmatprep.subr.bf16.mxu0 %v4175_v8 }
 0x309   : > { %v2151_v17 = vmul.f32 %v4411_v55, %v5582_v51  ;;  %v4184_v51 = vld [vmem:[#allocation11 + $0x364] ss:$8 sps:$4 sm:$0xff]   ;;  %v4197_v55 = vld [vmem:[#allocation11 + $0x3b0] ss:$8 sps:$4 sm:$0xff]  }
 0x30a   : > { %v2190_v2 = vpack.c.bf16 %v2150_v13, %v2142_v11 }
 0x30b   : > { %3208 = vmatpush1.bf16.msra.mxu0 %v4173_v9  ;;  %v2191_v44 = vpack.c.bf16 %v2151_v17, %v2143_v42  ;;  %v4202_v42 = vld [vmem:[#allocation11 + $0x3c4] ss:$8 sps:$4 sm:$0xff]  }
 0x30c   : > { %3209 = vmatprep.subr.bf16.mxu0 %v4178_v61 }
 0x30d   : > { %v4413_v60 = vpop.eup %4412  ;;  %3180 = vmatprep.mubr.bf16.mxu0 %v2191_v44 }
 0x30e   : > { %v4415_v56 = vpop.eup %4414  ;;  %3181 = vmatmul.mubr.bf16.gmra.mrb[8].mxu0 %v2190_v2  ;;  %v2158_v30 = vmul.f32 %v4413_v60, %v5587_v46  ;;  %v4484_v46 = vld [vmem:[#allocation10] sm:$0xff] }
 0x30f   : > { %v4417_v20 = vpop.eup %4416  ;;  %3210 = vmatpush1.bf16.msra.mxu0 %v4176_v23  ;;  %v2159_v27 = vmul.f32 %v4415_v56, %v5590_v36  ;;  %v5620_v33 = vrot.slane %v4484_v46, %v776_v39  ;;  %v4185_v36 = vld [vmem:[#allocation11 + $0x370] ss:$8 sps:$4 sm:$0xff]   ;;  %v4205_v39 = vld [vmem:[#allocation11 + $0x3d4] ss:$8 sps:$4 sm:$0xff]  }
 0x310   : > { %v4419_v59 = vpop.eup %4418  ;;  %v2166_v3 = vmul.f32 %v4417_v20, %v5594_v41  ;;  %3211 = vmatprep.subr.bf16.mxu0 %v4181_v25  ;;  %v5622_v41 = vrot.slane %v4484_v46, %v780_v7 }
 0x311   : > { %v2167_v28 = vmul.f32 %v4419_v59, %v5598_v22 }
 0x312   : > { %v2198_v29 = vpack.c.bf16 %v2166_v3, %v2158_v30 }
 0x313   : > { %3212 = vmatpush1.bf16.msra.mxu0 %v4179_v6  ;;  %v2199_v1 = vpack.c.bf16 %v2167_v28, %v2159_v27 }
 0x314   : > { %3213 = vmatprep.subr.bf16.mxu0 %v4184_v51  ;;  %v4200_v51 = vld [vmem:[#allocation11 + $0x3c0] ss:$8 sps:$4 sm:$0xff]  }
 0x315   : > { %3190 = vmatprep.mubr.bf16.mxu0 %v2199_v1 }
 0x316   : > { %3191 = vmatmul.mubr.bf16.gmra.mrb[12].mxu0 %v2198_v29 }
 0x317   : > { %3214 = vmatpush1.bf16.msra.mxu0 %v4182_v45  ;;  %v4203_v45 = vld [vmem:[#allocation11 + $0x3d0] ss:$8 sps:$4 sm:$0xff]  }
 0x318   : > { %v1683_v22 = vpop.f32.mrb[48].mxu1  ;;  %3215 = vmatprep.subr.bf16.mxu0 %v4187_v14 }
 0x319   : > { %v5625_v52 = vadd.f32 %v1683_v22, %v5620_v33  ;;  %v1685_v50 = vpop.f32.mrb[49].mxu1  ;;  %v4208_v22 = vld [vmem:[#allocation11 + $0x3e4] ss:$8 sps:$4 sm:$0xff]  }
 0x31a   : > { %v5628_v10 = vadd.f32 %v1685_v50, %v5622_v41  ;;  %v1687_v47 = vpop.f32.mrb[50].mxu1 }
 0x31b   : > { %v3631_v21 = vmul.f32 -1.442695, %v5625_v52  ;;  %v5632_v38 = vadd.f32 %v1687_v47, %v5620_v33  ;;  %3216 = vmatpush1.bf16.msra.mxu0 %v4185_v36  ;;  %v1689_v16 = vpop.f32.mrb[51].mxu1 }
 0x31c   : > { %v3632_v5 = vmul.f32 -1.442695, %v5628_v10  ;;  %v5636_v43 = vadd.f32 %v1689_v16, %v5622_v41  ;;  %3217 = vmatprep.subr.bf16.mxu0 %v4190_v57 }
 0x31d   : > { %4420 = vpow2.f32 %v3631_v21  ;;  %v3639_v15 = vmul.f32 -1.442695, %v5632_v38 }
 0x31e   : > { %4422 = vpow2.f32 %v3632_v5  ;;  %v3640_v34 = vmul.f32 -1.442695, %v5636_v43 }
 0x31f   : > { %4424 = vpow2.f32 %v3639_v15  ;;  %3218 = vmatpush1.bf16.msra.mxu0 %v4188_v49 }
 0x320   : > { %4426 = vpow2.f32 %v3640_v34  ;;  %v1693_v18 = vpop.f32.mrb[52].mxu1  ;;  %3219 = vmatprep.subr.bf16.mxu0 %v4193_v37 }
 0x321   : > { %v5641_v35 = vadd.f32 %v1693_v18, %v5620_v33  ;;  %v1695_v19 = vpop.f32.mrb[53].mxu1 }
 0x322   : > { %v5644_v12 = vadd.f32 %v1695_v19, %v5622_v41  ;;  %v1697_v4 = vpop.f32.mrb[54].mxu1 }
 0x323   : > { %v3647_v58 = vmul.f32 -1.442695, %v5641_v35  ;;  %v5648_v40 = vadd.f32 %v1697_v4, %v5620_v33  ;;  %3220 = vmatpush1.bf16.msra.mxu0 %v4191_v53  ;;  %v1699_v54 = vpop.f32.mrb[55].mxu1 }
 0x324   : > { %v3648_v62 = vmul.f32 -1.442695, %v5644_v12  ;;  %v5652_v8 = vadd.f32 %v1699_v54, %v5622_v41  ;;  %3221 = vmatprep.subr.bf16.mxu0 %v4196_v26  ;;  %v4206_v26 = vld [vmem:[#allocation11 + $0x3e0] ss:$8 sps:$4 sm:$0xff]   ;;  %v4211_v54 = vld [vmem:[#allocation11 + $0x3f4] ss:$8 sps:$4 sm:$0xff]  }
 0x325   : > { %4428 = vpow2.f32 %v3647_v58  ;;  %v3655_v24 = vmul.f32 -1.442695, %v5648_v40 }
 0x326   : > { %4430 = vpow2.f32 %v3648_v62  ;;  %v3656_v48 = vmul.f32 -1.442695, %v5652_v8 }
 0x327   : > { %v4421_v9 = vpop.eup %4420  ;;  %4432 = vpow2.f32 %v3655_v24  ;;  %3222 = vmatpush1.bf16.msra.mxu0 %v4194_v31 }
 0x328   : > { %v4423_v11 = vpop.eup %4422  ;;  %v1920_v13 = vadd.f32 1.0, %v4421_v9  ;;  %4434 = vpow2.f32 %v3656_v48  ;;  %v1703_v61 = vpop.f32.mrb[56].mxu1  ;;  %3223 = vmatprep.subr.bf16.mxu0 %v4199_v32 }
 0x329   : > { %v4425_v17 = vpop.eup %4424  ;;  %v1921_v2 = vadd.f32 1.0, %v4423_v11  ;;  %v5657_v44 = vadd.f32 %v1703_v61, %v5620_v33  ;;  %v1705_v23 = vpop.f32.mrb[57].mxu1 }
 0x32a   : > { %v4427_v25 = vpop.eup %4426  ;;  %4436 = vrcp.f32 %v1920_v13  ;;  %v1928_v60 = vadd.f32 1.0, %v4425_v17  ;;  %v5660_v56 = vadd.f32 %v1705_v23, %v5622_v41  ;;  %v1707_v20 = vpop.f32.mrb[58].mxu1 }
 0x32b   : > { %4438 = vrcp.f32 %v1921_v2  ;;  %v1929_v6 = vadd.f32 1.0, %v4427_v25  ;;  %v3663_v59 = vmul.f32 -1.442695, %v5657_v44  ;;  %v5664_v30 = vadd.f32 %v1707_v20, %v5620_v33  ;;  %3224 = vmatpush1.bf16.msra.mxu0 %v4197_v55  ;;  %v1709_v3 = vpop.f32.mrb[59].mxu1  ;;  %v4209_v55 = vld [vmem:[#allocation11 + $0x3f0] ss:$8 sps:$4 sm:$0xff]  }
 0x32c   : > { %4440 = vrcp.f32 %v1928_v60  ;;  %v3664_v27 = vmul.f32 -1.442695, %v5660_v56  ;;  %v5668_v28 = vadd.f32 %v1709_v3, %v5622_v41  ;;  %3225 = vmatprep.subr.bf16.mxu0 %v4202_v42 }
 0x32d   : > { %4442 = vrcp.f32 %v1929_v6  ;;  %v3671_v29 = vmul.f32 -1.442695, %v5664_v30 }
 0x32e   : > { %4444 = vpow2.f32 %v3663_v59  ;;  %v3672_v7 = vmul.f32 -1.442695, %v5668_v28 }
 0x32f   : > { %v4429_v1 = vpop.eup %4428  ;;  %4446 = vpow2.f32 %v3664_v27  ;;  %3226 = vmatpush1.bf16.msra.mxu0 %v4200_v51 }
 0x330   : > { %v4431_v14 = vpop.eup %4430  ;;  %v1936_v46 = vadd.f32 1.0, %v4429_v1  ;;  %4448 = vpow2.f32 %v3671_v29  ;;  %v1713_v36 = vpop.f32.mrb[60].mxu1  ;;  %3227 = vmatprep.subr.bf16.mxu0 %v4205_v39 }
 0x331   : > { %v4433_v57 = vpop.eup %4432  ;;  %v1937_v50 = vadd.f32 1.0, %v4431_v14  ;;  %4450 = vpow2.f32 %v3672_v7  ;;  %v5673_v47 = vadd.f32 %v1713_v36, %v5620_v33  ;;  %v1715_v21 = vpop.f32.mrb[61].mxu1 }
 0x332   : > { %v4435_v16 = vpop.eup %4434  ;;  %4452 = vrcp.f32 %v1936_v46  ;;  %v1944_v49 = vadd.f32 1.0, %v4433_v57  ;;  %v5676_v5 = vadd.f32 %v1715_v21, %v5622_v41  ;;  %v1717_v37 = vpop.f32.mrb[62].mxu1 }
 0x333   : > { %4454 = vrcp.f32 %v1937_v50  ;;  %v1945_v15 = vadd.f32 1.0, %v4435_v16  ;;  %v3679_v34 = vmul.f32 -1.442695, %v5673_v47  ;;  %v5680_v53 = vadd.f32 %v1717_v37, %v5620_v33  ;;  %3228 = vmatpush1.bf16.msra.mxu0 %v4203_v45  ;;  %v1719_v18 = vpop.f32.mrb[63].mxu1 }
 0x334   : > { %v4437_v19 = vpop.eup %4436  ;;  %4456 = vrcp.f32 %v1944_v49  ;;  %v3680_v4 = vmul.f32 -1.442695, %v5676_v5  ;;  %v5684_v58 = vadd.f32 %v1719_v18, %v5622_v41  ;;  %3229 = vmatprep.subr.bf16.mxu0 %v4208_v22 }
 0x335   : > { %v4439_v31 = vpop.eup %4438  ;;  %4458 = vrcp.f32 %v1945_v15  ;;  %v3687_v62 = vmul.f32 -1.442695, %v5680_v53  ;;  %v2112_v48 = vmul.f32 %v4437_v19, %v5625_v52 }
 0x336   : > { %v4441_v32 = vpop.eup %4440  ;;  %4460 = vpow2.f32 %v3679_v34  ;;  %v3688_v33 = vmul.f32 -1.442695, %v5684_v58  ;;  %v2113_v11 = vmul.f32 %v4439_v31, %v5628_v10 }
 0x337   : > { %v4443_v24 = vpop.eup %4442  ;;  %v2120_v9 = vmul.f32 %v4441_v32, %v5632_v38  ;;  %4462 = vpow2.f32 %v3680_v4  ;;  %3230 = vmatpush1.bf16.msra.mxu0 %v4206_v26 }
 0x338   : > { %v4445_v41 = vpop.eup %4444  ;;  %v2121_v13 = vmul.f32 %v4443_v24, %v5636_v43  ;;  %4464 = vpow2.f32 %v3687_v62  ;;  %3231 = vmatprep.subr.bf16.mxu0 %v4211_v54 }
 0x339   : > { %v4447_v61 = vpop.eup %4446  ;;  %v2176_v42 = vpack.c.bf16 %v2120_v9, %v2112_v48  ;;  %v1952_v17 = vadd.f32 1.0, %v4445_v41  ;;  %4466 = vpow2.f32 %v3688_v33 }
 0x33a   : > { %v4449_v2 = vpop.eup %4448  ;;  %v1953_v23 = vadd.f32 1.0, %v4447_v61  ;;  %v2177_v25 = vpack.c.bf16 %v2121_v13, %v2113_v11 }
 0x33b   : > { %v4451_v52 = vpop.eup %4450  ;;  %4468 = vrcp.f32 %v1952_v17  ;;  %v1960_v38 = vadd.f32 1.0, %v4449_v2  ;;  %3232 = vmatpush1.bf16.msra.mxu0 %v4209_v55 }
 0x33c   : > { %v4453_v60 = vpop.eup %4452  ;;  %4470 = vrcp.f32 %v1953_v23  ;;  %v1961_v20 = vadd.f32 1.0, %v4451_v52  ;;  %3233 = vmatprep.mubr.bf16.mxu0 %v2177_v25 }
 0x33d   : > { %v4455_v10 = vpop.eup %4454  ;;  %4472 = vrcp.f32 %v1960_v38  ;;  %v2128_v59 = vmul.f32 %v4453_v60, %v5641_v35 }
 0x33e   : > { %v4457_v43 = vpop.eup %4456  ;;  %4474 = vrcp.f32 %v1961_v20  ;;  %3234 = vmatmul.mubr.bf16.vlgmr.msra.gmra.mrb[0].mxu0 %v2176_v42  ;;  %v2129_v27 = vmul.f32 %v4455_v10, %v5644_v12 }
 0x33f   : > { %v4459_v6 = vpop.eup %4458  ;;  %v2136_v3 = vmul.f32 %v4457_v43, %v5648_v40 }
 0x340   : > { %v4461_v51 = vpop.eup %4460  ;;  %v2137_v39 = vmul.f32 %v4459_v6, %v5652_v8 }
 0x341   : > { %v4463_v29 = vpop.eup %4462  ;;  %v1968_v7 = vadd.f32 1.0, %v4461_v51  ;;  %v2184_v1 = vpack.c.bf16 %v2136_v3, %v2128_v59 }
 0x342   : > { %v4465_v45 = vpop.eup %4464  ;;  %v1969_v14 = vadd.f32 1.0, %v4463_v29  ;;  %v2185_v46 = vpack.c.bf16 %v2137_v39, %v2129_v27 }
 0x343   : > { %v4467_v36 = vpop.eup %4466  ;;  %4476 = vrcp.f32 %v1968_v7  ;;  %v1976_v22 = vadd.f32 1.0, %v4465_v45 }
 0x344   : > { %4478 = vrcp.f32 %v1969_v14  ;;  %v1977_v57 = vadd.f32 1.0, %v4467_v36  ;;  %3243 = vmatprep.mubr.bf16.mxu0 %v2185_v46 }
 0x345   : > { %v4469_v35 = vpop.eup %4468  ;;  %4480 = vrcp.f32 %v1976_v22 }
 0x346   : > { %v4471_v40 = vpop.eup %4470  ;;  %4482 = vrcp.f32 %v1977_v57  ;;  %3244 = vmatmul.mubr.bf16.gmra.mrb[4].mxu0 %v2184_v1  ;;  %v2144_v8 = vmul.f32 %v4469_v35, %v5657_v44 }
 0x347   : > { %v4473_v12 = vpop.eup %4472  ;;  %v2145_v16 = vmul.f32 %v4471_v40, %v5660_v56 }
 0x348   : > { %v4475_v50 = vpop.eup %4474  ;;  %v2152_v21 = vmul.f32 %v4473_v12, %v5664_v30 }
 0x349   : > { %v2153_v49 = vmul.f32 %v4475_v50, %v5668_v28  ;;  %v2330_v28 = vld [vmem:[#allocation13] sm:$0x3] }
 0x34a   : > { %v2192_v37 = vpack.c.bf16 %v2152_v21, %v2144_v8  ;;  %v2335_v62 = vrot.slane %v2330_v28, %v5211_v0  ;;  %v2339_v32 = vrot.slane %v2330_v28, %v5208_v63 }
 0x34b   : > { %v2193_v15 = vpack.c.bf16 %v2153_v49, %v2145_v16 }
 0x34d   : > { %v4477_v34 = vpop.eup %4476  ;;  %3253 = vmatprep.mubr.bf16.mxu0 %v2193_v15 }
 0x34e   : > { %v4479_v18 = vpop.eup %4478  ;;  %3254 = vmatmul.mubr.bf16.gmra.mrb[8].mxu0 %v2192_v37  ;;  %v2160_v4 = vmul.f32 %v4477_v34, %v5673_v47 }
 0x34f   : > { %v4481_v26 = vpop.eup %4480  ;;  %v2161_v44 = vmul.f32 %v4479_v18, %v5676_v5 }
 0x350   : > { %v4483_v19 = vpop.eup %4482  ;;  %v2168_v54 = vmul.f32 %v4481_v26, %v5680_v53 }
 0x351   : > { %v2169_v30 = vmul.f32 %v4483_v19, %v5684_v58 }
 0x352   : > { %v2200_v31 = vpack.c.bf16 %v2168_v54, %v2160_v4 }
 0x353   : > { %v2201_v56 = vpack.c.bf16 %v2169_v30, %v2161_v44 }
 0x355   : > { %3263 = vmatprep.mubr.bf16.mxu0 %v2201_v56 }
 0x356   : > { %3264 = vmatmul.mubr.bf16.gmra.mrb[12].mxu0 %v2200_v31 }
 0x411   : > { %v3235_v33 = vpop.f32.mrb[0].mxu0 }
 0x412   : > { %v3843_v24 = vadd.f32 %v3235_v33, %v2335_v62  ;;  %v3237_v48 = vpop.f32.mrb[1].mxu0 }
 0x413   : > { %v3844_v47 = vadd.f32 %v3237_v48, %v2339_v32  ;;  %v3239_v9 = vpop.f32.mrb[2].mxu0 }
 0x414   : > { %v3845_v53 = vadd.f32 %v3239_v9, %v2335_v62  ;;  %v3241_v55 = vpop.f32.mrb[3].mxu0 }
 0x415   : > { %v3833_v5 = vpack.c.bf16 %v3844_v47, %v3843_v24  ;;  %v3846_v41 = vadd.f32 %v3241_v55, %v2339_v32 }
 0x417   : > { %3322 = vst [vmem:[%s5708_s8] sm:$0xff] %v3833_v5  ;;  %v3834_v0 = vpack.c.bf16 %v3846_v41, %v3845_v53 }
 0x419   : > { %3323 = vst [vmem:[%s5708_s8 + $0x8] sm:$0xff] %v3834_v0  ;;  %v3245_v63 = vpop.f32.mrb[4].mxu0 }
 0x41a   : > { %v3847_v58 = vadd.f32 %v3245_v63, %v2335_v62  ;;  %v3247_v11 = vpop.f32.mrb[5].mxu0 }
 0x41b   : > { %v3848_v13 = vadd.f32 %v3247_v11, %v2339_v32  ;;  %v3249_v61 = vpop.f32.mrb[6].mxu0 }
 0x41c   : > { %v3849_v42 = vadd.f32 %v3249_v61, %v2335_v62  ;;  %v3251_v17 = vpop.f32.mrb[7].mxu0 }
 0x41d   : > { %v3835_v2 = vpack.c.bf16 %v3848_v13, %v3847_v58  ;;  %v3850_v23 = vadd.f32 %v3251_v17, %v2339_v32 }
 0x41f   : > { %3324 = vst [vmem:[%s5708_s8 + $0x10] sm:$0xff] %v3835_v2  ;;  %v3836_v25 = vpack.c.bf16 %v3850_v23, %v3849_v42 }
 0x421   : > { %3325 = vst [vmem:[%s5708_s8 + $0x18] sm:$0xff] %v3836_v25  ;;  %v3255_v52 = vpop.f32.mrb[8].mxu0 }
 0x422   : > { %v3851_v38 = vadd.f32 %v3255_v52, %v2335_v62  ;;  %v3257_v60 = vpop.f32.mrb[9].mxu0 }
 0x423   : > { %v3852_v20 = vadd.f32 %v3257_v60, %v2339_v32  ;;  %v3259_v10 = vpop.f32.mrb[10].mxu0 }
 0x424   : > { %v3853_v43 = vadd.f32 %v3259_v10, %v2335_v62  ;;  %v3261_v6 = vpop.f32.mrb[11].mxu0 }
 0x425   : > { %v3837_v59 = vpack.c.bf16 %v3852_v20, %v3851_v38  ;;  %v3854_v3 = vadd.f32 %v3261_v6, %v2339_v32 }
 0x427   : > { %3326 = vst [vmem:[%s5708_s8 + $0x20] sm:$0xff] %v3837_v59  ;;  %v3838_v51 = vpack.c.bf16 %v3854_v3, %v3853_v43 }
 0x429   : > { %3327 = vst [vmem:[%s5708_s8 + $0x28] sm:$0xff] %v3838_v51  ;;  %v3265_v27 = vpop.f32.mrb[12].mxu0 }
 0x42a   : > { %v3855_v39 = vadd.f32 %v3265_v27, %v2335_v62  ;;  %v3267_v29 = vpop.f32.mrb[13].mxu0 }
 0x42b   : > { %v3856_v7 = vadd.f32 %v3267_v29, %v2339_v32  ;;  %v3269_v1 = vpop.f32.mrb[14].mxu0 }
 0x42c   : > { %v3857_v45 = vadd.f32 %v3269_v1, %v2335_v62  ;;  %v3271_v14 = vpop.f32.mrb[15].mxu0 }
 0x42d   : > { %v3839_v46 = vpack.c.bf16 %v3856_v7, %v3855_v39  ;;  %v3858_v36 = vadd.f32 %v3271_v14, %v2339_v32 }
 0x42f   : > { %3328 = vst [vmem:[%s5708_s8 + $0x30] sm:$0xff] %v3839_v46  ;;  %v3840_v22 = vpack.c.bf16 %v3858_v36, %v3857_v45 }
 0x431   : > { %3329 = vst [vmem:[%s5708_s8 + $0x38] sm:$0xff] %v3840_v22 }
 0x432   : > { %4696 = shalt.err (!%p4693_p8)
}
 0x433   : > { %s4697_s9 = scalar_lea.hbm %s5723_s19, 1024  ;;  %s4701_s23 = scalar_lea.hbm %s5776_s7, 2048 }
 0x434   : > { %p4698_p13 = scmp.ne.s32.totalorder %s5723_s19, %s4697_s9  ;;  %p4702_p9 = scmp.lt.u32.totalorder %s5723_s19, %s5776_s7 }
 0x435   : > { %p4703_p10 = scmp.lt.u32.totalorder %s4701_s23, %s4697_s9  ;;  %p4705_p6 = scmp.lt.u32.totalorder %s4697_s9, %s5723_s19 }
 0x436   : > { %p4699_p0 = pnand %p4698_p13, %p5798_p12 }
 0x437   : > { %p4704_p11 = por %p4703_p10, %p4702_p9 }
 0x438   : > { %p4700_p2 = pneg %p4699_p0 }
 0x439   : > { %p4706_p5 = por %p4705_p6, %p4704_p11 }
 0x43b   : > { %p4707_p7 = pnand %p4706_p5, %p4700_p2 }
 0x43d   : > { %4710 = shalt.err (!%p4707_p7)
}
 0x43e   : > { %s4775_s20 = smov 128   ;;  %s4776_s16 = smov 8  }
 0x43f   : > { %3933 = dma.vmem_to_hbm [thread:$0]  (%p5798_p12), %s5718_s18, 1024, %s5723_s19, %s3331_s10, %s4775_s20, %s4775_s20, %s4776_s16  }
 0x440 PF: > { %s3360_s1 = sand.u32 1, %s4749_s24   ;;  %p5799_p4 = scmp.ne.s32.totalorder %s5789_s28, 0 }
 0x441   : > { %p5800_p1 = scmp.ge.s32.totalorder %s4761_s27, 2  ;;  %s3361_s30 = scalar_lea.sflag [#allocation4], %s3360_s1 }
 0x443   : > { %p3959_p3 = pnand %p5800_p1, %p5799_p4 }
 0x445   : > { %4744 = dma.done.wait (!%p3959_p3), %s3361_s30, 1024  }
 0x446   : > { %4746 = vsyncadd (!%p3959_p3), %s3361_s30, 4294966272  ;;  %p23_p8 = scmp.ge.s32.totalorder %s4989_s11, 4   ;;  %s5801_s24 = smov %s4753_s25 }
 0x447   : > { %s5802_s25 = smov %s4757_s26  ;;  %s5803_s26 = smov %s5000_s13 }
 0x448   : > { %s5804_s27 = smov %s4989_s11  ;;  %25 = sbr.rel (!%p23_p8) target bundleno = 10 (0xa), region = 117 }
 0x44f   :  { %3366 = vsyncpa [#allocation3], 1 }
 0x450   :  { %3368 = vsyncpa [#allocation3 + $0x1], 1 }
 0x451   :  { %3369 = vsyncpa [#allocation6], 1 }
 0x452   :  { %3370 = vsyncpa [#allocation9], 1 }
 0x453   :  { %3371 = vsyncpa [#allocation12], 1 }
 0x454   :  { %3372 = vsyncpa [#allocation4], 1 }
 0x455   :  { %3374 = vsyncpa [#allocation4 + $0x1], 1 }

</bundles_post_ra>
